<compile_context>
chip_gen: v6e
topology: v6e:2x2x1
jax: 0.10.0
libtpu: 0.0.40
codegen_flags: <defaults>
</compile_context>

<pallas_src>
import functools

import jax
import jax.numpy as jnp
from jax import lax
from jax.experimental import pallas as pl
from jax.experimental.pallas import tpu as pltpu


def _round_up(v, m):
    return ((v + m - 1) // m) * m


def _vmem_limit_bytes():
    """Per-generation scoped-VMEM budget (v5e/v6e 128 MiB, v7x 64 MiB)."""
    try:
        info = pltpu.get_tpu_info()
        cap = getattr(info, "vmem_capacity_bytes", None)
        if cap:
            return (int(cap) * 3) // 4
    except Exception:
        pass
    return 48 * 1024 * 1024          # conservative (v7x-safe) fallback


_VMEM_LIMIT = _vmem_limit_bytes()
_HW_TILE_TARGET = 1024 if _VMEM_LIMIT >= 72 * 1024 * 1024 else 512


def _pick_hw_tile(hw, target=None):
    """Largest multiple of 8 dividing hw and <= target; else the full extent."""
    target = target or _HW_TILE_TARGET
    best = 0
    for t in range(8, min(hw, target) + 1, 8):
        if hw % t == 0:
            best = t
    return best if best else hw


# ----------------------------------------------------------------------------
# Pallas kernels
# ----------------------------------------------------------------------------
def conv_direct_kernel(x_ref, w_ref, b_ref, o_ref, *, taps, wp, relu):
    """Direct conv on one image: in-kernel tap gather + MXU accumulation.

    x_ref: (1, Lp, Cin)   spatially padded, space-to-depth'd, row-flattened img
    w_ref: (ntaps, Cin, Cout) BN-folded per-tap weight stack (bf16)
    b_ref: (1, Cout)      BN bias (f32)
    o_ref: (1, Ho*Wp, Cout)  pad columns / guard rows are sliced off by caller
    Every tap slice is a single contiguous row window of the flattened image,
    so there are no in-kernel reshapes and no strided loads.
    """
    m = o_ref.shape[1]
    n = o_ref.shape[2]
    acc = jnp.zeros((m, n), jnp.float32)
    for idx, (ki, kj) in enumerate(taps):             # static unroll
        xs = x_ref[0, pl.ds(ki * wp + kj, m), :]
        acc = acc + jnp.dot(xs, w_ref[idx], preferred_element_type=jnp.float32)
    y = acc + b_ref[...]
    if relu:
        y = jnp.maximum(y, 0.0)
    o_ref[0] = y.astype(o_ref.dtype)


def maxpool_sd_kernel(x_ref, o_ref, *, taps, c):
    """Running max over the pool taps of a space-to-depth'd padded image.

    x_ref: (1, Lp, s*s*C) flattened padded image; taps = (row_off, chan_off).
    """
    m = o_ref.shape[1]
    res = None
    for (roff, coff) in taps:                         # static unroll
        v = x_ref[0, pl.ds(roff, m), pl.ds(coff, c)]
        res = v if res is None else jnp.maximum(res, v)
    o_ref[0] = res


def tsm_conv1x1_kernel(x_ref, w_ref, b_ref, o1_ref, o2_ref, *, fold, n1):
    """Fused TemporalShift (shift_place='block') + ONE concatenated 1x1 matmul.

    The shifted tensor never touches HBM; the single (C, n1+n2) matmul feeds
    both bottleneck conv1 (+BN+ReLU, lanes [0,n1)) and the downsample conv
    (+BN, lanes [n1,n1+n2)), so xs makes one MXU pass per time step.
    x_ref block: (1, T, thw, C); shift is computed per T step (static unroll).
    """
    _, T, thw, C = x_ref.shape
    cid = lax.broadcasted_iota(jnp.int32, (thw, C), 1)
    zero = jnp.zeros((thw, C), x_ref.dtype)
    for t in range(T):
        x_cur = x_ref[0, t]
        x_nxt = x_ref[0, t + 1] if t + 1 < T else zero   # channels [0, fold)
        x_prv = x_ref[0, t - 1] if t >= 1 else zero      # channels [fold, 2*fold)
        xs = jnp.where(cid < fold, x_nxt,
                       jnp.where(cid < 2 * fold, x_prv, x_cur))
        y = jnp.dot(xs, w_ref[...], preferred_element_type=jnp.float32) + b_ref[...]
        o1_ref[0, t] = jnp.maximum(y[:, :n1], 0.0).astype(o1_ref.dtype)
        o2_ref[0, t] = y[:, n1:].astype(o2_ref.dtype)


def conv3_res_tfuse_kernel(z_ref, r_ref, w_ref, b_ref, o_ref):
    """Fused bottleneck conv3 (1x1) + BN + residual add + ReLU + temporal_fusion
    (sum over the T segments).  T is statically unrolled in the body and the
    summed tile is written exactly once (no pl.when init, no output RMW)."""
    T = z_ref.shape[1]
    acc = jnp.zeros((o_ref.shape[1], o_ref.shape[2]), jnp.float32)
    for t in range(T):
        y = jnp.dot(z_ref[0, t], w_ref[...], preferred_element_type=jnp.float32)
        y = y + b_ref[...] + r_ref[0, t].astype(jnp.float32)
        acc = acc + jnp.maximum(y, 0.0)
    o_ref[0] = acc


# ----------------------------------------------------------------------------
# Weight prep (frozen-BN folded into the matmul weights, bf16 MXU operands)
# ----------------------------------------------------------------------------
def _conv_tap_weight(w_oihw, bn, stride, cin_pad, cout_pad, k_pad):
    """Build the (Kh*Kw, k_pad, cout_pad) per-tap weight stack matching the
    wrapper's space-to-depth-by-stride input layout (BN scale folded in)."""
    scale, bias = bn
    cout, cin, kh, kw = w_oihw.shape
    w = w_oihw * scale[:, None, None, None]
    w = jnp.transpose(w, (2, 3, 1, 0))                      # (kh, kw, cin, cout)
    w = jnp.pad(w, ((0, 0), (0, 0), (0, cin_pad - cin), (0, cout_pad - cout)))
    s = stride
    Kh, Kw = (kh - 1) // s + 1, (kw - 1) // s + 1
    taps = jnp.zeros((Kh, Kw, s, s, cin_pad, cout_pad), w.dtype)
    for KI in range(Kh):
        for KJ in range(Kw):
            for di in range(s):
                for dj in range(s):
                    ki, kj = s * KI + di, s * KJ + dj
                    if ki < kh and kj < kw:
                        taps = taps.at[KI, KJ, di, dj].set(w[ki, kj])
    taps = taps.reshape(Kh * Kw, s * s * cin_pad, cout_pad)
    taps = jnp.pad(taps, ((0, 0), (0, k_pad - s * s * cin_pad), (0, 0)))
    bvec = jnp.pad(bias, (0, cout_pad - cout)).reshape(1, cout_pad)
    return taps.astype(jnp.bfloat16), bvec.astype(jnp.float32), (Kh, Kw)


def _conv1x1_weight(w_oihw, bn, cin_pad, cout_pad):
    scale, bias = bn
    cout, cin = w_oihw.shape[0], w_oihw.shape[1]
    wmat = jnp.transpose(w_oihw[:, :, 0, 0] * scale[:, None], (1, 0))   # (cin, cout)
    wmat = jnp.pad(wmat, ((0, cin_pad - cin), (0, cout_pad - cout)))
    bvec = jnp.pad(bias, (0, cout_pad - cout)).reshape(1, cout_pad)
    return wmat.astype(jnp.bfloat16), bvec.astype(jnp.float32)


# ----------------------------------------------------------------------------
# Wrappers (only O(1x)-traffic layout plumbing outside the kernels)
# ----------------------------------------------------------------------------
def conv2d_direct(x, w_oihw, bn, *, stride, pad, relu, cout_pad):
    """conv + frozen-BN (+ReLU); the k*k tap gather runs INSIDE the kernel."""
    # TODO(synk): per-image full-spatial blocks; add row-tiling with halo DMA
    #             (memory_space=pl.ANY + make_async_copy) for large resolutions.
    N, H, W, Cin = x.shape
    cout, _, kh, kw = w_oihw.shape
    s = stride
    Ho = (H + 2 * pad - kh) // s + 1
    Wo = (W + 2 * pad - kw) // s + 1
    Hp = _round_up(H + 2 * pad, s)
    Wp = _round_up(W + 2 * pad, s)
    xp = jnp.pad(x, ((0, 0), (pad, Hp - H - pad), (pad, Wp - W - pad), (0, 0)))
    Hb, Wb = Hp // s, Wp // s
    if s > 1:  # space-to-depth by stride -> kernel only needs unit-stride slices
        xp = xp.reshape(N, Hb, s, Wb, s, Cin)
        xp = jnp.transpose(xp, (0, 1, 3, 2, 4, 5))
    cin_eff = s * s * Cin
    k_eff = _round_up(cin_eff, 16)                       # bf16 sublane packing
    xp = xp.reshape(N, Hb * Wb, cin_eff)
    if k_eff != cin_eff:
        xp = jnp.pad(xp, ((0, 0), (0, 0), (0, k_eff - cin_eff)))

    taps_w, bvec, (Kh, Kw) = _conv_tap_weight(w_oihw, bn, s, Cin, cout_pad, k_eff)
    m = Ho * Wb
    lp = _round_up(max((Ho + Kh - 1) * Wb + (Kw - 1), Hb * Wb), 8)
    xp = jnp.pad(xp, ((0, 0), (0, lp - Hb * Wb), (0, 0)))

    tap_idx = tuple((ki, kj) for ki in range(Kh) for kj in range(Kw))
    out = pl.pallas_call(
        functools.partial(conv_direct_kernel, taps=tap_idx, wp=Wb, relu=relu),
        out_shape=jax.ShapeDtypeStruct((N, m, cout_pad), jnp.bfloat16),
        grid=(N,),
        in_specs=[
            pl.BlockSpec((1, lp, k_eff), lambda i: (i, 0, 0)),
            pl.BlockSpec((Kh * Kw, k_eff, cout_pad), lambda i: (0, 0, 0)),
            pl.BlockSpec((1, cout_pad), lambda i: (0, 0)),
        ],
        out_specs=pl.BlockSpec((1, m, cout_pad), lambda i: (i, 0, 0)),
        compiler_params=pltpu.CompilerParams(
            dimension_semantics=("parallel",),
            vmem_limit_bytes=_VMEM_LIMIT,
        ),
    )(xp, taps_w, bvec)
    # drop the pad columns (kept during compute so every tap slice is a single
    # contiguous row window; the stores themselves stay lane-dense 128/256)
    return out.reshape(N, Ho, Wb, cout_pad)[:, :, :Wo, :]


def maxpool2d_sd(x, *, k, stride, pad):
    """MaxPool2d reading the padded input directly inside the kernel."""
    N, H, W, C = x.shape
    s = stride
    Ho = (H + 2 * pad - k) // s + 1
    Wo = (W + 2 * pad - k) // s + 1
    Hp = _round_up(H + 2 * pad, s)
    Wp = _round_up(W + 2 * pad, s)
    xp = jnp.pad(x, ((0, 0), (pad, Hp - H - pad), (pad, Wp - W - pad), (0, 0)),
                 constant_values=-1e30)                  # representable in bf16
    Hb, Wb = Hp // s, Wp // s
    if s > 1:
        xp = xp.reshape(N, Hb, s, Wb, s, C)
        xp = jnp.transpose(xp, (0, 1, 3, 2, 4, 5))
    xp = xp.reshape(N, Hb * Wb, s * s * C)
    Kh = Kw = (k - 1) // s + 1
    m = Ho * Wb
    lp = _round_up(max((Ho + Kh - 1) * Wb + (Kw - 1), Hb * Wb), 8)
    xp = jnp.pad(xp, ((0, 0), (0, lp - Hb * Wb), (0, 0)), constant_values=-1e30)

    taps = tuple(((ki // s) * Wb + (kj // s), ((ki % s) * s + (kj % s)) * C)
                 for ki in range(k) for kj in range(k))
    out = pl.pallas_call(
        functools.partial(maxpool_sd_kernel, taps=taps, c=C),
        out_shape=jax.ShapeDtypeStruct((N, m, C), x.dtype),
        grid=(N,),
        in_specs=[pl.BlockSpec((1, lp, s * s * C), lambda i: (i, 0, 0))],
        out_specs=pl.BlockSpec((1, m, C), lambda i: (i, 0, 0)),
        compiler_params=pltpu.CompilerParams(
            dimension_semantics=("parallel",),
            vmem_limit_bytes=_VMEM_LIMIT,
        ),
    )(xp)
    return out.reshape(N, Ho, Wb, C)[:, :, :Wo, :]


def tsm_dual_conv1x1(xr, wcat, bcat, n1, fold):
    Bn, T, HW, C = xr.shape
    ncat = wcat.shape[1]
    n2 = ncat - n1
    thw = _pick_hw_tile(HW)
    return pl.pallas_call(
        functools.partial(tsm_conv1x1_kernel, fold=fold, n1=n1),
        out_shape=(jax.ShapeDtypeStruct((Bn, T, HW, n1), jnp.bfloat16),
                   jax.ShapeDtypeStruct((Bn, T, HW, n2), jnp.bfloat16)),
        grid=(Bn, HW // thw),
        in_specs=[
            pl.BlockSpec((1, T, thw, C), lambda b, h: (b, 0, h, 0)),
            pl.BlockSpec((C, ncat), lambda b, h: (0, 0)),
            pl.BlockSpec((1, ncat), lambda b, h: (0, 0)),
        ],
        out_specs=(
            pl.BlockSpec((1, T, thw, n1), lambda b, h: (b, 0, h, 0)),
            pl.BlockSpec((1, T, thw, n2), lambda b, h: (b, 0, h, 0)),
        ),
        compiler_params=pltpu.CompilerParams(
            dimension_semantics=("parallel", "parallel"),
            vmem_limit_bytes=_VMEM_LIMIT,
        ),
    )(xr, wcat, bcat)


def conv3_res_tfuse(z, res, w3, b3):
    Bn, T, HW, Cin = z.shape
    n3 = w3.shape[1]
    thw = _pick_hw_tile(HW)
    return pl.pallas_call(
        conv3_res_tfuse_kernel,
        out_shape=jax.ShapeDtypeStruct((Bn, HW, n3), jnp.float32),
        grid=(Bn, HW // thw),
        in_specs=[
            pl.BlockSpec((1, T, thw, Cin), lambda b, h: (b, 0, h, 0)),
            pl.BlockSpec((1, T, thw, n3), lambda b, h: (b, 0, h, 0)),
            pl.BlockSpec((Cin, n3), lambda b, h: (0, 0)),
            pl.BlockSpec((1, n3), lambda b, h: (0, 0)),
        ],
        out_specs=pl.BlockSpec((1, thw, n3), lambda b, h: (b, h, 0)),
        compiler_params=pltpu.CompilerParams(
            dimension_semantics=("parallel", "parallel"),
            vmem_limit_bytes=_VMEM_LIMIT,
        ),
    )(z, res, w3, b3)


# ----------------------------------------------------------------------------
# TS_Encoder forward
# ----------------------------------------------------------------------------
def ts_encoder_forward(x_nchw, params, *, num_segments=3, shift_div=8):
    H, W = x_nchw.shape[-2], x_nchw.shape[-1]
    sample_len = 3
    # input.view((-1, 3, H, W)) -> NHWC, bf16 activations (channels on lanes)
    x = x_nchw.reshape(-1, sample_len, H, W).astype(jnp.bfloat16)
    x = jnp.transpose(x, (0, 2, 3, 1))

    CPAD = 128   # 64-channel stages carried lane-dense (extra 64 lanes are zeros)

    # ---- ResNet stem: conv7x7/2 + BN + ReLU, then maxpool 3x3/2 ----
    x = conv2d_direct(x, params["conv1_w"], params["bn1"],
                      stride=2, pad=3, relu=True, cout_pad=CPAD)
    x = maxpool2d_sd(x, k=3, stride=2, pad=1)

    NT, Hc, Wc, _ = x.shape
    Bn = NT // num_segments
    HW = Hc * Wc
    c_true = params["b_conv1_w"].shape[1]            # 64 real channels
    fold = c_true // shift_div

    # ---- layer1 bottleneck wrapped by TemporalShift (shift_place='block') ----
    # fused kernel #1: TSM + ONE concatenated 1x1 matmul -> [conv1 | downsample]
    w1, b1 = _conv1x1_weight(params["b_conv1_w"], params["b_bn1"], CPAD, CPAD)
    wd, bd = _conv1x1_weight(params["d_conv_w"], params["d_bn"], CPAD, 256)
    wcat = jnp.concatenate([w1, wd], axis=1)         # (128, 128 + 256)
    bcat = jnp.concatenate([b1, bd], axis=1)
    xr = x.reshape(Bn, num_segments, HW, CPAD)
    y1, identity = tsm_dual_conv1x1(xr, wcat, bcat, CPAD, fold)

    # bottleneck conv2: 3x3 + BN + ReLU, 9-tap gather in-kernel (no im2col)
    y2 = conv2d_direct(y1.reshape(NT, Hc, Wc, CPAD), params["b_conv2_w"],
                       params["b_bn2"], stride=1, pad=1, relu=True, cout_pad=CPAD)

    # fused kernel #2: conv3 (1x1,BN) + residual + ReLU + temporal_fusion (sum T)
    w3, b3 = _conv1x1_weight(params["b_conv3_w"], params["b_bn3"], CPAD, 256)
    out = conv3_res_tfuse(y2.reshape(Bn, num_segments, HW, CPAD), identity, w3, b3)
    # TODO(synk): remaining resnet101 bottleneck blocks (layers 1-4 depth) omitted.

    out = out.reshape(Bn, Hc, Wc, 256)
    return jnp.transpose(out, (0, 3, 1, 2)).astype(jnp.float32)   # back to NCHW


# ----------------------------------------------------------------------------
# Deterministic parameter init (frozen-BN folded into scale/bias, eval mode)
# ----------------------------------------------------------------------------
def init_params(key):
    ks = iter(jax.random.split(key, 32))

    def conv(cout, cin, kh, kw):
        fan = cin * kh * kw
        return jax.random.normal(next(ks), (cout, cin, kh, kw), jnp.float32) * (2.0 / fan) ** 0.5

    def bn(c):
        gamma = 1.0 + 0.1 * jax.random.normal(next(ks), (c,), jnp.float32)
        beta = 0.1 * jax.random.normal(next(ks), (c,), jnp.float32)
        mean = 0.1 * jax.random.normal(next(ks), (c,), jnp.float32)
        var = jnp.ones((c,), jnp.float32)
        scale = gamma / jnp.sqrt(var + 1e-5)
        return scale, beta - mean * scale

    return {
        "conv1_w": conv(64, 3, 7, 7),    "bn1": bn(64),
        "b_conv1_w": conv(64, 64, 1, 1), "b_bn1": bn(64),
        "b_conv2_w": conv(64, 64, 3, 3), "b_bn2": bn(64),
        "b_conv3_w": conv(256, 64, 1, 1), "b_bn3": bn(256),
        "d_conv_w": conv(256, 64, 1, 1), "d_bn": bn(256),
    }


if __name__ == "__main__":
    key = jax.random.PRNGKey(0)
    kx, kp = jax.random.split(key)
    B, T, H, W = 2, 3, 16, 16                     # num_segments = 3
    x = jax.random.normal(kx, (B, T * 3, H, W), jnp.float32)   # NCHW, 3 RGB per segment
    params = init_params(kp)

    fwd = jax.jit(functools.partial(ts_encoder_forward, num_segments=T, shift_div=8))
    out = fwd(x, params)
    jax.block_until_ready(out)
    assert out.shape == (B, 256, 4, 4), out.shape
    print("KERNEL_OK")
</pallas_src>

<mosaic_0001>
module attributes {stable_mosaic.version = 11 : i64} {
  func.func @conv_direct_kernel(%arg0: i32, %arg1: memref<1x128x16xbf16, #tpu.memory_space<vmem>>, %arg2: memref<16x16x128xbf16, #tpu.memory_space<vmem>>, %arg3: memref<1x128xf32, #tpu.memory_space<vmem>>, %arg4: memref<1x88x128xbf16, #tpu.memory_space<vmem>>) attributes {dimension_semantics = [#tpu.dimension_semantics<parallel>], iteration_bounds = array<i64: 6>, scalar_prefetch = 0 : i64, scratch_operands = 0 : i64, tpu.core_type = #tpu.core_type<tc>, window_params = [{transform_indices = @transform_0, window_bounds = array<i64: 1, 128, 16>}, {pipeline_mode = #tpu.pipeline_mode<synchronous>, transform_indices = @transform_1, window_bounds = array<i64: 16, 16, 128>}, {pipeline_mode = #tpu.pipeline_mode<synchronous>, transform_indices = @transform_2, window_bounds = array<i64: 1, 128>}, {transform_indices = @transform_3, window_bounds = array<i64: 1, 88, 128>}]} {
    %cst = arith.constant 0.000000e+00 : f32
    %0 = vector.broadcast %cst : f32 to vector<88x128xf32>
    %c0 = arith.constant 0 : index
    %c0_0 = arith.constant 0 : index
    %c0_1 = arith.constant 0 : index
    %1 = vector.load %arg1[%c0, %c0_0, %c0_1] : memref<1x128x16xbf16, #tpu.memory_space<vmem>>, vector<1x88x16xbf16>
    %2 = vector.shape_cast %1 : vector<1x88x16xbf16> to vector<88x16xbf16>
    %c0_2 = arith.constant 0 : index
    %c0_3 = arith.constant 0 : index
    %c0_4 = arith.constant 0 : index
    %3 = vector.load %arg2[%c0_2, %c0_3, %c0_4] : memref<16x16x128xbf16, #tpu.memory_space<vmem>>, vector<1x16x128xbf16>
    %4 = vector.shape_cast %3 : vector<1x16x128xbf16> to vector<16x128xbf16>
    %cst_5 = arith.constant dense<0.000000e+00> : vector<88x128xf32>
    %5 = tpu.matmul %2, %4, %cst_5 {dimension_numbers = #tpu.dot_dimension_numbers<[1], [0], [0], [1], [0, 0, 1, 1], [], []>} : vector<88x16xbf16>, vector<16x128xbf16>, vector<88x128xf32> -> vector<88x128xf32>
    %6 = arith.addf %0, %5 : vector<88x128xf32>
    %c0_6 = arith.constant 0 : index
    %c1 = arith.constant 1 : index
    %c0_7 = arith.constant 0 : index
    %7 = vector.load %arg1[%c0_6, %c1, %c0_7] : memref<1x128x16xbf16, #tpu.memory_space<vmem>>, vector<1x88x16xbf16>
    %8 = vector.shape_cast %7 : vector<1x88x16xbf16> to vector<88x16xbf16>
    %c1_8 = arith.constant 1 : index
    %c0_9 = arith.constant 0 : index
    %c0_10 = arith.constant 0 : index
    %9 = vector.load %arg2[%c1_8, %c0_9, %c0_10] : memref<16x16x128xbf16, #tpu.memory_space<vmem>>, vector<1x16x128xbf16>
    %10 = vector.shape_cast %9 : vector<1x16x128xbf16> to vector<16x128xbf16>
    %cst_11 = arith.constant dense<0.000000e+00> : vector<88x128xf32>
    %11 = tpu.matmul %8, %10, %cst_11 {dimension_numbers = #tpu.dot_dimension_numbers<[1], [0], [0], [1], [0, 0, 1, 1], [], []>} : vector<88x16xbf16>, vector<16x128xbf16>, vector<88x128xf32> -> vector<88x128xf32>
    %12 = arith.addf %6, %11 : vector<88x128xf32>
    %c0_12 = arith.constant 0 : index
    %c2 = arith.constant 2 : index
    %c0_13 = arith.constant 0 : index
    %13 = vector.load %arg1[%c0_12, %c2, %c0_13] : memref<1x128x16xbf16, #tpu.memory_space<vmem>>, vector<1x88x16xbf16>
    %14 = vector.shape_cast %13 : vector<1x88x16xbf16> to vector<88x16xbf16>
    %c2_14 = arith.constant 2 : index
    %c0_15 = arith.constant 0 : index
    %c0_16 = arith.constant 0 : index
    %15 = vector.load %arg2[%c2_14, %c0_15, %c0_16] : memref<16x16x128xbf16, #tpu.memory_space<vmem>>, vector<1x16x128xbf16>
    %16 = vector.shape_cast %15 : vector<1x16x128xbf16> to vector<16x128xbf16>
    %cst_17 = arith.constant dense<0.000000e+00> : vector<88x128xf32>
    %17 = tpu.matmul %14, %16, %cst_17 {dimension_numbers = #tpu.dot_dimension_numbers<[1], [0], [0], [1], [0, 0, 1, 1], [], []>} : vector<88x16xbf16>, vector<16x128xbf16>, vector<88x128xf32> -> vector<88x128xf32>
    %18 = arith.addf %12, %17 : vector<88x128xf32>
    %c0_18 = arith.constant 0 : index
    %c3 = arith.constant 3 : index
    %c0_19 = arith.constant 0 : index
    %19 = vector.load %arg1[%c0_18, %c3, %c0_19] : memref<1x128x16xbf16, #tpu.memory_space<vmem>>, vector<1x88x16xbf16>
    %20 = vector.shape_cast %19 : vector<1x88x16xbf16> to vector<88x16xbf16>
    %c3_20 = arith.constant 3 : index
    %c0_21 = arith.constant 0 : index
    %c0_22 = arith.constant 0 : index
    %21 = vector.load %arg2[%c3_20, %c0_21, %c0_22] : memref<16x16x128xbf16, #tpu.memory_space<vmem>>, vector<1x16x128xbf16>
    %22 = vector.shape_cast %21 : vector<1x16x128xbf16> to vector<16x128xbf16>
    %cst_23 = arith.constant dense<0.000000e+00> : vector<88x128xf32>
    %23 = tpu.matmul %20, %22, %cst_23 {dimension_numbers = #tpu.dot_dimension_numbers<[1], [0], [0], [1], [0, 0, 1, 1], [], []>} : vector<88x16xbf16>, vector<16x128xbf16>, vector<88x128xf32> -> vector<88x128xf32>
    %24 = arith.addf %18, %23 : vector<88x128xf32>
    %c0_24 = arith.constant 0 : index
    %c11 = arith.constant 11 : index
    %c0_25 = arith.constant 0 : index
    %25 = vector.load %arg1[%c0_24, %c11, %c0_25] : memref<1x128x16xbf16, #tpu.memory_space<vmem>>, vector<1x88x16xbf16>
    %26 = vector.shape_cast %25 : vector<1x88x16xbf16> to vector<88x16xbf16>
    %c4 = arith.constant 4 : index
    %c0_26 = arith.constant 0 : index
    %c0_27 = arith.constant 0 : index
    %27 = vector.load %arg2[%c4, %c0_26, %c0_27] : memref<16x16x128xbf16, #tpu.memory_space<vmem>>, vector<1x16x128xbf16>
    %28 = vector.shape_cast %27 : vector<1x16x128xbf16> to vector<16x128xbf16>
    %cst_28 = arith.constant dense<0.000000e+00> : vector<88x128xf32>
    %29 = tpu.matmul %26, %28, %cst_28 {dimension_numbers = #tpu.dot_dimension_numbers<[1], [0], [0], [1], [0, 0, 1, 1], [], []>} : vector<88x16xbf16>, vector<16x128xbf16>, vector<88x128xf32> -> vector<88x128xf32>
    %30 = arith.addf %24, %29 : vector<88x128xf32>
    %c0_29 = arith.constant 0 : index
    %c12 = arith.constant 12 : index
    %c0_30 = arith.constant 0 : index
    %31 = vector.load %arg1[%c0_29, %c12, %c0_30] : memref<1x128x16xbf16, #tpu.memory_space<vmem>>, vector<1x88x16xbf16>
    %32 = vector.shape_cast %31 : vector<1x88x16xbf16> to vector<88x16xbf16>
    %c5 = arith.constant 5 : index
    %c0_31 = arith.constant 0 : index
    %c0_32 = arith.constant 0 : index
    %33 = vector.load %arg2[%c5, %c0_31, %c0_32] : memref<16x16x128xbf16, #tpu.memory_space<vmem>>, vector<1x16x128xbf16>
    %34 = vector.shape_cast %33 : vector<1x16x128xbf16> to vector<16x128xbf16>
    %cst_33 = arith.constant dense<0.000000e+00> : vector<88x128xf32>
    %35 = tpu.matmul %32, %34, %cst_33 {dimension_numbers = #tpu.dot_dimension_numbers<[1], [0], [0], [1], [0, 0, 1, 1], [], []>} : vector<88x16xbf16>, vector<16x128xbf16>, vector<88x128xf32> -> vector<88x128xf32>
    %36 = arith.addf %30, %35 : vector<88x128xf32>
    %c0_34 = arith.constant 0 : index
    %c13 = arith.constant 13 : index
    %c0_35 = arith.constant 0 : index
    %37 = vector.load %arg1[%c0_34, %c13, %c0_35] : memref<1x128x16xbf16, #tpu.memory_space<vmem>>, vector<1x88x16xbf16>
    %38 = vector.shape_cast %37 : vector<1x88x16xbf16> to vector<88x16xbf16>
    %c6 = arith.constant 6 : index
    %c0_36 = arith.constant 0 : index
    %c0_37 = arith.constant 0 : index
    %39 = vector.load %arg2[%c6, %c0_36, %c0_37] : memref<16x16x128xbf16, #tpu.memory_space<vmem>>, vector<1x16x128xbf16>
    %40 = vector.shape_cast %39 : vector<1x16x128xbf16> to vector<16x128xbf16>
    %cst_38 = arith.constant dense<0.000000e+00> : vector<88x128xf32>
    %41 = tpu.matmul %38, %40, %cst_38 {dimension_numbers = #tpu.dot_dimension_numbers<[1], [0], [0], [1], [0, 0, 1, 1], [], []>} : vector<88x16xbf16>, vector<16x128xbf16>, vector<88x128xf32> -> vector<88x128xf32>
    %42 = arith.addf %36, %41 : vector<88x128xf32>
    %c0_39 = arith.constant 0 : index
    %c14 = arith.constant 14 : index
    %c0_40 = arith.constant 0 : index
    %43 = vector.load %arg1[%c0_39, %c14, %c0_40] : memref<1x128x16xbf16, #tpu.memory_space<vmem>>, vector<1x88x16xbf16>
    %44 = vector.shape_cast %43 : vector<1x88x16xbf16> to vector<88x16xbf16>
    %c7 = arith.constant 7 : index
    %c0_41 = arith.constant 0 : index
    %c0_42 = arith.constant 0 : index
    %45 = vector.load %arg2[%c7, %c0_41, %c0_42] : memref<16x16x128xbf16, #tpu.memory_space<vmem>>, vector<1x16x128xbf16>
    %46 = vector.shape_cast %45 : vector<1x16x128xbf16> to vector<16x128xbf16>
    %cst_43 = arith.constant dense<0.000000e+00> : vector<88x128xf32>
    %47 = tpu.matmul %44, %46, %cst_43 {dimension_numbers = #tpu.dot_dimension_numbers<[1], [0], [0], [1], [0, 0, 1, 1], [], []>} : vector<88x16xbf16>, vector<16x128xbf16>, vector<88x128xf32> -> vector<88x128xf32>
    %48 = arith.addf %42, %47 : vector<88x128xf32>
    %c0_44 = arith.constant 0 : index
    %c22 = arith.constant 22 : index
    %c0_45 = arith.constant 0 : index
    %49 = vector.load %arg1[%c0_44, %c22, %c0_45] : memref<1x128x16xbf16, #tpu.memory_space<vmem>>, vector<1x88x16xbf16>
    %50 = vector.shape_cast %49 : vector<1x88x16xbf16> to vector<88x16xbf16>
    %c8 = arith.constant 8 : index
    %c0_46 = arith.constant 0 : index
    %c0_47 = arith.constant 0 : index
    %51 = vector.load %arg2[%c8, %c0_46, %c0_47] : memref<16x16x128xbf16, #tpu.memory_space<vmem>>, vector<1x16x128xbf16>
    %52 = vector.shape_cast %51 : vector<1x16x128xbf16> to vector<16x128xbf16>
    %cst_48 = arith.constant dense<0.000000e+00> : vector<88x128xf32>
    %53 = tpu.matmul %50, %52, %cst_48 {dimension_numbers = #tpu.dot_dimension_numbers<[1], [0], [0], [1], [0, 0, 1, 1], [], []>} : vector<88x16xbf16>, vector<16x128xbf16>, vector<88x128xf32> -> vector<88x128xf32>
    %54 = arith.addf %48, %53 : vector<88x128xf32>
    %c0_49 = arith.constant 0 : index
    %c23 = arith.constant 23 : index
    %c0_50 = arith.constant 0 : index
    %55 = vector.load %arg1[%c0_49, %c23, %c0_50] : memref<1x128x16xbf16, #tpu.memory_space<vmem>>, vector<1x88x16xbf16>
    %56 = vector.shape_cast %55 : vector<1x88x16xbf16> to vector<88x16xbf16>
    %c9 = arith.constant 9 : index
    %c0_51 = arith.constant 0 : index
    %c0_52 = arith.constant 0 : index
    %57 = vector.load %arg2[%c9, %c0_51, %c0_52] : memref<16x16x128xbf16, #tpu.memory_space<vmem>>, vector<1x16x128xbf16>
    %58 = vector.shape_cast %57 : vector<1x16x128xbf16> to vector<16x128xbf16>
    %cst_53 = arith.constant dense<0.000000e+00> : vector<88x128xf32>
    %59 = tpu.matmul %56, %58, %cst_53 {dimension_numbers = #tpu.dot_dimension_numbers<[1], [0], [0], [1], [0, 0, 1, 1], [], []>} : vector<88x16xbf16>, vector<16x128xbf16>, vector<88x128xf32> -> vector<88x128xf32>
    %60 = arith.addf %54, %59 : vector<88x128xf32>
    %c0_54 = arith.constant 0 : index
    %c24 = arith.constant 24 : index
    %c0_55 = arith.constant 0 : index
    %61 = vector.load %arg1[%c0_54, %c24, %c0_55] : memref<1x128x16xbf16, #tpu.memory_space<vmem>>, vector<1x88x16xbf16>
    %62 = vector.shape_cast %61 : vector<1x88x16xbf16> to vector<88x16xbf16>
    %c10 = arith.constant 10 : index
    %c0_56 = arith.constant 0 : index
    %c0_57 = arith.constant 0 : index
    %63 = vector.load %arg2[%c10, %c0_56, %c0_57] : memref<16x16x128xbf16, #tpu.memory_space<vmem>>, vector<1x16x128xbf16>
    %64 = vector.shape_cast %63 : vector<1x16x128xbf16> to vector<16x128xbf16>
    %cst_58 = arith.constant dense<0.000000e+00> : vector<88x128xf32>
    %65 = tpu.matmul %62, %64, %cst_58 {dimension_numbers = #tpu.dot_dimension_numbers<[1], [0], [0], [1], [0, 0, 1, 1], [], []>} : vector<88x16xbf16>, vector<16x128xbf16>, vector<88x128xf32> -> vector<88x128xf32>
    %66 = arith.addf %60, %65 : vector<88x128xf32>
    %c0_59 = arith.constant 0 : index
    %c25 = arith.constant 25 : index
    %c0_60 = arith.constant 0 : index
    %67 = vector.load %arg1[%c0_59, %c25, %c0_60] : memref<1x128x16xbf16, #tpu.memory_space<vmem>>, vector<1x88x16xbf16>
    %68 = vector.shape_cast %67 : vector<1x88x16xbf16> to vector<88x16xbf16>
    %c11_61 = arith.constant 11 : index
    %c0_62 = arith.constant 0 : index
    %c0_63 = arith.constant 0 : index
    %69 = vector.load %arg2[%c11_61, %c0_62, %c0_63] : memref<16x16x128xbf16, #tpu.memory_space<vmem>>, vector<1x16x128xbf16>
    %70 = vector.shape_cast %69 : vector<1x16x128xbf16> to vector<16x128xbf16>
    %cst_64 = arith.constant dense<0.000000e+00> : vector<88x128xf32>
    %71 = tpu.matmul %68, %70, %cst_64 {dimension_numbers = #tpu.dot_dimension_numbers<[1], [0], [0], [1], [0, 0, 1, 1], [], []>} : vector<88x16xbf16>, vector<16x128xbf16>, vector<88x128xf32> -> vector<88x128xf32>
    %72 = arith.addf %66, %71 : vector<88x128xf32>
    %c0_65 = arith.constant 0 : index
    %c33 = arith.constant 33 : index
    %c0_66 = arith.constant 0 : index
    %73 = vector.load %arg1[%c0_65, %c33, %c0_66] : memref<1x128x16xbf16, #tpu.memory_space<vmem>>, vector<1x88x16xbf16>
    %74 = vector.shape_cast %73 : vector<1x88x16xbf16> to vector<88x16xbf16>
    %c12_67 = arith.constant 12 : index
    %c0_68 = arith.constant 0 : index
    %c0_69 = arith.constant 0 : index
    %75 = vector.load %arg2[%c12_67, %c0_68, %c0_69] : memref<16x16x128xbf16, #tpu.memory_space<vmem>>, vector<1x16x128xbf16>
    %76 = vector.shape_cast %75 : vector<1x16x128xbf16> to vector<16x128xbf16>
    %cst_70 = arith.constant dense<0.000000e+00> : vector<88x128xf32>
    %77 = tpu.matmul %74, %76, %cst_70 {dimension_numbers = #tpu.dot_dimension_numbers<[1], [0], [0], [1], [0, 0, 1, 1], [], []>} : vector<88x16xbf16>, vector<16x128xbf16>, vector<88x128xf32> -> vector<88x128xf32>
    %78 = arith.addf %72, %77 : vector<88x128xf32>
    %c0_71 = arith.constant 0 : index
    %c34 = arith.constant 34 : index
    %c0_72 = arith.constant 0 : index
    %79 = vector.load %arg1[%c0_71, %c34, %c0_72] : memref<1x128x16xbf16, #tpu.memory_space<vmem>>, vector<1x88x16xbf16>
    %80 = vector.shape_cast %79 : vector<1x88x16xbf16> to vector<88x16xbf16>
    %c13_73 = arith.constant 13 : index
    %c0_74 = arith.constant 0 : index
    %c0_75 = arith.constant 0 : index
    %81 = vector.load %arg2[%c13_73, %c0_74, %c0_75] : memref<16x16x128xbf16, #tpu.memory_space<vmem>>, vector<1x16x128xbf16>
    %82 = vector.shape_cast %81 : vector<1x16x128xbf16> to vector<16x128xbf16>
    %cst_76 = arith.constant dense<0.000000e+00> : vector<88x128xf32>
    %83 = tpu.matmul %80, %82, %cst_76 {dimension_numbers = #tpu.dot_dimension_numbers<[1], [0], [0], [1], [0, 0, 1, 1], [], []>} : vector<88x16xbf16>, vector<16x128xbf16>, vector<88x128xf32> -> vector<88x128xf32>
    %84 = arith.addf %78, %83 : vector<88x128xf32>
    %c0_77 = arith.constant 0 : index
    %c35 = arith.constant 35 : index
    %c0_78 = arith.constant 0 : index
    %85 = vector.load %arg1[%c0_77, %c35, %c0_78] : memref<1x128x16xbf16, #tpu.memory_space<vmem>>, vector<1x88x16xbf16>
    %86 = vector.shape_cast %85 : vector<1x88x16xbf16> to vector<88x16xbf16>
    %c14_79 = arith.constant 14 : index
    %c0_80 = arith.constant 0 : index
    %c0_81 = arith.constant 0 : index
    %87 = vector.load %arg2[%c14_79, %c0_80, %c0_81] : memref<16x16x128xbf16, #tpu.memory_space<vmem>>, vector<1x16x128xbf16>
    %88 = vector.shape_cast %87 : vector<1x16x128xbf16> to vector<16x128xbf16>
    %cst_82 = arith.constant dense<0.000000e+00> : vector<88x128xf32>
    %89 = tpu.matmul %86, %88, %cst_82 {dimension_numbers = #tpu.dot_dimension_numbers<[1], [0], [0], [1], [0, 0, 1, 1], [], []>} : vector<88x16xbf16>, vector<16x128xbf16>, vector<88x128xf32> -> vector<88x128xf32>
    %90 = arith.addf %84, %89 : vector<88x128xf32>
    %c0_83 = arith.constant 0 : index
    %c36 = arith.constant 36 : index
    %c0_84 = arith.constant 0 : index
    %91 = vector.load %arg1[%c0_83, %c36, %c0_84] : memref<1x128x16xbf16, #tpu.memory_space<vmem>>, vector<1x88x16xbf16>
    %92 = vector.shape_cast %91 : vector<1x88x16xbf16> to vector<88x16xbf16>
    %c15 = arith.constant 15 : index
    %c0_85 = arith.constant 0 : index
    %c0_86 = arith.constant 0 : index
    %93 = vector.load %arg2[%c15, %c0_85, %c0_86] : memref<16x16x128xbf16, #tpu.memory_space<vmem>>, vector<1x16x128xbf16>
    %94 = vector.shape_cast %93 : vector<1x16x128xbf16> to vector<16x128xbf16>
    %cst_87 = arith.constant dense<0.000000e+00> : vector<88x128xf32>
    %95 = tpu.matmul %92, %94, %cst_87 {dimension_numbers = #tpu.dot_dimension_numbers<[1], [0], [0], [1], [0, 0, 1, 1], [], []>} : vector<88x16xbf16>, vector<16x128xbf16>, vector<88x128xf32> -> vector<88x128xf32>
    %96 = arith.addf %90, %95 : vector<88x128xf32>
    %c0_88 = arith.constant 0 : index
    %c0_89 = arith.constant 0 : index
    %97 = vector.load %arg3[%c0_88, %c0_89] : memref<1x128xf32, #tpu.memory_space<vmem>>, vector<1x128xf32>
    %98 = vector.broadcast %97 : vector<1x128xf32> to vector<88x128xf32>
    %99 = arith.addf %96, %98 : vector<88x128xf32>
    %cst_90 = arith.constant 0.000000e+00 : f32
    %100 = vector.broadcast %cst_90 : f32 to vector<88x128xf32>
    %101 = arith.maximumf %99, %100 : vector<88x128xf32>
    %102 = arith.truncf %101 : vector<88x128xf32> to vector<88x128xbf16>
    %c0_91 = arith.constant 0 : index
    %c0_92 = arith.constant 0 : index
    %c0_93 = arith.constant 0 : index
    %103 = vector.load %arg4[%c0_91, %c0_92, %c0_93] : memref<1x88x128xbf16, #tpu.memory_space<vmem>>, vector<1x88x128xbf16>
    %104 = vector.shape_cast %103 : vector<1x88x128xbf16> to vector<88x128xbf16>
    %105 = vector.shape_cast %102 : vector<88x128xbf16> to vector<1x88x128xbf16>
    tpu.vector_store %arg4[%c0_91, %c0_92, %c0_93], %105 {strides = array<i32>} : memref<1x88x128xbf16, #tpu.memory_space<vmem>>, vector<1x88x128xbf16>,
    return
  }
  func.func @transform_0(%arg0: i32) -> (i32, i32, i32) {
    %c0_i32 = arith.constant 0 : i32
    %c0_i32_0 = arith.constant 0 : i32
    %c0_i32_1 = arith.constant 0 : i32
    return %arg0, %c0_i32, %c0_i32_0 : i32, i32, i32
  }
  func.func @transform_1(%arg0: i32) -> (i32, i32, i32) {
    %c0_i32 = arith.constant 0 : i32
    %c0_i32_0 = arith.constant 0 : i32
    %c0_i32_1 = arith.constant 0 : i32
    %c0_i32_2 = arith.constant 0 : i32
    return %c0_i32, %c0_i32_0, %c0_i32_1 : i32, i32, i32
  }
  func.func @transform_2(%arg0: i32) -> (i32, i32) {
    %c0_i32 = arith.constant 0 : i32
    %c0_i32_0 = arith.constant 0 : i32
    %c0_i32_1 = arith.constant 0 : i32
    return %c0_i32, %c0_i32_0 : i32, i32
  }
  func.func @transform_3(%arg0: i32) -> (i32, i32, i32) {
    %c0_i32 = arith.constant 0 : i32
    %c0_i32_0 = arith.constant 0 : i32
    %c0_i32_1 = arith.constant 0 : i32
    return %arg0, %c0_i32, %c0_i32_0 : i32, i32, i32
  }
}

module attributes {stable_mosaic.version = 11 : i64} {
  func.func @maxpool_sd_kernel(%arg0: i32, %arg1: memref<1x32x512xbf16, #tpu.memory_space<vmem>>, %arg2: memref<1x20x128xbf16, #tpu.memory_space<vmem>>) attributes {dimension_semantics = [#tpu.dimension_semantics<parallel>], iteration_bounds = array<i64: 6>, scalar_prefetch = 0 : i64, scratch_operands = 0 : i64, tpu.core_type = #tpu.core_type<tc>, window_params = [{transform_indices = @transform_0, window_bounds = array<i64: 1, 32, 512>}, {transform_indices = @transform_1, window_bounds = array<i64: 1, 20, 128>}]} {
    %c0 = arith.constant 0 : index
    %c0_0 = arith.constant 0 : index
    %c0_1 = arith.constant 0 : index
    %0 = vector.load %arg1[%c0, %c0_0, %c0_1] : memref<1x32x512xbf16, #tpu.memory_space<vmem>>, vector<1x20x128xbf16>
    %1 = vector.shape_cast %0 : vector<1x20x128xbf16> to vector<20x128xbf16>
    %c0_2 = arith.constant 0 : index
    %c0_3 = arith.constant 0 : index
    %c128 = arith.constant 128 : index
    %2 = vector.load %arg1[%c0_2, %c0_3, %c128] : memref<1x32x512xbf16, #tpu.memory_space<vmem>>, vector<1x20x128xbf16>
    %3 = vector.shape_cast %2 : vector<1x20x128xbf16> to vector<20x128xbf16>
    %4 = arith.maximumf %1, %3 : vector<20x128xbf16>
    %c0_4 = arith.constant 0 : index
    %c1 = arith.constant 1 : index
    %c0_5 = arith.constant 0 : index
    %5 = vector.load %arg1[%c0_4, %c1, %c0_5] : memref<1x32x512xbf16, #tpu.memory_space<vmem>>, vector<1x20x128xbf16>
    %6 = vector.shape_cast %5 : vector<1x20x128xbf16> to vector<20x128xbf16>
    %7 = arith.maximumf %4, %6 : vector<20x128xbf16>
    %c0_6 = arith.constant 0 : index
    %c0_7 = arith.constant 0 : index
    %c256 = arith.constant 256 : index
    %8 = vector.load %arg1[%c0_6, %c0_7, %c256] : memref<1x32x512xbf16, #tpu.memory_space<vmem>>, vector<1x20x128xbf16>
    %9 = vector.shape_cast %8 : vector<1x20x128xbf16> to vector<20x128xbf16>
    %10 = arith.maximumf %7, %9 : vector<20x128xbf16>
    %c0_8 = arith.constant 0 : index
    %c0_9 = arith.constant 0 : index
    %c384 = arith.constant 384 : index
    %11 = vector.load %arg1[%c0_8, %c0_9, %c384] : memref<1x32x512xbf16, #tpu.memory_space<vmem>>, vector<1x20x128xbf16>
    %12 = vector.shape_cast %11 : vector<1x20x128xbf16> to vector<20x128xbf16>
    %13 = arith.maximumf %10, %12 : vector<20x128xbf16>
    %c0_10 = arith.constant 0 : index
    %c1_11 = arith.constant 1 : index
    %c256_12 = arith.constant 256 : index
    %14 = vector.load %arg1[%c0_10, %c1_11, %c256_12] : memref<1x32x512xbf16, #tpu.memory_space<vmem>>, vector<1x20x128xbf16>
    %15 = vector.shape_cast %14 : vector<1x20x128xbf16> to vector<20x128xbf16>
    %16 = arith.maximumf %13, %15 : vector<20x128xbf16>
    %c0_13 = arith.constant 0 : index
    %c5 = arith.constant 5 : index
    %c0_14 = arith.constant 0 : index
    %17 = vector.load %arg1[%c0_13, %c5, %c0_14] : memref<1x32x512xbf16, #tpu.memory_space<vmem>>, vector<1x20x128xbf16>
    %18 = vector.shape_cast %17 : vector<1x20x128xbf16> to vector<20x128xbf16>
    %19 = arith.maximumf %16, %18 : vector<20x128xbf16>
    %c0_15 = arith.constant 0 : index
    %c5_16 = arith.constant 5 : index
    %c128_17 = arith.constant 128 : index
    %20 = vector.load %arg1[%c0_15, %c5_16, %c128_17] : memref<1x32x512xbf16, #tpu.memory_space<vmem>>, vector<1x20x128xbf16>
    %21 = vector.shape_cast %20 : vector<1x20x128xbf16> to vector<20x128xbf16>
    %22 = arith.maximumf %19, %21 : vector<20x128xbf16>
    %c0_18 = arith.constant 0 : index
    %c6 = arith.constant 6 : index
    %c0_19 = arith.constant 0 : index
    %23 = vector.load %arg1[%c0_18, %c6, %c0_19] : memref<1x32x512xbf16, #tpu.memory_space<vmem>>, vector<1x20x128xbf16>
    %24 = vector.shape_cast %23 : vector<1x20x128xbf16> to vector<20x128xbf16>
    %25 = arith.maximumf %22, %24 : vector<20x128xbf16>
    %c0_20 = arith.constant 0 : index
    %c0_21 = arith.constant 0 : index
    %c0_22 = arith.constant 0 : index
    %26 = vector.load %arg2[%c0_20, %c0_21, %c0_22] : memref<1x20x128xbf16, #tpu.memory_space<vmem>>, vector<1x20x128xbf16>
    %27 = vector.shape_cast %26 : vector<1x20x128xbf16> to vector<20x128xbf16>
    %28 = vector.shape_cast %25 : vector<20x128xbf16> to vector<1x20x128xbf16>
    tpu.vector_store %arg2[%c0_20, %c0_21, %c0_22], %28 {strides = array<i32>} : memref<1x20x128xbf16, #tpu.memory_space<vmem>>, vector<1x20x128xbf16>,
    return
  }
  func.func @transform_0(%arg0: i32) -> (i32, i32, i32) {
    %c0_i32 = arith.constant 0 : i32
    %c0_i32_0 = arith.constant 0 : i32
    %c0_i32_1 = arith.constant 0 : i32
    return %arg0, %c0_i32, %c0_i32_0 : i32, i32, i32
  }
  func.func @transform_1(%arg0: i32) -> (i32, i32, i32) {
    %c0_i32 = arith.constant 0 : i32
    %c0_i32_0 = arith.constant 0 : i32
    %c0_i32_1 = arith.constant 0 : i32
    return %arg0, %c0_i32, %c0_i32_0 : i32, i32, i32
  }
}

module attributes {stable_mosaic.version = 11 : i64} {
  func.func @tsm_conv1x1_kernel(%arg0: i32, %arg1: i32, %arg2: memref<1x3x16x128xbf16, #tpu.memory_space<vmem>>, %arg3: memref<128x384xbf16, #tpu.memory_space<vmem>>, %arg4: memref<1x384xf32, #tpu.memory_space<vmem>>, %arg5: memref<1x3x16x128xbf16, #tpu.memory_space<vmem>>, %arg6: memref<1x3x16x256xbf16, #tpu.memory_space<vmem>>) attributes {dimension_semantics = [#tpu.dimension_semantics<parallel>, #tpu.dimension_semantics<parallel>], iteration_bounds = array<i64: 2, 1>, scalar_prefetch = 0 : i64, scratch_operands = 0 : i64, tpu.core_type = #tpu.core_type<tc>, window_params = [{transform_indices = @transform_0, window_bounds = array<i64: 1, 3, 16, 128>}, {pipeline_mode = #tpu.pipeline_mode<synchronous>, transform_indices = @transform_1, window_bounds = array<i64: 128, 384>}, {pipeline_mode = #tpu.pipeline_mode<synchronous>, transform_indices = @transform_2, window_bounds = array<i64: 1, 384>}, {transform_indices = @transform_3, window_bounds = array<i64: 1, 3, 16, 128>}, {transform_indices = @transform_4, window_bounds = array<i64: 1, 3, 16, 256>}]} {
    %0 = tpu.iota {dimensions = array<i32: 1>} : vector<16x128xi32>
    %cst = arith.constant 0.000000e+00 : bf16
    %1 = vector.broadcast %cst : bf16 to vector<16x128xbf16>
    %c0 = arith.constant 0 : index
    %c0_0 = arith.constant 0 : index
    %c0_1 = arith.constant 0 : index
    %c0_2 = arith.constant 0 : index
    %2 = vector.load %arg2[%c0, %c0_0, %c0_1, %c0_2] : memref<1x3x16x128xbf16, #tpu.memory_space<vmem>>, vector<1x1x16x128xbf16>
    %3 = vector.shape_cast %2 : vector<1x1x16x128xbf16> to vector<16x128xbf16>
    %c0_3 = arith.constant 0 : index
    %c1 = arith.constant 1 : index
    %c0_4 = arith.constant 0 : index
    %c0_5 = arith.constant 0 : index
    %4 = vector.load %arg2[%c0_3, %c1, %c0_4, %c0_5] : memref<1x3x16x128xbf16, #tpu.memory_space<vmem>>, vector<1x1x16x128xbf16>
    %5 = vector.shape_cast %4 : vector<1x1x16x128xbf16> to vector<16x128xbf16>
    %c8_i32 = arith.constant 8 : i32
    %6 = vector.broadcast %c8_i32 : i32 to vector<16x128xi32>
    %7 = arith.cmpi slt, %0, %6 : vector<16x128xi32>
    %c16_i32 = arith.constant 16 : i32
    %8 = vector.broadcast %c16_i32 : i32 to vector<16x128xi32>
    %9 = arith.cmpi slt, %0, %8 : vector<16x128xi32>
    %10 = arith.select %9, %1, %3 : vector<16x128xi1>, vector<16x128xbf16>
    %11 = arith.select %7, %5, %10 : vector<16x128xi1>, vector<16x128xbf16>
    %c0_6 = arith.constant 0 : index
    %c0_7 = arith.constant 0 : index
    %12 = vector.load %arg3[%c0_6, %c0_7] : memref<128x384xbf16, #tpu.memory_space<vmem>>, vector<128x384xbf16>
    %cst_8 = arith.constant dense<0.000000e+00> : vector<16x384xf32>
    %13 = tpu.matmul %11, %12, %cst_8 {dimension_numbers = #tpu.dot_dimension_numbers<[1], [0], [0], [1], [0, 0, 1, 1], [], []>} : vector<16x128xbf16>, vector<128x384xbf16>, vector<16x384xf32> -> vector<16x384xf32>
    %c0_9 = arith.constant 0 : index
    %c0_10 = arith.constant 0 : index
    %14 = vector.load %arg4[%c0_9, %c0_10] : memref<1x384xf32, #tpu.memory_space<vmem>>, vector<1x384xf32>
    %15 = vector.broadcast %14 : vector<1x384xf32> to vector<16x384xf32>
    %16 = arith.addf %13, %15 : vector<16x384xf32>
    %17 = vector.extract_strided_slice %16 {offsets = [0, 0], sizes = [16, 128], strides = [1, 1]} : vector<16x384xf32> to vector<16x128xf32>
    %cst_11 = arith.constant 0.000000e+00 : f32
    %18 = vector.broadcast %cst_11 : f32 to vector<16x128xf32>
    %19 = arith.maximumf %17, %18 : vector<16x128xf32>
    %20 = arith.truncf %19 : vector<16x128xf32> to vector<16x128xbf16>
    %c0_12 = arith.constant 0 : index
    %c0_13 = arith.constant 0 : index
    %c0_14 = arith.constant 0 : index
    %c0_15 = arith.constant 0 : index
    %21 = vector.load %arg5[%c0_12, %c0_13, %c0_14, %c0_15] : memref<1x3x16x128xbf16, #tpu.memory_space<vmem>>, vector<1x1x16x128xbf16>
    %22 = vector.shape_cast %21 : vector<1x1x16x128xbf16> to vector<16x128xbf16>
    %23 = vector.shape_cast %20 : vector<16x128xbf16> to vector<1x1x16x128xbf16>
    tpu.vector_store %arg5[%c0_12, %c0_13, %c0_14, %c0_15], %23 {strides = array<i32>} : memref<1x3x16x128xbf16, #tpu.memory_space<vmem>>, vector<1x1x16x128xbf16>,
    %24 = vector.extract_strided_slice %16 {offsets = [0, 128], sizes = [16, 256], strides = [1, 1]} : vector<16x384xf32> to vector<16x256xf32>
    %25 = arith.truncf %24 : vector<16x256xf32> to vector<16x256xbf16>
    %c0_16 = arith.constant 0 : index
    %c0_17 = arith.constant 0 : index
    %c0_18 = arith.constant 0 : index
    %c0_19 = arith.constant 0 : index
    %26 = vector.load %arg6[%c0_16, %c0_17, %c0_18, %c0_19] : memref<1x3x16x256xbf16, #tpu.memory_space<vmem>>, vector<1x1x16x256xbf16>
    %27 = vector.shape_cast %26 : vector<1x1x16x256xbf16> to vector<16x256xbf16>
    %28 = vector.shape_cast %25 : vector<16x256xbf16> to vector<1x1x16x256xbf16>
    tpu.vector_store %arg6[%c0_16, %c0_17, %c0_18, %c0_19], %28 {strides = array<i32>} : memref<1x3x16x256xbf16, #tpu.memory_space<vmem>>, vector<1x1x16x256xbf16>,
    %c0_20 = arith.constant 0 : index
    %c1_21 = arith.constant 1 : index
    %c0_22 = arith.constant 0 : index
    %c0_23 = arith.constant 0 : index
    %29 = vector.load %arg2[%c0_20, %c1_21, %c0_22, %c0_23] : memref<1x3x16x128xbf16, #tpu.memory_space<vmem>>, vector<1x1x16x128xbf16>
    %30 = vector.shape_cast %29 : vector<1x1x16x128xbf16> to vector<16x128xbf16>
    %c0_24 = arith.constant 0 : index
    %c2 = arith.constant 2 : index
    %c0_25 = arith.constant 0 : index
    %c0_26 = arith.constant 0 : index
    %31 = vector.load %arg2[%c0_24, %c2, %c0_25, %c0_26] : memref<1x3x16x128xbf16, #tpu.memory_space<vmem>>, vector<1x1x16x128xbf16>
    %32 = vector.shape_cast %31 : vector<1x1x16x128xbf16> to vector<16x128xbf16>
    %c0_27 = arith.constant 0 : index
    %c0_28 = arith.constant 0 : index
    %c0_29 = arith.constant 0 : index
    %c0_30 = arith.constant 0 : index
    %33 = vector.load %arg2[%c0_27, %c0_28, %c0_29, %c0_30] : memref<1x3x16x128xbf16, #tpu.memory_space<vmem>>, vector<1x1x16x128xbf16>
    %34 = vector.shape_cast %33 : vector<1x1x16x128xbf16> to vector<16x128xbf16>
    %c8_i32_31 = arith.constant 8 : i32
    %35 = vector.broadcast %c8_i32_31 : i32 to vector<16x128xi32>
    %36 = arith.cmpi slt, %0, %35 : vector<16x128xi32>
    %c16_i32_32 = arith.constant 16 : i32
    %37 = vector.broadcast %c16_i32_32 : i32 to vector<16x128xi32>
    %38 = arith.cmpi slt, %0, %37 : vector<16x128xi32>
    %39 = arith.select %38, %34, %30 : vector<16x128xi1>, vector<16x128xbf16>
    %40 = arith.select %36, %32, %39 : vector<16x128xi1>, vector<16x128xbf16>
    %c0_33 = arith.constant 0 : index
    %c0_34 = arith.constant 0 : index
    %41 = vector.load %arg3[%c0_33, %c0_34] : memref<128x384xbf16, #tpu.memory_space<vmem>>, vector<128x384xbf16>
    %cst_35 = arith.constant dense<0.000000e+00> : vector<16x384xf32>
    %42 = tpu.matmul %40, %41, %cst_35 {dimension_numbers = #tpu.dot_dimension_numbers<[1], [0], [0], [1], [0, 0, 1, 1], [], []>} : vector<16x128xbf16>, vector<128x384xbf16>, vector<16x384xf32> -> vector<16x384xf32>
    %c0_36 = arith.constant 0 : index
    %c0_37 = arith.constant 0 : index
    %43 = vector.load %arg4[%c0_36, %c0_37] : memref<1x384xf32, #tpu.memory_space<vmem>>, vector<1x384xf32>
    %44 = vector.broadcast %43 : vector<1x384xf32> to vector<16x384xf32>
    %45 = arith.addf %42, %44 : vector<16x384xf32>
    %46 = vector.extract_strided_slice %45 {offsets = [0, 0], sizes = [16, 128], strides = [1, 1]} : vector<16x384xf32> to vector<16x128xf32>
    %cst_38 = arith.constant 0.000000e+00 : f32
    %47 = vector.broadcast %cst_38 : f32 to vector<16x128xf32>
    %48 = arith.maximumf %46, %47 : vector<16x128xf32>
    %49 = arith.truncf %48 : vector<16x128xf32> to vector<16x128xbf16>
    %c0_39 = arith.constant 0 : index
    %c1_40 = arith.constant 1 : index
    %c0_41 = arith.constant 0 : index
    %c0_42 = arith.constant 0 : index
    %50 = vector.load %arg5[%c0_39, %c1_40, %c0_41, %c0_42] : memref<1x3x16x128xbf16, #tpu.memory_space<vmem>>, vector<1x1x16x128xbf16>
    %51 = vector.shape_cast %50 : vector<1x1x16x128xbf16> to vector<16x128xbf16>
    %52 = vector.shape_cast %49 : vector<16x128xbf16> to vector<1x1x16x128xbf16>
    tpu.vector_store %arg5[%c0_39, %c1_40, %c0_41, %c0_42], %52 {strides = array<i32>} : memref<1x3x16x128xbf16, #tpu.memory_space<vmem>>, vector<1x1x16x128xbf16>,
    %53 = vector.extract_strided_slice %45 {offsets = [0, 128], sizes = [16, 256], strides = [1, 1]} : vector<16x384xf32> to vector<16x256xf32>
    %54 = arith.truncf %53 : vector<16x256xf32> to vector<16x256xbf16>
    %c0_43 = arith.constant 0 : index
    %c1_44 = arith.constant 1 : index
    %c0_45 = arith.constant 0 : index
    %c0_46 = arith.constant 0 : index
    %55 = vector.load %arg6[%c0_43, %c1_44, %c0_45, %c0_46] : memref<1x3x16x256xbf16, #tpu.memory_space<vmem>>, vector<1x1x16x256xbf16>
    %56 = vector.shape_cast %55 : vector<1x1x16x256xbf16> to vector<16x256xbf16>
    %57 = vector.shape_cast %54 : vector<16x256xbf16> to vector<1x1x16x256xbf16>
    tpu.vector_store %arg6[%c0_43, %c1_44, %c0_45, %c0_46], %57 {strides = array<i32>} : memref<1x3x16x256xbf16, #tpu.memory_space<vmem>>, vector<1x1x16x256xbf16>,
    %c0_47 = arith.constant 0 : index
    %c2_48 = arith.constant 2 : index
    %c0_49 = arith.constant 0 : index
    %c0_50 = arith.constant 0 : index
    %58 = vector.load %arg2[%c0_47, %c2_48, %c0_49, %c0_50] : memref<1x3x16x128xbf16, #tpu.memory_space<vmem>>, vector<1x1x16x128xbf16>
    %59 = vector.shape_cast %58 : vector<1x1x16x128xbf16> to vector<16x128xbf16>
    %c0_51 = arith.constant 0 : index
    %c1_52 = arith.constant 1 : index
    %c0_53 = arith.constant 0 : index
    %c0_54 = arith.constant 0 : index
    %60 = vector.load %arg2[%c0_51, %c1_52, %c0_53, %c0_54] : memref<1x3x16x128xbf16, #tpu.memory_space<vmem>>, vector<1x1x16x128xbf16>
    %61 = vector.shape_cast %60 : vector<1x1x16x128xbf16> to vector<16x128xbf16>
    %c8_i32_55 = arith.constant 8 : i32
    %62 = vector.broadcast %c8_i32_55 : i32 to vector<16x128xi32>
    %63 = arith.cmpi slt, %0, %62 : vector<16x128xi32>
    %c16_i32_56 = arith.constant 16 : i32
    %64 = vector.broadcast %c16_i32_56 : i32 to vector<16x128xi32>
    %65 = arith.cmpi slt, %0, %64 : vector<16x128xi32>
    %66 = arith.select %65, %61, %59 : vector<16x128xi1>, vector<16x128xbf16>
    %67 = arith.select %63, %1, %66 : vector<16x128xi1>, vector<16x128xbf16>
    %c0_57 = arith.constant 0 : index
    %c0_58 = arith.constant 0 : index
    %68 = vector.load %arg3[%c0_57, %c0_58] : memref<128x384xbf16, #tpu.memory_space<vmem>>, vector<128x384xbf16>
    %cst_59 = arith.constant dense<0.000000e+00> : vector<16x384xf32>
    %69 = tpu.matmul %67, %68, %cst_59 {dimension_numbers = #tpu.dot_dimension_numbers<[1], [0], [0], [1], [0, 0, 1, 1], [], []>} : vector<16x128xbf16>, vector<128x384xbf16>, vector<16x384xf32> -> vector<16x384xf32>
    %c0_60 = arith.constant 0 : index
    %c0_61 = arith.constant 0 : index
    %70 = vector.load %arg4[%c0_60, %c0_61] : memref<1x384xf32, #tpu.memory_space<vmem>>, vector<1x384xf32>
    %71 = vector.broadcast %70 : vector<1x384xf32> to vector<16x384xf32>
    %72 = arith.addf %69, %71 : vector<16x384xf32>
    %73 = vector.extract_strided_slice %72 {offsets = [0, 0], sizes = [16, 128], strides = [1, 1]} : vector<16x384xf32> to vector<16x128xf32>
    %cst_62 = arith.constant 0.000000e+00 : f32
    %74 = vector.broadcast %cst_62 : f32 to vector<16x128xf32>
    %75 = arith.maximumf %73, %74 : vector<16x128xf32>
    %76 = arith.truncf %75 : vector<16x128xf32> to vector<16x128xbf16>
    %c0_63 = arith.constant 0 : index
    %c2_64 = arith.constant 2 : index
    %c0_65 = arith.constant 0 : index
    %c0_66 = arith.constant 0 : index
    %77 = vector.load %arg5[%c0_63, %c2_64, %c0_65, %c0_66] : memref<1x3x16x128xbf16, #tpu.memory_space<vmem>>, vector<1x1x16x128xbf16>
    %78 = vector.shape_cast %77 : vector<1x1x16x128xbf16> to vector<16x128xbf16>
    %79 = vector.shape_cast %76 : vector<16x128xbf16> to vector<1x1x16x128xbf16>
    tpu.vector_store %arg5[%c0_63, %c2_64, %c0_65, %c0_66], %79 {strides = array<i32>} : memref<1x3x16x128xbf16, #tpu.memory_space<vmem>>, vector<1x1x16x128xbf16>,
    %80 = vector.extract_strided_slice %72 {offsets = [0, 128], sizes = [16, 256], strides = [1, 1]} : vector<16x384xf32> to vector<16x256xf32>
    %81 = arith.truncf %80 : vector<16x256xf32> to vector<16x256xbf16>
    %c0_67 = arith.constant 0 : index
    %c2_68 = arith.constant 2 : index
    %c0_69 = arith.constant 0 : index
    %c0_70 = arith.constant 0 : index
    %82 = vector.load %arg6[%c0_67, %c2_68, %c0_69, %c0_70] : memref<1x3x16x256xbf16, #tpu.memory_space<vmem>>, vector<1x1x16x256xbf16>
    %83 = vector.shape_cast %82 : vector<1x1x16x256xbf16> to vector<16x256xbf16>
    %84 = vector.shape_cast %81 : vector<16x256xbf16> to vector<1x1x16x256xbf16>
    tpu.vector_store %arg6[%c0_67, %c2_68, %c0_69, %c0_70], %84 {strides = array<i32>} : memref<1x3x16x256xbf16, #tpu.memory_space<vmem>>, vector<1x1x16x256xbf16>,
    return
  }
  func.func @transform_0(%arg0: i32, %arg1: i32) -> (i32, i32, i32, i32) {
    %c0_i32 = arith.constant 0 : i32
    %c0_i32_0 = arith.constant 0 : i32
    %c0_i32_1 = arith.constant 0 : i32
    return %arg0, %c0_i32, %arg1, %c0_i32_0 : i32, i32, i32, i32
  }
  func.func @transform_1(%arg0: i32, %arg1: i32) -> (i32, i32) {
    %c0_i32 = arith.constant 0 : i32
    %c0_i32_0 = arith.constant 0 : i32
    %c0_i32_1 = arith.constant 0 : i32
    return %c0_i32, %c0_i32_0 : i32, i32
  }
  func.func @transform_2(%arg0: i32, %arg1: i32) -> (i32, i32) {
    %c0_i32 = arith.constant 0 : i32
    %c0_i32_0 = arith.constant 0 : i32
    %c0_i32_1 = arith.constant 0 : i32
    return %c0_i32, %c0_i32_0 : i32, i32
  }
  func.func @transform_3(%arg0: i32, %arg1: i32) -> (i32, i32, i32, i32) {
    %c0_i32 = arith.constant 0 : i32
    %c0_i32_0 = arith.constant 0 : i32
    %c0_i32_1 = arith.constant 0 : i32
    return %arg0, %c0_i32, %arg1, %c0_i32_0 : i32, i32, i32, i32
  }
  func.func @transform_4(%arg0: i32, %arg1: i32) -> (i32, i32, i32, i32) {
    %c0_i32 = arith.constant 0 : i32
    %c0_i32_0 = arith.constant 0 : i32
    %c0_i32_1 = arith.constant 0 : i32
    return %arg0, %c0_i32, %arg1, %c0_i32_0 : i32, i32, i32, i32
  }
}

module attributes {stable_mosaic.version = 11 : i64} {
  func.func @conv_direct_kernel(%arg0: i32, %arg1: memref<1x40x128xbf16, #tpu.memory_space<vmem>>, %arg2: memref<9x128x128xbf16, #tpu.memory_space<vmem>>, %arg3: memref<1x128xf32, #tpu.memory_space<vmem>>, %arg4: memref<1x24x128xbf16, #tpu.memory_space<vmem>>) attributes {dimension_semantics = [#tpu.dimension_semantics<parallel>], iteration_bounds = array<i64: 6>, scalar_prefetch = 0 : i64, scratch_operands = 0 : i64, tpu.core_type = #tpu.core_type<tc>, window_params = [{transform_indices = @transform_0, window_bounds = array<i64: 1, 40, 128>}, {pipeline_mode = #tpu.pipeline_mode<synchronous>, transform_indices = @transform_1, window_bounds = array<i64: 9, 128, 128>}, {pipeline_mode = #tpu.pipeline_mode<synchronous>, transform_indices = @transform_2, window_bounds = array<i64: 1, 128>}, {transform_indices = @transform_3, window_bounds = array<i64: 1, 24, 128>}]} {
    %cst = arith.constant 0.000000e+00 : f32
    %0 = vector.broadcast %cst : f32 to vector<24x128xf32>
    %c0 = arith.constant 0 : index
    %c0_0 = arith.constant 0 : index
    %c0_1 = arith.constant 0 : index
    %1 = vector.load %arg1[%c0, %c0_0, %c0_1] : memref<1x40x128xbf16, #tpu.memory_space<vmem>>, vector<1x24x128xbf16>
    %2 = vector.shape_cast %1 : vector<1x24x128xbf16> to vector<24x128xbf16>
    %c0_2 = arith.constant 0 : index
    %c0_3 = arith.constant 0 : index
    %c0_4 = arith.constant 0 : index
    %3 = vector.load %arg2[%c0_2, %c0_3, %c0_4] : memref<9x128x128xbf16, #tpu.memory_space<vmem>>, vector<1x128x128xbf16>
    %4 = vector.shape_cast %3 : vector<1x128x128xbf16> to vector<128x128xbf16>
    %cst_5 = arith.constant dense<0.000000e+00> : vector<24x128xf32>
    %5 = tpu.matmul %2, %4, %cst_5 {dimension_numbers = #tpu.dot_dimension_numbers<[1], [0], [0], [1], [0, 0, 1, 1], [], []>} : vector<24x128xbf16>, vector<128x128xbf16>, vector<24x128xf32> -> vector<24x128xf32>
    %6 = arith.addf %0, %5 : vector<24x128xf32>
    %c0_6 = arith.constant 0 : index
    %c1 = arith.constant 1 : index
    %c0_7 = arith.constant 0 : index
    %7 = vector.load %arg1[%c0_6, %c1, %c0_7] : memref<1x40x128xbf16, #tpu.memory_space<vmem>>, vector<1x24x128xbf16>
    %8 = vector.shape_cast %7 : vector<1x24x128xbf16> to vector<24x128xbf16>
    %c1_8 = arith.constant 1 : index
    %c0_9 = arith.constant 0 : index
    %c0_10 = arith.constant 0 : index
    %9 = vector.load %arg2[%c1_8, %c0_9, %c0_10] : memref<9x128x128xbf16, #tpu.memory_space<vmem>>, vector<1x128x128xbf16>
    %10 = vector.shape_cast %9 : vector<1x128x128xbf16> to vector<128x128xbf16>
    %cst_11 = arith.constant dense<0.000000e+00> : vector<24x128xf32>
    %11 = tpu.matmul %8, %10, %cst_11 {dimension_numbers = #tpu.dot_dimension_numbers<[1], [0], [0], [1], [0, 0, 1, 1], [], []>} : vector<24x128xbf16>, vector<128x128xbf16>, vector<24x128xf32> -> vector<24x128xf32>
    %12 = arith.addf %6, %11 : vector<24x128xf32>
    %c0_12 = arith.constant 0 : index
    %c2 = arith.constant 2 : index
    %c0_13 = arith.constant 0 : index
    %13 = vector.load %arg1[%c0_12, %c2, %c0_13] : memref<1x40x128xbf16, #tpu.memory_space<vmem>>, vector<1x24x128xbf16>
    %14 = vector.shape_cast %13 : vector<1x24x128xbf16> to vector<24x128xbf16>
    %c2_14 = arith.constant 2 : index
    %c0_15 = arith.constant 0 : index
    %c0_16 = arith.constant 0 : index
    %15 = vector.load %arg2[%c2_14, %c0_15, %c0_16] : memref<9x128x128xbf16, #tpu.memory_space<vmem>>, vector<1x128x128xbf16>
    %16 = vector.shape_cast %15 : vector<1x128x128xbf16> to vector<128x128xbf16>
    %cst_17 = arith.constant dense<0.000000e+00> : vector<24x128xf32>
    %17 = tpu.matmul %14, %16, %cst_17 {dimension_numbers = #tpu.dot_dimension_numbers<[1], [0], [0], [1], [0, 0, 1, 1], [], []>} : vector<24x128xbf16>, vector<128x128xbf16>, vector<24x128xf32> -> vector<24x128xf32>
    %18 = arith.addf %12, %17 : vector<24x128xf32>
    %c0_18 = arith.constant 0 : index
    %c6 = arith.constant 6 : index
    %c0_19 = arith.constant 0 : index
    %19 = vector.load %arg1[%c0_18, %c6, %c0_19] : memref<1x40x128xbf16, #tpu.memory_space<vmem>>, vector<1x24x128xbf16>
    %20 = vector.shape_cast %19 : vector<1x24x128xbf16> to vector<24x128xbf16>
    %c3 = arith.constant 3 : index
    %c0_20 = arith.constant 0 : index
    %c0_21 = arith.constant 0 : index
    %21 = vector.load %arg2[%c3, %c0_20, %c0_21] : memref<9x128x128xbf16, #tpu.memory_space<vmem>>, vector<1x128x128xbf16>
    %22 = vector.shape_cast %21 : vector<1x128x128xbf16> to vector<128x128xbf16>
    %cst_22 = arith.constant dense<0.000000e+00> : vector<24x128xf32>
    %23 = tpu.matmul %20, %22, %cst_22 {dimension_numbers = #tpu.dot_dimension_numbers<[1], [0], [0], [1], [0, 0, 1, 1], [], []>} : vector<24x128xbf16>, vector<128x128xbf16>, vector<24x128xf32> -> vector<24x128xf32>
    %24 = arith.addf %18, %23 : vector<24x128xf32>
    %c0_23 = arith.constant 0 : index
    %c7 = arith.constant 7 : index
    %c0_24 = arith.constant 0 : index
    %25 = vector.load %arg1[%c0_23, %c7, %c0_24] : memref<1x40x128xbf16, #tpu.memory_space<vmem>>, vector<1x24x128xbf16>
    %26 = vector.shape_cast %25 : vector<1x24x128xbf16> to vector<24x128xbf16>
    %c4 = arith.constant 4 : index
    %c0_25 = arith.constant 0 : index
    %c0_26 = arith.constant 0 : index
    %27 = vector.load %arg2[%c4, %c0_25, %c0_26] : memref<9x128x128xbf16, #tpu.memory_space<vmem>>, vector<1x128x128xbf16>
    %28 = vector.shape_cast %27 : vector<1x128x128xbf16> to vector<128x128xbf16>
    %cst_27 = arith.constant dense<0.000000e+00> : vector<24x128xf32>
    %29 = tpu.matmul %26, %28, %cst_27 {dimension_numbers = #tpu.dot_dimension_numbers<[1], [0], [0], [1], [0, 0, 1, 1], [], []>} : vector<24x128xbf16>, vector<128x128xbf16>, vector<24x128xf32> -> vector<24x128xf32>
    %30 = arith.addf %24, %29 : vector<24x128xf32>
    %c0_28 = arith.constant 0 : index
    %c8 = arith.constant 8 : index
    %c0_29 = arith.constant 0 : index
    %31 = vector.load %arg1[%c0_28, %c8, %c0_29] : memref<1x40x128xbf16, #tpu.memory_space<vmem>>, vector<1x24x128xbf16>
    %32 = vector.shape_cast %31 : vector<1x24x128xbf16> to vector<24x128xbf16>
    %c5 = arith.constant 5 : index
    %c0_30 = arith.constant 0 : index
    %c0_31 = arith.constant 0 : index
    %33 = vector.load %arg2[%c5, %c0_30, %c0_31] : memref<9x128x128xbf16, #tpu.memory_space<vmem>>, vector<1x128x128xbf16>
    %34 = vector.shape_cast %33 : vector<1x128x128xbf16> to vector<128x128xbf16>
    %cst_32 = arith.constant dense<0.000000e+00> : vector<24x128xf32>
    %35 = tpu.matmul %32, %34, %cst_32 {dimension_numbers = #tpu.dot_dimension_numbers<[1], [0], [0], [1], [0, 0, 1, 1], [], []>} : vector<24x128xbf16>, vector<128x128xbf16>, vector<24x128xf32> -> vector<24x128xf32>
    %36 = arith.addf %30, %35 : vector<24x128xf32>
    %c0_33 = arith.constant 0 : index
    %c12 = arith.constant 12 : index
    %c0_34 = arith.constant 0 : index
    %37 = vector.load %arg1[%c0_33, %c12, %c0_34] : memref<1x40x128xbf16, #tpu.memory_space<vmem>>, vector<1x24x128xbf16>
    %38 = vector.shape_cast %37 : vector<1x24x128xbf16> to vector<24x128xbf16>
    %c6_35 = arith.constant 6 : index
    %c0_36 = arith.constant 0 : index
    %c0_37 = arith.constant 0 : index
    %39 = vector.load %arg2[%c6_35, %c0_36, %c0_37] : memref<9x128x128xbf16, #tpu.memory_space<vmem>>, vector<1x128x128xbf16>
    %40 = vector.shape_cast %39 : vector<1x128x128xbf16> to vector<128x128xbf16>
    %cst_38 = arith.constant dense<0.000000e+00> : vector<24x128xf32>
    %41 = tpu.matmul %38, %40, %cst_38 {dimension_numbers = #tpu.dot_dimension_numbers<[1], [0], [0], [1], [0, 0, 1, 1], [], []>} : vector<24x128xbf16>, vector<128x128xbf16>, vector<24x128xf32> -> vector<24x128xf32>
    %42 = arith.addf %36, %41 : vector<24x128xf32>
    %c0_39 = arith.constant 0 : index
    %c13 = arith.constant 13 : index
    %c0_40 = arith.constant 0 : index
    %43 = vector.load %arg1[%c0_39, %c13, %c0_40] : memref<1x40x128xbf16, #tpu.memory_space<vmem>>, vector<1x24x128xbf16>
    %44 = vector.shape_cast %43 : vector<1x24x128xbf16> to vector<24x128xbf16>
    %c7_41 = arith.constant 7 : index
    %c0_42 = arith.constant 0 : index
    %c0_43 = arith.constant 0 : index
    %45 = vector.load %arg2[%c7_41, %c0_42, %c0_43] : memref<9x128x128xbf16, #tpu.memory_space<vmem>>, vector<1x128x128xbf16>
    %46 = vector.shape_cast %45 : vector<1x128x128xbf16> to vector<128x128xbf16>
    %cst_44 = arith.constant dense<0.000000e+00> : vector<24x128xf32>
    %47 = tpu.matmul %44, %46, %cst_44 {dimension_numbers = #tpu.dot_dimension_numbers<[1], [0], [0], [1], [0, 0, 1, 1], [], []>} : vector<24x128xbf16>, vector<128x128xbf16>, vector<24x128xf32> -> vector<24x128xf32>
    %48 = arith.addf %42, %47 : vector<24x128xf32>
    %c0_45 = arith.constant 0 : index
    %c14 = arith.constant 14 : index
    %c0_46 = arith.constant 0 : index
    %49 = vector.load %arg1[%c0_45, %c14, %c0_46] : memref<1x40x128xbf16, #tpu.memory_space<vmem>>, vector<1x24x128xbf16>
    %50 = vector.shape_cast %49 : vector<1x24x128xbf16> to vector<24x128xbf16>
    %c8_47 = arith.constant 8 : index
    %c0_48 = arith.constant 0 : index
    %c0_49 = arith.constant 0 : index
    %51 = vector.load %arg2[%c8_47, %c0_48, %c0_49] : memref<9x128x128xbf16, #tpu.memory_space<vmem>>, vector<1x128x128xbf16>
    %52 = vector.shape_cast %51 : vector<1x128x128xbf16> to vector<128x128xbf16>
    %cst_50 = arith.constant dense<0.000000e+00> : vector<24x128xf32>
    %53 = tpu.matmul %50, %52, %cst_50 {dimension_numbers = #tpu.dot_dimension_numbers<[1], [0], [0], [1], [0, 0, 1, 1], [], []>} : vector<24x128xbf16>, vector<128x128xbf16>, vector<24x128xf32> -> vector<24x128xf32>
    %54 = arith.addf %48, %53 : vector<24x128xf32>
    %c0_51 = arith.constant 0 : index
    %c0_52 = arith.constant 0 : index
    %55 = vector.load %arg3[%c0_51, %c0_52] : memref<1x128xf32, #tpu.memory_space<vmem>>, vector<1x128xf32>
    %56 = vector.broadcast %55 : vector<1x128xf32> to vector<24x128xf32>
    %57 = arith.addf %54, %56 : vector<24x128xf32>
    %cst_53 = arith.constant 0.000000e+00 : f32
    %58 = vector.broadcast %cst_53 : f32 to vector<24x128xf32>
    %59 = arith.maximumf %57, %58 : vector<24x128xf32>
    %60 = arith.truncf %59 : vector<24x128xf32> to vector<24x128xbf16>
    %c0_54 = arith.constant 0 : index
    %c0_55 = arith.constant 0 : index
    %c0_56 = arith.constant 0 : index
    %61 = vector.load %arg4[%c0_54, %c0_55, %c0_56] : memref<1x24x128xbf16, #tpu.memory_space<vmem>>, vector<1x24x128xbf16>
    %62 = vector.shape_cast %61 : vector<1x24x128xbf16> to vector<24x128xbf16>
    %63 = vector.shape_cast %60 : vector<24x128xbf16> to vector<1x24x128xbf16>
    tpu.vector_store %arg4[%c0_54, %c0_55, %c0_56], %63 {strides = array<i32>} : memref<1x24x128xbf16, #tpu.memory_space<vmem>>, vector<1x24x128xbf16>,
    return
  }
  func.func @transform_0(%arg0: i32) -> (i32, i32, i32) {
    %c0_i32 = arith.constant 0 : i32
    %c0_i32_0 = arith.constant 0 : i32
    %c0_i32_1 = arith.constant 0 : i32
    return %arg0, %c0_i32, %c0_i32_0 : i32, i32, i32
  }
  func.func @transform_1(%arg0: i32) -> (i32, i32, i32) {
    %c0_i32 = arith.constant 0 : i32
    %c0_i32_0 = arith.constant 0 : i32
    %c0_i32_1 = arith.constant 0 : i32
    %c0_i32_2 = arith.constant 0 : i32
    return %c0_i32, %c0_i32_0, %c0_i32_1 : i32, i32, i32
  }
  func.func @transform_2(%arg0: i32) -> (i32, i32) {
    %c0_i32 = arith.constant 0 : i32
    %c0_i32_0 = arith.constant 0 : i32
    %c0_i32_1 = arith.constant 0 : i32
    return %c0_i32, %c0_i32_0 : i32, i32
  }
  func.func @transform_3(%arg0: i32) -> (i32, i32, i32) {
    %c0_i32 = arith.constant 0 : i32
    %c0_i32_0 = arith.constant 0 : i32
    %c0_i32_1 = arith.constant 0 : i32
    return %arg0, %c0_i32, %c0_i32_0 : i32, i32, i32
  }
}

module attributes {stable_mosaic.version = 11 : i64} {
  func.func @conv3_res_tfuse_kernel(%arg0: i32, %arg1: i32, %arg2: memref<1x3x16x128xbf16, #tpu.memory_space<vmem>>, %arg3: memref<1x3x16x256xbf16, #tpu.memory_space<vmem>>, %arg4: memref<128x256xbf16, #tpu.memory_space<vmem>>, %arg5: memref<1x256xf32, #tpu.memory_space<vmem>>, %arg6: memref<1x16x256xf32, #tpu.memory_space<vmem>>) attributes {dimension_semantics = [#tpu.dimension_semantics<parallel>, #tpu.dimension_semantics<parallel>], iteration_bounds = array<i64: 2, 1>, scalar_prefetch = 0 : i64, scratch_operands = 0 : i64, tpu.core_type = #tpu.core_type<tc>, window_params = [{transform_indices = @transform_0, window_bounds = array<i64: 1, 3, 16, 128>}, {transform_indices = @transform_1, window_bounds = array<i64: 1, 3, 16, 256>}, {pipeline_mode = #tpu.pipeline_mode<synchronous>, transform_indices = @transform_2, window_bounds = array<i64: 128, 256>}, {pipeline_mode = #tpu.pipeline_mode<synchronous>, transform_indices = @transform_3, window_bounds = array<i64: 1, 256>}, {transform_indices = @transform_4, window_bounds = array<i64: 1, 16, 256>}]} {
    %cst = arith.constant 0.000000e+00 : f32
    %0 = vector.broadcast %cst : f32 to vector<16x256xf32>
    %c0 = arith.constant 0 : index
    %c0_0 = arith.constant 0 : index
    %c0_1 = arith.constant 0 : index
    %c0_2 = arith.constant 0 : index
    %1 = vector.load %arg2[%c0, %c0_0, %c0_1, %c0_2] : memref<1x3x16x128xbf16, #tpu.memory_space<vmem>>, vector<1x1x16x128xbf16>
    %2 = vector.shape_cast %1 : vector<1x1x16x128xbf16> to vector<16x128xbf16>
    %c0_3 = arith.constant 0 : index
    %c0_4 = arith.constant 0 : index
    %3 = vector.load %arg4[%c0_3, %c0_4] : memref<128x256xbf16, #tpu.memory_space<vmem>>, vector<128x256xbf16>
    %cst_5 = arith.constant dense<0.000000e+00> : vector<16x256xf32>
    %4 = tpu.matmul %2, %3, %cst_5 {dimension_numbers = #tpu.dot_dimension_numbers<[1], [0], [0], [1], [0, 0, 1, 1], [], []>} : vector<16x128xbf16>, vector<128x256xbf16>, vector<16x256xf32> -> vector<16x256xf32>
    %c0_6 = arith.constant 0 : index
    %c0_7 = arith.constant 0 : index
    %5 = vector.load %arg5[%c0_6, %c0_7] : memref<1x256xf32, #tpu.memory_space<vmem>>, vector<1x256xf32>
    %6 = vector.broadcast %5 : vector<1x256xf32> to vector<16x256xf32>
    %7 = arith.addf %4, %6 : vector<16x256xf32>
    %c0_8 = arith.constant 0 : index
    %c0_9 = arith.constant 0 : index
    %c0_10 = arith.constant 0 : index
    %c0_11 = arith.constant 0 : index
    %8 = vector.load %arg3[%c0_8, %c0_9, %c0_10, %c0_11] : memref<1x3x16x256xbf16, #tpu.memory_space<vmem>>, vector<1x1x16x256xbf16>
    %9 = vector.shape_cast %8 : vector<1x1x16x256xbf16> to vector<16x256xbf16>
    %10 = arith.extf %9 : vector<16x256xbf16> to vector<16x256xf32>
    %11 = arith.addf %7, %10 : vector<16x256xf32>
    %cst_12 = arith.constant 0.000000e+00 : f32
    %12 = vector.broadcast %cst_12 : f32 to vector<16x256xf32>
    %13 = arith.maximumf %11, %12 : vector<16x256xf32>
    %14 = arith.addf %0, %13 : vector<16x256xf32>
    %c0_13 = arith.constant 0 : index
    %c1 = arith.constant 1 : index
    %c0_14 = arith.constant 0 : index
    %c0_15 = arith.constant 0 : index
    %15 = vector.load %arg2[%c0_13, %c1, %c0_14, %c0_15] : memref<1x3x16x128xbf16, #tpu.memory_space<vmem>>, vector<1x1x16x128xbf16>
    %16 = vector.shape_cast %15 : vector<1x1x16x128xbf16> to vector<16x128xbf16>
    %c0_16 = arith.constant 0 : index
    %c0_17 = arith.constant 0 : index
    %17 = vector.load %arg4[%c0_16, %c0_17] : memref<128x256xbf16, #tpu.memory_space<vmem>>, vector<128x256xbf16>
    %cst_18 = arith.constant dense<0.000000e+00> : vector<16x256xf32>
    %18 = tpu.matmul %16, %17, %cst_18 {dimension_numbers = #tpu.dot_dimension_numbers<[1], [0], [0], [1], [0, 0, 1, 1], [], []>} : vector<16x128xbf16>, vector<128x256xbf16>, vector<16x256xf32> -> vector<16x256xf32>
    %c0_19 = arith.constant 0 : index
    %c0_20 = arith.constant 0 : index
    %19 = vector.load %arg5[%c0_19, %c0_20] : memref<1x256xf32, #tpu.memory_space<vmem>>, vector<1x256xf32>
    %20 = vector.broadcast %19 : vector<1x256xf32> to vector<16x256xf32>
    %21 = arith.addf %18, %20 : vector<16x256xf32>
    %c0_21 = arith.constant 0 : index
    %c1_22 = arith.constant 1 : index
    %c0_23 = arith.constant 0 : index
    %c0_24 = arith.constant 0 : index
    %22 = vector.load %arg3[%c0_21, %c1_22, %c0_23, %c0_24] : memref<1x3x16x256xbf16, #tpu.memory_space<vmem>>, vector<1x1x16x256xbf16>
    %23 = vector.shape_cast %22 : vector<1x1x16x256xbf16> to vector<16x256xbf16>
    %24 = arith.extf %23 : vector<16x256xbf16> to vector<16x256xf32>
    %25 = arith.addf %21, %24 : vector<16x256xf32>
    %cst_25 = arith.constant 0.000000e+00 : f32
    %26 = vector.broadcast %cst_25 : f32 to vector<16x256xf32>
    %27 = arith.maximumf %25, %26 : vector<16x256xf32>
    %28 = arith.addf %14, %27 : vector<16x256xf32>
    %c0_26 = arith.constant 0 : index
    %c2 = arith.constant 2 : index
    %c0_27 = arith.constant 0 : index
    %c0_28 = arith.constant 0 : index
    %29 = vector.load %arg2[%c0_26, %c2, %c0_27, %c0_28] : memref<1x3x16x128xbf16, #tpu.memory_space<vmem>>, vector<1x1x16x128xbf16>
    %30 = vector.shape_cast %29 : vector<1x1x16x128xbf16> to vector<16x128xbf16>
    %c0_29 = arith.constant 0 : index
    %c0_30 = arith.constant 0 : index
    %31 = vector.load %arg4[%c0_29, %c0_30] : memref<128x256xbf16, #tpu.memory_space<vmem>>, vector<128x256xbf16>
    %cst_31 = arith.constant dense<0.000000e+00> : vector<16x256xf32>
    %32 = tpu.matmul %30, %31, %cst_31 {dimension_numbers = #tpu.dot_dimension_numbers<[1], [0], [0], [1], [0, 0, 1, 1], [], []>} : vector<16x128xbf16>, vector<128x256xbf16>, vector<16x256xf32> -> vector<16x256xf32>
    %c0_32 = arith.constant 0 : index
    %c0_33 = arith.constant 0 : index
    %33 = vector.load %arg5[%c0_32, %c0_33] : memref<1x256xf32, #tpu.memory_space<vmem>>, vector<1x256xf32>
    %34 = vector.broadcast %33 : vector<1x256xf32> to vector<16x256xf32>
    %35 = arith.addf %32, %34 : vector<16x256xf32>
    %c0_34 = arith.constant 0 : index
    %c2_35 = arith.constant 2 : index
    %c0_36 = arith.constant 0 : index
    %c0_37 = arith.constant 0 : index
    %36 = vector.load %arg3[%c0_34, %c2_35, %c0_36, %c0_37] : memref<1x3x16x256xbf16, #tpu.memory_space<vmem>>, vector<1x1x16x256xbf16>
    %37 = vector.shape_cast %36 : vector<1x1x16x256xbf16> to vector<16x256xbf16>
    %38 = arith.extf %37 : vector<16x256xbf16> to vector<16x256xf32>
    %39 = arith.addf %35, %38 : vector<16x256xf32>
    %cst_38 = arith.constant 0.000000e+00 : f32
    %40 = vector.broadcast %cst_38 : f32 to vector<16x256xf32>
    %41 = arith.maximumf %39, %40 : vector<16x256xf32>
    %42 = arith.addf %28, %41 : vector<16x256xf32>
    %c0_39 = arith.constant 0 : index
    %c0_40 = arith.constant 0 : index
    %c0_41 = arith.constant 0 : index
    %43 = vector.load %arg6[%c0_39, %c0_40, %c0_41] : memref<1x16x256xf32, #tpu.memory_space<vmem>>, vector<1x16x256xf32>
    %44 = vector.shape_cast %43 : vector<1x16x256xf32> to vector<16x256xf32>
    %45 = vector.shape_cast %42 : vector<16x256xf32> to vector<1x16x256xf32>
    tpu.vector_store %arg6[%c0_39, %c0_40, %c0_41], %45 {strides = array<i32>} : memref<1x16x256xf32, #tpu.memory_space<vmem>>, vector<1x16x256xf32>,
    return
  }
  func.func @transform_0(%arg0: i32, %arg1: i32) -> (i32, i32, i32, i32) {
    %c0_i32 = arith.constant 0 : i32
    %c0_i32_0 = arith.constant 0 : i32
    %c0_i32_1 = arith.constant 0 : i32
    return %arg0, %c0_i32, %arg1, %c0_i32_0 : i32, i32, i32, i32
  }
  func.func @transform_1(%arg0: i32, %arg1: i32) -> (i32, i32, i32, i32) {
    %c0_i32 = arith.constant 0 : i32
    %c0_i32_0 = arith.constant 0 : i32
    %c0_i32_1 = arith.constant 0 : i32
    return %arg0, %c0_i32, %arg1, %c0_i32_0 : i32, i32, i32, i32
  }
  func.func @transform_2(%arg0: i32, %arg1: i32) -> (i32, i32) {
    %c0_i32 = arith.constant 0 : i32
    %c0_i32_0 = arith.constant 0 : i32
    %c0_i32_1 = arith.constant 0 : i32
    return %c0_i32, %c0_i32_0 : i32, i32
  }
  func.func @transform_3(%arg0: i32, %arg1: i32) -> (i32, i32) {
    %c0_i32 = arith.constant 0 : i32
    %c0_i32_0 = arith.constant 0 : i32
    %c0_i32_1 = arith.constant 0 : i32
    return %c0_i32, %c0_i32_0 : i32, i32
  }
  func.func @transform_4(%arg0: i32, %arg1: i32) -> (i32, i32, i32) {
    %c0_i32 = arith.constant 0 : i32
    %c0_i32_0 = arith.constant 0 : i32
    return %arg0, %arg1, %c0_i32 : i32, i32, i32
  }
}

</mosaic_0001>

<bundles_post_ra>
// kernel: ts_encoder_forward.5
= control target key start
LH: loop header
LB: loop body
LE: loop exit
PB: predicated region body
PF: predicated region fallthrough
CT: control target
= control target key end

     0   :  { %s3531_s12 = smov 0   ;;  %s4240_s0 = inlined_call_operand.vmem [shape: bf16[6,128,16], index: 0, kind: input, shape index: {}]   ;;  %s4241_s1 = inlined_call_operand.vmem [shape: bf16[16,16,128], index: 1, kind: input, shape index: {}]   ;;  %s4242_s2 = inlined_call_operand.vmem [shape: f32[1,128], index: 2, kind: input, shape index: {}]   ;;  %s4243_s3 = inlined_call_operand.vmem [shape: bf16[6,88,128], index: 3, kind: output, shape index: {}]  }
   0x1 LB: > { %s2845_s13 = sadd.s32 4294967295, %s3509_s12   ;;  %p2849_p0 = scmp.ge.s32.totalorder %s3509_s12, 1  ;;  %s3509_s12 = sphi %s3531_s12, %s13_s12  }
   0x2   : > { %p137_p1 = scmp.lt.s32.totalorder %s3509_s12, 7 }
   0x4   : > { %p138_p2 = pnand %p2849_p0, %p137_p1 }
   0x6   : > { %141 = sbr.rel (%p138_p2) target bundleno = 421 (0x1a5), region = 32 }
   0xb   : > { %v3441_v0 = vld [vmem:[%s4241_s1] sm:$0xff]   ;;  %p161_p3 = scmp.lt.s32.totalorder %s2845_s13, 5  ;;  %v3442_v1 = vld [vmem:[%s4241_s1 + $0x8] sm:$0xff]   ;;  %v3446_v2 = vld [vmem:[%s4241_s1 + $0x10] sm:$0xff]   ;;  %vm273_vm0 = vcmask 130048   ;;  %vm479_vm3 = vcmask 1046528  }
   0xc   : > { %3222 = vmatprep.subr.bf16.mxu1 %v3441_v0  ;;  %3208 = vmatprep.subr.bf16.mxu0 %v3442_v1  ;;  %v3448_v3 = vld [vmem:[%s4241_s1 + $0x18] sm:$0xff]   ;;  %vm219_vm1 = vsmask.f32 7424  ;;  %v3455_v33 = vld [vmem:[%s4241_s1 + $0x28] sm:$0xff]   ;;  %v3605_v40 = vld [vmem:[%s4241_s1 + $0x20] sm:$0xff]   ;;  %vm982_vm4 = vcmask 1045504  }
   0xd   : > { %s4253_s13 = smov (!%p161_p3, %s2845_s13), 5  ;;  %3223 = vmatpush3.bf16.msra.mxu1 %v3441_v0  ;;  %3209 = vmatpush3.bf16.msra.mxu0 %v3442_v1  ;;  %vm613_vm2 = vsmask.f32 6400  ;;  %vm1272_vm5 = vcmask 1044480   ;;  %vm1116_vm6 = vsmask.f32 5376 }
   0xe   : > { %s3055_s20 = sshll.u32 %s4253_s13, 6  ;;  %3236 = vmatprep.subr.bf16.mxu0 %v3446_v2  ;;  %3250 = vmatprep.subr.bf16.mxu1 %v3448_v3  ;;  %vm1577_vm7 = vsmask.f32 4352  ;;  %s3432_s27 = smul.u32 44, %s4253_s13 }
   0xf   : > { %s3557_s25 = scalar_lea.vmem %s4240_s0, %s3055_s20 }
  0x10   : > { %v172_v4 = vld [vmem:[%s3557_s25] sm:$0xf]  ;;  %v173_v5 = vld [vmem:[%s3557_s25 + $0x4] sm:$0xf]  ;;  %v3563_v8 = vld [vmem:[%s3557_s25 + $0x8] sm:$0xff]   ;;  %s4215_s29 = scalar_lea.vmem %s4243_s3, %s3432_s27 }
  0x11   : > { %v472_v6 = vld [vmem:[%s3557_s25] sm:$0xe]  ;;  %v2855_v7 = vcombine.low %v172_v4, %v173_v5  ;;  %v3568_v10 = vld [vmem:[%s3557_s25 + $0x10] sm:$0xff]   ;;  %v228_v13 = vshll.u32 %v3563_v8, 16  ;;  %v232_v14 = vshrl.u32 %v3563_v8, 16  ;;  %v3577_v16 = vld [vmem:[%s3557_s25 + $0x18] sm:$0xff]  }
  0x12   : > { %v3565_v9 = vcombine.low %v472_v6, %v173_v5  ;;  %v236_v15 = vshll.u32 %v3568_v10, 16  ;;  %v240_v17 = vshrl.u32 %v3568_v10, 16  ;;  %v3581_v18 = vld [vmem:[%s3557_s25 + $0x20] sm:$0xff]   ;;  %v244_v22 = vshll.u32 %v3577_v16, 16  ;;  %v182_v26 = vld [vmem:[%s3557_s25 + $0x28] sm:$0xf] }
  0x13   : > { %3224 = vmatprep.mubr.msk.bf16.mxu1 %vm273_vm0, %v2855_v7  ;;  %v221_v11 = vshrl.u32 %v2855_v7, 16  ;;  %v223_v12 = vshll.u32 %v2855_v7, 16  ;;  %v230_v20 = vrot.slane %v228_v13, 1  ;;  %v252_v25 = vshll.u32 %v3581_v18, 16  ;;  %v185_v27 = vld [vmem:[%s3557_s25 + $0x2c] sm:$0x1] }
  0x14   : > { %3225 = vmatmul.mubr.msk.bf16.vlgmr.msra.gmra.mxu1 %vm273_vm0, %v3563_v8  ;;  %v238_v21 = vrot.slane %v236_v15, 1  ;;  %v615_v28 = vshrl.u32 %v3565_v9, 16  ;;  %v246_v30 = vrot.slane %v244_v22, 1  ;;  %v248_v31 = vshrl.u32 %v3577_v16, 16  ;;  %v606_v50 = vld [vmem:[%s3557_s25 + $0x2c] sm:$0x3] }
  0x15   : > { %v225_v19 = vrot.slane %v223_v12, 1  ;;  %3251 = vmatpush3.bf16.msra.mxu1 %v3448_v3  ;;  %3228 = vmatprep.mubr.msk.bf16.mxu1 %vm273_vm0, %v3568_v10  ;;  %v234_v24 = vor.u32 %v232_v14, %v230_v20  ;;  %v3591_v32 = vcombine.low %v182_v26, %v185_v27  ;;  %v623_v36 = vrot.slane %v228_v13, 2 }
  0x16   : > { %v242_v29 = vor.u32 %v240_v17, %v238_v21  ;;  %v256_v38 = vshrl.u32 %v3581_v18, 16  ;;  %3278 = vmatprep.subr.bf16.mxu1 %v3455_v33  ;;  %v254_v41 = vrot.slane %v252_v25, 1  ;;  %v617_v42 = vrot.slane %v615_v28, 1 }
  0x17   : > { %v226_v23 = vor.u32 %v225_v19, %v221_v11  ;;  %v239_v35 = vsel %vm219_vm1, %v234_v24, %v238_v21  ;;  %v260_v39 = vshll.u32 %v3591_v32, 16  ;;  %v618_v43 = vshll.u32 %v3565_v9, 16  ;;  %v762_v21 = vld [vmem:[%s3557_s25 + $0x4] sm:$0xe]  ;;  %v3648_v24 = vld [vmem:[%s3557_s25 + $0xc] sm:$0xff]  }
  0x18   : > { %v247_v37 = vsel %vm219_vm1, %v242_v29, %v246_v30  ;;  %v622_v44 = vrot.slane %v232_v14, 1  ;;  %v250_v45 = vor.u32 %v248_v31, %v246_v30  ;;  %v258_v46 = vor.u32 %v256_v38, %v254_v41 }
  0x19   : > { %v231_v34 = vsel %vm219_vm1, %v226_v23, %v230_v20  ;;  %v262_v47 = vrot.slane %v260_v39, 1  ;;  %v620_v48 = vrot.slane %v618_v43, 2  ;;  %v2868_v53 = vcombine.low %v182_v26, %v182_v26 }
  0x1a   : > { %3210 = vmatprep.mubr.msk.bf16.mxu0 %vm273_vm0, %v231_v34  ;;  %v624_v49 = vor.u32 %v623_v36, %v622_v44  ;;  %v255_v52 = vsel %vm219_vm1, %v250_v45, %v254_v41  ;;  %v627_v54 = vrot.slane %v236_v15, 2  ;;  %v626_v55 = vrot.slane %v240_v17, 1  ;;  %v3640_v17 = vld [vmem:[%s3557_s25 + $0x8] sm:$0xf]  ;;  %v3685_v44 = vld [vmem:[%s3557_s25 + $0x1c] sm:$0xff]  }
  0x1b   : > { %3211 = vmatmul.mubr.msk.bf16.vlgmr.msra.gmra.mxu0 %vm273_vm0, %v239_v35  ;;  %v621_v51 = vor.u32 %v620_v48, %v617_v42  ;;  %v263_v56 = vsel %vm219_vm1, %v258_v46, %v262_v47  ;;  %v2888_v57 = vcombine.low %v182_v26, %v606_v50  ;;  %v630_v59 = vrot.slane %v248_v31, 1 }
  0x1c   : > { %3237 = vmatpush3.bf16.msra.mxu0 %v3446_v2  ;;  %3229 = vmatmul.mubr.msk.bf16.gmra.mxu1 %vm273_vm0, %v3577_v16  ;;  %v631_v60 = vrot.slane %v244_v22, 2  ;;  %v264_v61 = vshrl.u32 %v3591_v32, 16  ;;  %v628_v62 = vor.u32 %v627_v54, %v626_v55  ;;  %v480_v63 = vrot.slane %v3565_v9, 1  ;;  %v975_v22 = vld [vmem:[%s3557_s25 + $0x4] sm:$0xc] }
  0x1d   : > { %3214 = vmatprep.mubr.msk.bf16.mxu0 %vm273_vm0, %v247_v37  ;;  %3232 = vmatprep.mubr.msk.bf16.mxu1 %vm273_vm0, %v3581_v18  ;;  %v625_v58 = vsel %vm613_vm2, %v621_v51, %v624_v49  ;;  %v481_v0 = vrot.slane %v3563_v8, 1  ;;  %v639_v2 = vshrl.u32 %v2888_v57, 16  ;;  %v642_v3 = vshll.u32 %v2888_v57, 16  ;;  %v3632_v8 = vld [vmem:[%s4241_s1 + $0x38] sm:$0xff]   ;;  %v773_v51 = vld [vmem:[%s3557_s25 + $0x30] sm:$0x3] }
  0x1e   : > { %3264 = vmatprep.subr.bf16.mxu0 %v3605_v40  ;;  %v632_v1 = vor.u32 %v631_v60, %v630_v59  ;;  %v266_v4 = vor.u32 %v264_v61, %v262_v47  ;;  %v629_v5 = vsel %vm613_vm2, %v624_v49, %v628_v62  ;;  %v634_v7 = vrot.slane %v256_v38, 1  ;;  %v3693_v47 = vld [vmem:[%s3557_s25 + $0x2c] sm:$0xf]  ;;  %v3702_v55 = vld [vmem:[%s3557_s25 + $0x24] sm:$0xff]  }
  0x1f   : > { %v482_v6 = vsel %vm479_vm3, %v480_v63, %v481_v0  ;;  %v635_v11 = vrot.slane %v252_v25, 2  ;;  %v641_v13 = vrot.slane %v639_v2, 1  ;;  %v644_v9 = vrot.slane %v642_v3, 2  ;;  %v3716_v61 = vld [vmem:[%s4241_s1 + $0x48] sm:$0xff]  }
  0x20   : > { %v633_v12 = vsel %vm613_vm2, %v628_v62, %v632_v1  ;;  %v483_v14 = vrot.slane %v3568_v10, 1  ;;  %v485_v19 = vrot.slane %v3577_v16, 1  ;;  %v2898_v10 = vcombine.low %v762_v21, %v3640_v17  ;;  %v3660_v16 = vld [vmem:[%s4241_s1 + $0x30] sm:$0xff]  }
  0x21   : > { %v636_v15 = vor.u32 %v635_v11, %v634_v7  ;;  %v645_v20 = vor.u32 %v644_v9, %v641_v13  ;;  %v3655_v28 = vcombine.low %v975_v22, %v3640_v17  ;;  %v487_v29 = vrot.slane %v3581_v18, 1  ;;  %v3675_v18 = vld [vmem:[%s3557_s25 + $0x14] sm:$0xff]   ;;  %v1265_v9 = vld [vmem:[%s3557_s25 + $0x4] sm:$0x8] }
  0x22   : > { %v484_v23 = vsel %vm479_vm3, %v481_v0, %v483_v14  ;;  %v486_v26 = vsel %vm479_vm3, %v483_v14, %v485_v19  ;;  %v489_v30 = vrot.slane %v3591_v32, 1  ;;  %v816_v31 = vshrl.u32 %v3648_v24, 16 }
  0x23   : > { %3215 = vmatmul.mubr.msk.bf16.gmra.mxu0 %vm273_vm0, %v255_v52  ;;  %v637_v25 = vsel %vm613_vm2, %v632_v1, %v636_v15  ;;  %v646_v27 = vsel %vm613_vm2, %v636_v15, %v645_v20  ;;  %v808_v34 = vshrl.u32 %v2898_v10, 16  ;;  %v811_v35 = vshll.u32 %v2898_v10, 16 }
  0x24   : > { %3233 = vmatmul.mubr.msk.bf16.gmra.mxu1 %vm273_vm0, %v2868_v53  ;;  %3218 = vmatprep.mubr.msk.bf16.mxu0 %vm273_vm0, %v263_v56  ;;  %v983_v36 = vrot.slane %v3655_v28, 2  ;;  %v984_v37 = vrot.slane %v3648_v24, 2  ;;  %v488_v32 = vsel %vm479_vm3, %v485_v19, %v487_v29  ;;  %v490_v38 = vsel %vm479_vm3, %v487_v29, %v489_v30  ;;  %v3761_v29 = vld [vmem:[%s3557_s25 + $0x14] sm:$0xf] }
  0x25   : > { %3252 = vmatprep.mubr.msk.bf16.mxu1 %vm273_vm0, %v625_v58  ;;  %v810_v39 = vrot.slane %v808_v34, 1  ;;  %v818_v41 = vrot.slane %v816_v31, 1  ;;  %v825_v45 = vshrl.u32 %v3675_v18, 16  ;;  %v828_v46 = vshll.u32 %v3675_v18, 16  ;;  %v3765_v34 = vld [vmem:[%s3557_s25 + $0x20] sm:$0xff]  }
  0x26   : > { %v985_v43 = vsel %vm982_vm4, %v983_v36, %v984_v37  ;;  %v986_v48 = vrot.slane %v3675_v18, 2  ;;  %v988_v52 = vrot.slane %v3685_v44, 2  ;;  %v834_v53 = vshrl.u32 %v3685_v44, 16 }
  0x27   : > { %v837_v54 = vshll.u32 %v3685_v44, 16  ;;  %v827_v56 = vrot.slane %v825_v45, 1  ;;  %v830_v57 = vrot.slane %v828_v46, 2  ;;  %v3711_v60 = vcombine.low %v3693_v47, %v773_v51 }
  0x28   : > { %v987_v58 = vsel %vm982_vm4, %v984_v37, %v986_v48  ;;  %v989_v62 = vsel %vm982_vm4, %v986_v48, %v988_v52  ;;  %v836_v63 = vrot.slane %v834_v53, 1  ;;  %v843_v1 = vshrl.u32 %v3702_v55, 16  ;;  %v3784_v48 = vld [vmem:[%s3557_s25 + $0x30] sm:$0xff]  }
  0x29   : > { %v839_v0 = vrot.slane %v837_v54, 2  ;;  %v846_v2 = vshll.u32 %v3702_v55, 16  ;;  %v831_v3 = vor.u32 %v830_v57, %v827_v56  ;;  %v992_v11 = vrot.slane %v3711_v60, 2 }
  0x2a   : > { %v2933_v22 = vcombine.low %v1265_v9, %v3640_v17  ;;  %v1118_v10 = vshrl.u32 %v3655_v28, 16  ;;  %v1125_v36 = vrot.slane %v816_v31, 2  ;;  %v1130_v51 = vrot.slane %v828_v46, 3 }
  0x2b   : > { %3219 = vmatmul.mubr.msk.bf16.gmra.mxu0 %vm273_vm0, %v266_v4  ;;  %v990_v4 = vrot.slane %v3702_v55, 2  ;;  %v840_v7 = vor.u32 %v839_v0, %v836_v63  ;;  %v848_v13 = vrot.slane %v846_v2, 2  ;;  %v1133_v46 = vrot.slane %v834_v53, 2  ;;  %v3817_v63 = vld [vmem:[%s3557_s25 + $0x14] sm:$0xf] }
  0x2c   : > { %3253 = vmatmul.mubr.msk.bf16.vlgmr.msra.gmra.mxu1 %vm273_vm0, %v629_v5  ;;  %3238 = vmatprep.mubr.msk.bf16.mxu0 %vm273_vm0, %v482_v6  ;;  %v852_v5 = vshrl.u32 %v3711_v60, 16  ;;  %v855_v6 = vshll.u32 %v3711_v60, 16  ;;  %v1120_v37 = vrot.slane %v1118_v10, 2  ;;  %v3803_v60 = vld [vmem:[%s3557_s25 + $0xc] sm:$0xf] }
  0x2d   : > { %3279 = vmatpush3.bf16.msra.mxu1 %v3455_v33  ;;  %3256 = vmatprep.mubr.msk.bf16.mxu1 %vm273_vm0, %v633_v12  ;;  %v819_v33 = vshll.u32 %v3648_v24, 16  ;;  %v845_v12 = vrot.slane %v843_v1, 1  ;;  %v991_v14 = vsel %vm982_vm4, %v988_v52, %v990_v4  ;;  %v993_v21 = vsel %vm982_vm4, %v990_v4, %v992_v11  ;;  %v1399_v52 = vld [vmem:[%s3557_s25 + $0x8] sm:$0x8]  ;;  %v2087_v4 = vld [vmem:[%s3557_s25 + $0x38] sm:$0xf] }
  0x2e   : > { %3306 = vmatprep.subr.bf16.mxu1 %v3632_v8  ;;  %v854_v15 = vrot.slane %v852_v5, 1  ;;  %v857_v19 = vrot.slane %v855_v6, 2  ;;  %v2088_v5 = vld [vmem:[%s3557_s25 + $0x3c] sm:$0x1]  ;;  %v2572_v6 = vld [vmem:[%s3557_s25 + $0x10] sm:$0xc] }
  0x2f   : > { %v821_v42 = vrot.slane %v819_v33, 2  ;;  %v3033_v9 = vcombine.low %v2572_v6, %v3761_v29  ;;  %v3859_v10 = vld [vmem:[%s3557_s25 + $0x18] sm:$0xf] }
  0x30   : > { %v858_v17 = vor.u32 %v857_v19, %v854_v15  ;;  %v1280_v19 = vrot.slane %v3702_v55, 3  ;;  %v3903_v55 = vld [vmem:[%s3557_s25 + $0x20] sm:$0xf] }
  0x31   : > { %v822_v50 = vor.u32 %v821_v42, %v818_v41  ;;  %v2294_v42 = vrot.slane %v3765_v34, 1 }
  0x33   : > { %3239 = vmatmul.mubr.msk.bf16.vlgmr.msra.gmra.mxu0 %vm273_vm0, %v484_v23  ;;  %v3748_v23 = vld [vmem:[%s4241_s1 + $0x40] sm:$0xff]  }
  0x34   : > { %3265 = vmatpush3.bf16.msra.mxu0 %v3605_v40  ;;  %3257 = vmatmul.mubr.msk.bf16.gmra.mxu1 %vm273_vm0, %v637_v25  ;;  %v813_v40 = vrot.slane %v811_v35, 2  ;;  %v849_v25 = vor.u32 %v848_v13, %v845_v12  ;;  %v1274_v35 = vrot.slane %v3648_v24, 3  ;;  %v1276_v24 = vrot.slane %v3675_v18, 3 }
  0x35   : > { %3242 = vmatprep.mubr.msk.bf16.mxu0 %vm273_vm0, %v486_v26  ;;  %3260 = vmatprep.mubr.msk.bf16.mxu1 %vm273_vm0, %v646_v27  ;;  %v1121_v26 = vshll.u32 %v3655_v28, 16  ;;  %v3756_v27 = vld [vmem:[%s3557_s25 + $0x18] sm:$0xff]   ;;  %v3836_v12 = vcombine.low %v1399_v52, %v3803_v60 }
  0x36   : > { %3292 = vmatprep.subr.bf16.mxu0 %v3660_v16  ;;  %v814_v49 = vor.u32 %v813_v40, %v810_v39  ;;  %v850_v28 = vsel %vm613_vm2, %v840_v7, %v849_v25  ;;  %v859_v40 = vsel %vm613_vm2, %v849_v25, %v858_v17  ;;  %v2292_v41 = vrot.slane %v3756_v27, 1 }
  0x38   : > { %v823_v59 = vsel %vm613_vm2, %v814_v49, %v822_v50  ;;  %v3797_v56 = vsel %vm479_vm3, %v2292_v41, %v2294_v42 }
  0x3b   : > { %3243 = vmatmul.mubr.msk.bf16.gmra.mxu0 %vm273_vm0, %v488_v32  ;;  %v1123_v32 = vrot.slane %v1121_v26, 3 }
  0x3c   : > { %3261 = vmatmul.mubr.msk.bf16.gmra.mxu1 %vm273_vm0, %v645_v20  ;;  %3246 = vmatprep.mubr.msk.bf16.mxu0 %vm273_vm0, %v490_v38  ;;  %v841_v20 = vsel %vm613_vm2, %v831_v3, %v840_v7  ;;  %v1126_v38 = vrot.slane %v819_v33, 3  ;;  %v1109_v33 = vld [vmem:[%s3557_s25 + $0x30] sm:$0x7] }
  0x3d   : > { %3280 = vmatprep.mubr.msk.bf16.mxu1 %vm273_vm0, %v985_v43  ;;  %v3781_v43 = vld [vmem:[%s3557_s25 + $0x28] sm:$0xff]   ;;  %v1124_v57 = vor.u32 %v1123_v32, %v1120_v37  ;;  %v3825_v7 = vcombine.low %v3693_v47, %v1109_v33  ;;  %v3842_v47 = vcombine.low %v2087_v4, %v2088_v5 }
  0x3e   : > { %v2296_v0 = vrot.slane %v3781_v43, 1 }
  0x3f   : > { %v1142_v25 = vshrl.u32 %v3825_v7, 16  ;;  %v2300_v26 = vrot.slane %v3842_v47, 1 }
  0x43   : > { %3247 = vmatmul.mubr.msk.bf16.gmra.mxu0 %vm273_vm0, %v489_v30  ;;  %v2284_v30 = vld [vmem:[%s3557_s25 + $0x10] sm:$0xe] }
  0x44   : > { %3281 = vmatmul.mubr.msk.bf16.vlgmr.msra.gmra.mxu1 %vm273_vm0, %v987_v58  ;;  %3266 = vmatprep.mubr.msk.bf16.mxu0 %vm273_vm0, %v823_v59  ;;  %v3775_v39 = vcombine.low %v2284_v30, %v3761_v29  ;;  %v1127_v58 = vor.u32 %v1126_v38, %v1125_v36  ;;  %v1278_v59 = vrot.slane %v3685_v44, 3  ;;  %v1277_v44 = vsel %vm1272_vm5, %v1274_v35, %v1276_v24 }
  0x45   : > { %3307 = vmatpush3.bf16.msra.mxu1 %v3632_v8  ;;  %3284 = vmatprep.mubr.msk.bf16.mxu1 %vm273_vm0, %v989_v62  ;;  %v832_v8 = vsel %vm613_vm2, %v822_v50, %v831_v3  ;;  %v1129_v50 = vrot.slane %v825_v45, 2  ;;  %v3806_v45 = vld [vmem:[%s3557_s25 + $0x10] sm:$0xf]  ;;  %v1134_v62 = vrot.slane %v837_v54, 3  ;;  %v2298_v3 = vrot.slane %v3784_v48, 1 }
  0x46   : > { %3334 = vmatprep.subr.bf16.mxu1 %v3716_v61  ;;  %v2291_v49 = vrot.slane %v3775_v39, 1  ;;  %v1128_v54 = vsel %vm1116_vm6, %v1124_v57, %v1127_v58  ;;  %v3840_v13 = vcombine.low %v3806_v45, %v3817_v63  ;;  %v1279_v15 = vsel %vm1272_vm5, %v1276_v24, %v1278_v59 }
  0x47   : > { %v3831_v53 = vsel %vm479_vm3, %v2296_v0, %v2298_v3  ;;  %v2579_v30 = vrot.slane %v3033_v9, 2  ;;  %v2582_v36 = vrot.slane %v3765_v34, 2  ;;  %v3878_v38 = vsel %vm479_vm3, %v2298_v3, %v2300_v26  ;;  %v3914_v3 = vld [vmem:[%s4241_s1 + $0x50] sm:$0xff]  }
  0x48   : > { %v3809_v18 = vsel %vm479_vm3, %v2291_v49, %v2292_v41  ;;  %v1587_v37 = vshrl.u32 %v3840_v13, 16  ;;  %v1590_v32 = vshll.u32 %v3840_v13, 16  ;;  %v1281_v41 = vsel %vm1272_vm5, %v1278_v59, %v1280_v19 }
  0x49   : > { %v2584_v57 = vrot.slane %v3781_v43, 2 }
  0x4b   : > { %3267 = vmatmul.mubr.msk.bf16.vlgmr.msra.gmra.mxu0 %vm273_vm0, %v832_v8  ;;  %v2580_v8 = vrot.slane %v3756_v27, 2  ;;  %v3921_v6 = vsel %vm982_vm4, %v2582_v36, %v2584_v57 }
  0x4c   : > { %3293 = vmatpush3.bf16.msra.mxu0 %v3660_v16  ;;  %3285 = vmatmul.mubr.msk.bf16.gmra.mxu1 %vm273_vm0, %v991_v14  ;;  %v1273_v16 = vrot.slane %v2933_v22, 3  ;;  %v1131_v14 = vor.u32 %v1130_v51, %v1129_v50  ;;  %v1282_v22 = vrot.slane %v3825_v7, 3  ;;  %v2417_v50 = vld [vmem:[%s3557_s25 + $0x3c] sm:$0x3]  ;;  %v1144_v51 = vrot.slane %v1142_v25, 2 }
  0x4d   : > { %3270 = vmatprep.mubr.msk.bf16.mxu0 %vm273_vm0, %v841_v20  ;;  %3288 = vmatprep.mubr.msk.bf16.mxu1 %vm273_vm0, %v993_v21  ;;  %v3848_v20 = vor.u32 %v1134_v62, %v1133_v46  ;;  %v3853_v21 = vld [vmem:[%s4241_s1 + $0x58] sm:$0xff]   ;;  %v1589_v62 = vrot.slane %v1587_v37, 3  ;;  %v3954_v37 = vld [vmem:[%s3557_s25 + $0x34] sm:$0xf] }
  0x4e   : > { %3320 = vmatprep.subr.bf16.mxu0 %v3748_v23  ;;  %v1275_v31 = vsel %vm1272_vm5, %v1273_v16, %v1274_v35  ;;  %v1145_v16 = vshll.u32 %v3825_v7, 16  ;;  %v3866_v35 = vld [vmem:[%s3557_s25 + $0x1c] sm:$0xf]  ;;  %v1132_v24 = vsel %vm1116_vm6, %v1127_v58, %v1131_v14  ;;  %v1283_v49 = vsel %vm1272_vm5, %v1280_v19, %v1282_v22 }
  0x4f   : > { %v1136_v33 = vsel %vm1116_vm6, %v1131_v14, %v3848_v20  ;;  %v2586_v58 = vrot.slane %v3784_v48, 2 }
  0x50   : > { %v1147_v52 = vrot.slane %v1145_v16, 3  ;;  %v3940_v16 = vld [vmem:[%s3557_s25 + $0x28] sm:$0xf] }
  0x52   : > { %v1148_v14 = vor.u32 %v1147_v52, %v1144_v51 }
  0x53   : > { %3271 = vmatmul.mubr.msk.bf16.gmra.mxu0 %vm273_vm0, %v850_v28  ;;  %v1579_v28 = vshrl.u32 %v3836_v12, 16 }
  0x54   : > { %3289 = vmatmul.mubr.msk.bf16.gmra.mxu1 %vm273_vm0, %v992_v11  ;;  %3274 = vmatprep.mubr.msk.bf16.mxu0 %vm273_vm0, %v859_v40  ;;  %v3828_v11 = vsel %vm479_vm3, %v2294_v42, %v2296_v0  ;;  %v3881_v40 = vsel %vm982_vm4, %v2579_v30, %v2580_v8  ;;  %v1138_v42 = vrot.slane %v846_v2, 3  ;;  %v3906_v2 = vld [vmem:[%s3557_s25 + $0x24] sm:$0xf]  ;;  %v1592_v0 = vrot.slane %v1590_v32, 4 }
  0x55   : > { %3308 = vmatprep.mubr.msk.bf16.mxu1 %vm273_vm0, %v1275_v31  ;;  %v3890_v31 = vsel %vm982_vm4, %v2580_v8, %v2582_v36  ;;  %v1581_v59 = vrot.slane %v1579_v28, 3  ;;  %v3918_v5 = vcombine.low %v3903_v55, %v3906_v2  ;;  %v3943_v28 = vld [vmem:[%s3557_s25 + $0x2c] sm:$0xf]  ;;  %v3951_v36 = vld [vmem:[%s3557_s25 + $0x30] sm:$0xf] }
  0x56   : > { %v1593_v25 = vor.u32 %v1592_v0, %v1589_v62  ;;  %v2958_v51 = vcombine.low %v3951_v36, %v3954_v37 }
  0x57   : > { %v1608_v30 = vshll.u32 %v3918_v5, 16 }
  0x58   : > { %v1623_v62 = vshrl.u32 %v2958_v51, 16  ;;  %v1626_v0 = vshll.u32 %v2958_v51, 16 }
  0x5b   : > { %3275 = vmatmul.mubr.msk.bf16.gmra.mxu0 %vm273_vm0, %v858_v17  ;;  %v1582_v17 = vshll.u32 %v3836_v12, 16 }
  0x5c   : > { %3309 = vmatmul.mubr.msk.bf16.vlgmr.msra.gmra.mxu1 %vm273_vm0, %v1277_v44  ;;  %3294 = vmatprep.mubr.msk.bf16.mxu0 %vm273_vm0, %v1128_v54  ;;  %v3924_v44 = vsel %vm982_vm4, %v2584_v57, %v2586_v58  ;;  %v3926_v54 = vcombine.low %v2087_v4, %v2417_v50  ;;  %v1610_v50 = vrot.slane %v1608_v30, 4  ;;  %v1445_v57 = vrot.slane %v3840_v13, 3  ;;  %v3479_v13 = vld [vmem:[%s3557_s25 + $0xc] sm:$0xff]  }
  0x5d   : > { %3335 = vmatpush3.bf16.msra.mxu1 %v3716_v61  ;;  %3312 = vmatprep.mubr.msk.bf16.mxu1 %vm273_vm0, %v1279_v15  ;;  %v1137_v61 = vrot.slane %v843_v1, 2  ;;  %v3900_v1 = vcombine.low %v3859_v10, %v3866_v35  ;;  %v1584_v46 = vrot.slane %v1582_v17, 4  ;;  %v1916_v51 = vshrl.u32 %v3479_v13, 16 }
  0x5e   : > { %3362 = vmatprep.subr.bf16.mxu1 %v3853_v21  ;;  %v2588_v8 = vrot.slane %v3926_v54, 2 }
  0x5f   : > { %v1139_v9 = vor.u32 %v1138_v42, %v1137_v61  ;;  %v1585_v4 = vor.u32 %v1584_v46, %v1581_v59  ;;  %v1596_v15 = vshrl.u32 %v3900_v1, 16  ;;  %v1599_v19 = vshll.u32 %v3900_v1, 16 }
  0x60   : > { %v3948_v17 = vsel %vm982_vm4, %v2586_v58, %v2588_v8 }
  0x61   : > { %v1140_v32 = vsel %vm1116_vm6, %v3848_v20, %v1139_v9  ;;  %v1598_v61 = vrot.slane %v1596_v15, 3  ;;  %v1601_v42 = vrot.slane %v1599_v19, 4  ;;  %v1444_v20 = vrot.slane %v3836_v12, 3 }
  0x62   : > { %v1625_v15 = vrot.slane %v1623_v62, 3  ;;  %v1628_v19 = vrot.slane %v1626_v0, 4  ;;  %v3485_v0 = vld [vmem:[%s3557_s25 + $0x24] sm:$0xff]  }
  0x63   : > { %3295 = vmatmul.mubr.msk.bf16.vlgmr.msra.gmra.mxu0 %vm273_vm0, %v1132_v24  ;;  %v3961_v24 = vcombine.low %v3940_v16, %v3943_v28  ;;  %v1602_v52 = vor.u32 %v1601_v42, %v1598_v61  ;;  %v1410_v61 = vld [vmem:[%s3557_s25 + $0x34] sm:$0x7] }
  0x64   : > { %3321 = vmatpush3.bf16.msra.mxu0 %v3748_v23  ;;  %3313 = vmatmul.mubr.msk.bf16.gmra.mxu1 %vm273_vm0, %v1281_v41  ;;  %v1605_v23 = vshrl.u32 %v3918_v5, 16  ;;  %v1149_v41 = vsel %vm1116_vm6, %v1139_v9, %v1148_v14  ;;  %v3480_v42 = vld [vmem:[%s3557_s25 + $0x14] sm:$0xff]  }
  0x65   : > { %3298 = vmatprep.mubr.msk.bf16.mxu0 %vm273_vm0, %v1136_v33  ;;  %3316 = vmatprep.mubr.msk.bf16.mxu1 %vm273_vm0, %v1283_v49  ;;  %v1594_v33 = vsel %vm1577_vm7, %v1585_v4, %v1593_v25  ;;  %v1614_v58 = vshrl.u32 %v3961_v24, 16  ;;  %v1617_v59 = vshll.u32 %v3961_v24, 16  ;;  %v1603_v7 = vsel %vm1577_vm7, %v1593_v25, %v1602_v52 }
  0x66   : > { %3348 = vmatprep.subr.bf16.mxu0 %v3914_v3  ;;  %v1607_v49 = vrot.slane %v1605_v23, 3  ;;  %v3983_v23 = vld [vmem:[%s4241_s1 + $0x68] sm:$0xff]   ;;  %v1447_v25 = vrot.slane %v3900_v1, 3 }
  0x67   : > { %v1616_v9 = vrot.slane %v1614_v58, 3  ;;  %v1619_v12 = vrot.slane %v1617_v59, 4  ;;  %v3481_v58 = vld [vmem:[%s3557_s25 + $0x1c] sm:$0xff]  }
  0x68   : > { %v1611_v46 = vor.u32 %v1610_v50, %v1607_v49 }
  0x69   : > { %v1620_v30 = vor.u32 %v1619_v12, %v1616_v9  ;;  %v1927_v9 = vshrl.u32 %v3480_v42, 16  ;;  %v1935_v12 = vshrl.u32 %v3481_v58, 16 }
  0x6a   : > { %v1612_v4 = vsel %vm1577_vm7, %v1602_v52, %v1611_v46  ;;  %v3483_v52 = vld [vmem:[%s4241_s1 + $0x60] sm:$0xff]  }
  0x6b   : > { %3299 = vmatmul.mubr.msk.bf16.gmra.mxu0 %vm273_vm0, %v1140_v32  ;;  %v1449_v32 = vrot.slane %v3918_v5, 3  ;;  %v1621_v49 = vsel %vm1577_vm7, %v1611_v46, %v1620_v30 }
  0x6c   : > { %3317 = vmatmul.mubr.msk.bf16.gmra.mxu1 %vm273_vm0, %v1282_v22  ;;  %3302 = vmatprep.mubr.msk.bf16.mxu0 %vm273_vm0, %v1149_v41  ;;  %v1446_v22 = vsel %vm1272_vm5, %v1444_v20, %v1445_v57  ;;  %v1629_v41 = vor.u32 %v1628_v19, %v1625_v15  ;;  %v1923_v20 = vshll.u32 %v3480_v42, 16  ;;  %v3486_v19 = vld [vmem:[%s3557_s25 + $0x2c] sm:$0xff]  }
  0x6d   : > { %3336 = vmatprep.mubr.msk.bf16.mxu1 %vm273_vm0, %v1594_v33  ;;  %v1918_v33 = vshll.u32 %v3479_v13, 16  ;;  %v1450_v1 = vsel %vm1272_vm5, %v1447_v25, %v1449_v32  ;;  %v1947_v42 = vshll.u32 %v3486_v19, 16 }
  0x6e   : > { %v1630_v50 = vsel %vm1577_vm7, %v1620_v30, %v1629_v41  ;;  %v1925_v62 = vrot.slane %v1923_v20, 1  ;;  %v2969_v20 = vcombine.low %v3817_v63, %v3859_v10 }
  0x6f   : > { %v1920_v5 = vrot.slane %v1918_v33, 1 }
  0x70   : > { %v1929_v13 = vor.u32 %v1927_v9, %v1925_v62  ;;  %v2146_v9 = vshll.u32 %v3781_v43, 16 }
  0x71   : > { %v1921_v46 = vor.u32 %v1920_v5, %v1916_v51  ;;  %v2077_v5 = vld [vmem:[%s3557_s25 + $0x10] sm:$0xf] }
  0x73   : > { %3303 = vmatmul.mubr.msk.bf16.gmra.mxu0 %vm273_vm0, %v1148_v14  ;;  %v1448_v14 = vsel %vm1272_vm5, %v1445_v57, %v1447_v25  ;;  %v1451_v57 = vrot.slane %v3961_v24, 3  ;;  %v1926_v24 = vsel %vm219_vm1, %v1921_v46, %v1925_v62 }
  0x74   : > { %3337 = vmatmul.mubr.msk.bf16.vlgmr.msra.gmra.mxu1 %vm273_vm0, %v1603_v7  ;;  %3322 = vmatprep.mubr.msk.bf16.mxu0 %vm273_vm0, %v1446_v22  ;;  %v1931_v22 = vshll.u32 %v3481_v58, 16  ;;  %v2970_v58 = vcombine.low %v3866_v35, %v3903_v55  ;;  %v2972_v35 = vcombine.low %v3943_v28, %v3951_v36  ;;  %v2138_v28 = vshll.u32 %v3765_v34, 16 }
  0x75   : > { %3363 = vmatpush3.bf16.msra.mxu1 %v3853_v21  ;;  %3340 = vmatprep.mubr.msk.bf16.mxu1 %vm273_vm0, %v1612_v4  ;;  %v2948_v21 = vcombine.low %v3951_v36, %v1410_v61  ;;  %v1452_v7 = vsel %vm1272_vm5, %v1449_v32, %v1451_v57  ;;  %v1939_v4 = vshll.u32 %v3485_v0, 16  ;;  %v3489_v32 = vld [vmem:[%s3557_s25 + $0x34] sm:$0x1f]   ;;  %v2968_v61 = vcombine.low %v3803_v60, %v3806_v45 }
  0x76   : > { %3390 = vmatprep.subr.bf16.mxu1 %v3983_v23  ;;  %v1933_v15 = vrot.slane %v1931_v22, 1  ;;  %v1949_v60 = vrot.slane %v1947_v42, 1  ;;  %v1959_v62 = vshrl.u32 %v3489_v32, 16 }
  0x77   : > { %v1453_v59 = vrot.slane %v2948_v21, 3  ;;  %v1941_v30 = vrot.slane %v1939_v4, 1  ;;  %v3497_v21 = vld [vmem:[%s4241_s1 + $0x78] sm:$0xff]   ;;  %v2150_v4 = vshrl.u32 %v3781_v43, 16 }
  0x78   : > { %v1937_v25 = vor.u32 %v1935_v12, %v1933_v15  ;;  %v1934_v33 = vsel %vm219_vm1, %v1929_v13, %v1933_v15  ;;  %v2154_v12 = vshll.u32 %v3784_v48, 16  ;;  %v2158_v15 = vshrl.u32 %v3784_v48, 16 }
  0x7a   : > { %v2156_v13 = vrot.slane %v2154_v12, 1 }
  0x7b   : > { %3323 = vmatmul.mubr.msk.bf16.vlgmr.msra.gmra.mxu0 %vm273_vm0, %v1448_v14  ;;  %v1943_v14 = vshrl.u32 %v3485_v0, 16 }
  0x7c   : > { %3349 = vmatpush3.bf16.msra.mxu0 %v3914_v3  ;;  %3341 = vmatmul.mubr.msk.bf16.gmra.mxu1 %vm273_vm0, %v1621_v49  ;;  %v1454_v3 = vsel %vm1272_vm5, %v1451_v57, %v1453_v59  ;;  %v1951_v49 = vshrl.u32 %v3486_v19, 16  ;;  %v2160_v43 = vor.u32 %v2158_v15, %v2156_v13 }
  0x7d   : > { %3326 = vmatprep.mubr.msk.bf16.mxu0 %vm273_vm0, %v1450_v1  ;;  %3344 = vmatprep.mubr.msk.bf16.mxu1 %vm273_vm0, %v1630_v50  ;;  %v1955_v1 = vshll.u32 %v3489_v32, 16  ;;  %v1945_v45 = vor.u32 %v1943_v14, %v1941_v30 }
  0x7e   : > { %3376 = vmatprep.subr.bf16.mxu0 %v3483_v52  ;;  %v1953_v50 = vor.u32 %v1951_v49, %v1949_v60 }
  0x7f   : > { %v1957_v51 = vrot.slane %v1955_v1, 1  ;;  %v1950_v57 = vsel %vm219_vm1, %v1945_v45, %v1949_v60  ;;  %v2440_v45 = vrot.slane %v2150_v4, 1 }
  0x81   : > { %v1958_v46 = vsel %vm219_vm1, %v1953_v50, %v1957_v51  ;;  %v1961_v10 = vor.u32 %v1959_v62, %v1957_v51  ;;  %v2441_v50 = vrot.slane %v2146_v9, 2  ;;  %v2452_v51 = vshll.u32 %v3926_v54, 16 }
  0x83   : > { %3327 = vmatmul.mubr.msk.bf16.gmra.mxu0 %vm273_vm0, %v1452_v7 }
  0x84   : > { %3345 = vmatmul.mubr.msk.bf16.gmra.mxu1 %vm273_vm0, %v1629_v41  ;;  %3330 = vmatprep.mubr.msk.bf16.mxu0 %vm273_vm0, %v1454_v3  ;;  %v1942_v41 = vsel %vm219_vm1, %v1937_v25, %v1941_v30  ;;  %v2142_v3 = vshrl.u32 %v3765_v34, 16  ;;  %v2425_v25 = vshrl.u32 %v3775_v39, 16  ;;  %v2428_v30 = vshll.u32 %v3775_v39, 16 }
  0x85   : > { %3364 = vmatprep.mubr.msk.bf16.mxu1 %vm273_vm0, %v1926_v24  ;;  %v2140_v24 = vrot.slane %v2138_v28, 1 }
  0x86   : > { %v2436_v1 = vrot.slane %v2142_v3, 1 }
  0x8b   : > { %3331 = vmatmul.mubr.msk.bf16.gmra.mxu0 %vm273_vm0, %v1453_v59  ;;  %v2998_v59 = vcombine.low %v2077_v5, %v3761_v29  ;;  %v2971_v29 = vcombine.low %v3906_v2, %v3940_v16  ;;  %v2973_v2 = vcombine.low %v3954_v37, %v3954_v37  ;;  %v2134_v16 = vshrl.u32 %v3756_v27, 16 }
  0x8c   : > { %3365 = vmatmul.mubr.msk.bf16.vlgmr.msra.gmra.mxu1 %vm273_vm0, %v1934_v33  ;;  %3350 = vmatprep.mubr.msk.bf16.mxu0 %vm273_vm0, %v2968_v61  ;;  %v2148_v37 = vrot.slane %v2146_v9, 1  ;;  %v2427_v61 = vrot.slane %v2425_v25, 1  ;;  %v2430_v33 = vrot.slane %v2428_v30, 2 }
  0x8d   : > { %3391 = vmatpush3.bf16.msra.mxu1 %v3983_v23  ;;  %3368 = vmatprep.mubr.msk.bf16.mxu1 %vm273_vm0, %v1942_v41  ;;  %v3496_v23 = vld [vmem:[%s4241_s1 + $0x70] sm:$0xff]   ;;  %v2125_v63 = vshll.u32 %v2998_v59, 16  ;;  %v2123_v55 = vshrl.u32 %v2998_v59, 16  ;;  %v2432_v14 = vrot.slane %v2134_v16, 1  ;;  %v2166_v41 = vshrl.u32 %v3842_v47, 16 }
  0x8e   : > { %3418 = vmatprep.subr.bf16.mxu1 %v3497_v21  ;;  %v2431_v39 = vor.u32 %v2430_v33, %v2427_v61 }
  0x8f   : > { %v2127_v0 = vrot.slane %v2125_v63, 1 }
  0x91   : > { %v2128_v7 = vor.u32 %v2127_v0, %v2123_v55 }
  0x93   : > { %3351 = vmatmul.mubr.msk.bf16.vlgmr.msra.gmra.mxu0 %vm273_vm0, %v2969_v20  ;;  %v2444_v20 = vrot.slane %v2158_v15, 1 }
  0x94   : > { %3377 = vmatpush3.bf16.msra.mxu0 %v3483_v52  ;;  %3369 = vmatmul.mubr.msk.bf16.gmra.mxu1 %vm273_vm0, %v1950_v57  ;;  %v2130_v52 = vshll.u32 %v3756_v27, 16  ;;  %v2144_v27 = vor.u32 %v2142_v3, %v2140_v24  ;;  %v2445_v57 = vrot.slane %v2154_v12, 2 }
  0x95   : > { %3354 = vmatprep.mubr.msk.bf16.mxu0 %vm273_vm0, %v2970_v58  ;;  %3372 = vmatprep.mubr.msk.bf16.mxu1 %vm273_vm0, %v1958_v46  ;;  %v2454_v46 = vrot.slane %v2452_v51, 2 }
  0x96   : > { %3404 = vmatprep.subr.bf16.mxu0 %v3496_v23  ;;  %v2132_v22 = vrot.slane %v2130_v52, 1  ;;  %v2149_v19 = vsel %vm219_vm1, %v2144_v27, %v2148_v37 }
  0x98   : > { %v2133_v36 = vsel %vm219_vm1, %v2128_v7, %v2132_v22 }
  0x9b   : > { %3355 = vmatmul.mubr.msk.bf16.gmra.mxu0 %vm273_vm0, %v2971_v29 }
  0x9c   : > { %3373 = vmatmul.mubr.msk.bf16.gmra.mxu1 %vm273_vm0, %v1961_v10  ;;  %3358 = vmatprep.mubr.msk.bf16.mxu0 %vm273_vm0, %v2972_v35 }
  0x9d   : > { %3392 = vmatprep.mubr.msk.bf16.mxu1 %vm273_vm0, %v3809_v18  ;;  %v2136_v18 = vor.u32 %v2134_v16, %v2132_v22 }
  0x9f   : > { %v2141_v34 = vsel %vm219_vm1, %v2136_v18, %v2140_v24 }
  0xa3   : > { %3359 = vmatmul.mubr.msk.bf16.gmra.mxu0 %vm273_vm0, %v2973_v2 }
  0xa4   : > { %3393 = vmatmul.mubr.msk.bf16.vlgmr.msra.gmra.mxu1 %vm273_vm0, %v3797_v56  ;;  %3378 = vmatprep.mubr.msk.bf16.mxu0 %vm273_vm0, %v2133_v36  ;;  %v2162_v56 = vshll.u32 %v3842_v47, 16 }
  0xa5   : > { %3419 = vmatpush3.bf16.msra.mxu1 %v3497_v21  ;;  %3396 = vmatprep.mubr.msk.bf16.mxu1 %vm273_vm0, %v3828_v11  ;;  %v2152_v11 = vor.u32 %v2150_v4, %v2148_v37  ;;  %v2437_v21 = vrot.slane %v2138_v28, 2 }
  0xa6   : > { %v2164_v48 = vrot.slane %v2162_v56, 1 }
  0xa7   : > { %v2157_v32 = vsel %vm219_vm1, %v2152_v11, %v2156_v13  ;;  %v2438_v47 = vor.u32 %v2437_v21, %v2436_v1 }
  0xa8   : > { %v2165_v42 = vsel %vm219_vm1, %v2160_v43, %v2164_v48  ;;  %v2168_v49 = vor.u32 %v2166_v41, %v2164_v48 }
  0xab   : > { %3379 = vmatmul.mubr.msk.bf16.vlgmr.msra.gmra.mxu0 %vm273_vm0, %v2141_v34 }
  0xac   : > { %3405 = vmatpush3.bf16.msra.mxu0 %v3496_v23  ;;  %3397 = vmatmul.mubr.msk.bf16.gmra.mxu1 %vm273_vm0, %v3831_v53  ;;  %v2433_v53 = vrot.slane %v2130_v52, 2 }
  0xad   : > { %3382 = vmatprep.mubr.msk.bf16.mxu0 %vm273_vm0, %v2149_v19  ;;  %3400 = vmatprep.mubr.msk.bf16.mxu1 %vm273_vm0, %v3878_v38 }
  0xae   : > { %v2434_v38 = vor.u32 %v2433_v53, %v2432_v14 }
  0xb0   : > { %v2435_v60 = vsel %vm613_vm2, %v2431_v39, %v2434_v38  ;;  %v2439_v5 = vsel %vm613_vm2, %v2434_v38, %v2438_v47 }
  0xb3   : > { %3383 = vmatmul.mubr.msk.bf16.gmra.mxu0 %vm273_vm0, %v2157_v32 }
  0xb4   : > { %3401 = vmatmul.mubr.msk.bf16.gmra.mxu1 %vm273_vm0, %v2300_v26  ;;  %3386 = vmatprep.mubr.msk.bf16.mxu0 %vm273_vm0, %v2165_v42  ;;  %v2442_v26 = vor.u32 %v2441_v50, %v2440_v45 }
  0xb5   : > { %3420 = vmatprep.mubr.msk.bf16.mxu1 %vm273_vm0, %v3881_v40  ;;  %v2449_v40 = vshrl.u32 %v3926_v54, 16 }
  0xb6   : > { %v2443_v58 = vsel %vm613_vm2, %v2438_v47, %v2442_v26 }
  0xb7   : > { %v2451_v59 = vrot.slane %v2449_v40, 1 }
  0xbb   : > { %3387 = vmatmul.mubr.msk.bf16.gmra.mxu0 %vm273_vm0, %v2168_v49 }
  0xbc   : > { %3421 = vmatmul.mubr.msk.bf16.vlgmr.msra.gmra.mxu1 %vm273_vm0, %v3890_v31  ;;  %3406 = vmatprep.mubr.msk.bf16.mxu0 %vm273_vm0, %v2435_v60  ;;  %v2446_v31 = vor.u32 %v2445_v57, %v2444_v20 }
  0xbd   : > { %3424 = vmatprep.mubr.msk.bf16.mxu1 %vm273_vm0, %v3921_v6  ;;  %v2455_v6 = vor.u32 %v2454_v46, %v2451_v59 }
  0xbe   : > { %v2447_v23 = vsel %vm613_vm2, %v2442_v26, %v2446_v31 }
  0xbf   : > { %v2456_v62 = vsel %vm613_vm2, %v2446_v31, %v2455_v6 }
  0xc3   : > { %3407 = vmatmul.mubr.msk.bf16.vlgmr.msra.gmra.mxu0 %vm273_vm0, %v2439_v5 }
  0xc4   : > { %3425 = vmatmul.mubr.msk.bf16.gmra.mxu1 %vm273_vm0, %v3924_v44  ;;  %3410 = vmatprep.mubr.msk.bf16.mxu0 %vm273_vm0, %v2443_v58 }
  0xc5   : > { %3428 = vmatprep.mubr.msk.bf16.mxu1 %vm273_vm0, %v3948_v17 }
  0xcb   : > { %3411 = vmatmul.mubr.msk.bf16.gmra.mxu0 %vm273_vm0, %v2447_v23 }
  0xcc   : > { %3429 = vmatmul.mubr.msk.bf16.gmra.mxu1 %vm273_vm0, %v2588_v8  ;;  %3414 = vmatprep.mubr.msk.bf16.mxu0 %vm273_vm0, %v2456_v62 }
  0xd3   : > { %3415 = vmatmul.mubr.msk.bf16.gmra.mxu0 %vm273_vm0, %v2455_v6 }
  0xd4   : > { %v3226_v44 = vpop.f32.mrf.mxu1 }
  0xd6   : > { %v426_v63 = vpop.f32.mrf.mxu1 }
  0xd8   : > { %v3227_v29 = vpop.f32.mrf.mxu1 }
  0xda   : > { %v429_v10 = vpop.f32.mrf.mxu1 }
  0xdb   : > { %v3212_v17 = vpop.f32.mrf.mxu0 }
  0xdc   : > { %v435_v35 = vadd.f32 %v3226_v44, %v3212_v17  ;;  %v3230_v55 = vpop.f32.mrf.mxu1 }
  0xdd   : > { %v326_v0 = vpop.f32.mrf.mxu0 }
  0xde   : > { %v427_v52 = vadd.f32 %v426_v63, %v326_v0  ;;  %v442_v7 = vpop.f32.mrf.mxu1 }
  0xdf   : > { %v3213_v22 = vpop.f32.mrf.mxu0 }
  0xe0   : > { %v438_v2 = vadd.f32 %v3227_v29, %v3213_v22  ;;  %v3231_v16 = vpop.f32.mrf.mxu1 }
  0xe1   : > { %v329_v54 = vpop.f32.mrf.mxu0 }
  0xe2   : > { %v430_v28 = vadd.f32 %v429_v10, %v329_v54  ;;  %v445_v8 = vpop.f32.mrf.mxu1 }
  0xe3   : > { %v3216_v36 = vpop.f32.mrf.mxu0 }
  0xe4   : > { %v451_v3 = vadd.f32 %v3230_v55, %v3216_v36  ;;  %v3234_v9 = vpop.f32.mrf.mxu1 }
  0xe5   : > { %v342_v18 = vpop.f32.mrf.mxu0 }
  0xe6   : > { %v443_v24 = vadd.f32 %v442_v7, %v342_v18  ;;  %v458_v27 = vpop.f32.mrf.mxu1 }
  0xe7   : > { %v3217_v37 = vpop.f32.mrf.mxu0 }
  0xe8   : > { %v454_v12 = vadd.f32 %v3231_v16, %v3217_v37  ;;  %v3235_v34 = vpop.f32.mrf.mxu1 }
  0xe9   : > { %v345_v4 = vpop.f32.mrf.mxu0 }
  0xea   : > { %v446_v15 = vadd.f32 %v445_v8, %v345_v4  ;;  %v461_v56 = vpop.f32.mrf.mxu1 }
  0xeb   : > { %v3220_v19 = vpop.f32.mrf.mxu0 }
  0xec   : > { %v467_v13 = vadd.f32 %v3234_v9, %v3220_v19  ;;  %v3254_v11 = vpop.f32.mrf.mxu1 }
  0xed   : > { %v358_v25 = vpop.f32.mrf.mxu0 }
  0xee   : > { %v459_v43 = vadd.f32 %v458_v27, %v358_v25  ;;  %v705_v48 = vpop.f32.mrf.mxu1 }
  0xef   : > { %v3221_v30 = vpop.f32.mrf.mxu0 }
  0xf0   : > { %v3255_v32 = vpop.f32.mrf.mxu1 }
  0xf1   : > { %v361_v61 = vpop.f32.mrf.mxu0 }
  0xf2   : > { %v462_v42 = vadd.f32 %v461_v56, %v361_v61  ;;  %v708_v33 = vpop.f32.mrf.mxu1 }
  0xf3   : > { %v3240_v14 = vpop.f32.mrf.mxu0 }
  0xf4   : > { %v597_v53 = vadd.f32 %v3240_v14, %v435_v35  ;;  %v3258_v41 = vpop.f32.mrf.mxu1 }
  0xf5   : > { %v549_v39 = vpop.f32.mrf.mxu0 }
  0xf6   : > { %v595_v38 = vadd.f32 %v549_v39, %v427_v52  ;;  %v721_v49 = vpop.f32.mrf.mxu1  ;;  %v753_v1 = vadd.f32 %v3254_v11, %v597_v53 }
  0xf7   : > { %v3241_v21 = vpop.f32.mrf.mxu0 }
  0xf8   : > { %v598_v60 = vadd.f32 %v3241_v21, %v438_v2  ;;  %v3259_v45 = vpop.f32.mrf.mxu1  ;;  %v751_v50 = vadd.f32 %v705_v48, %v595_v38 }
  0xf9   : > { %v552_v47 = vpop.f32.mrf.mxu0 }
  0xfa   : > { %v596_v26 = vadd.f32 %v552_v47, %v430_v28  ;;  %v724_v40 = vpop.f32.mrf.mxu1  ;;  %v754_v51 = vadd.f32 %v3255_v32, %v598_v60 }
  0xfb   : > { %v3244_v5 = vpop.f32.mrf.mxu0 }
  0xfc   : > { %v601_v20 = vadd.f32 %v3244_v5, %v451_v3  ;;  %v3262_v57 = vpop.f32.mrf.mxu1  ;;  %v752_v58 = vadd.f32 %v708_v33, %v596_v26 }
  0xfd   : > { %v565_v59 = vpop.f32.mrf.mxu0 }
  0xfe   : > { %v599_v46 = vadd.f32 %v565_v59, %v443_v24  ;;  %v737_v31 = vpop.f32.mrf.mxu1  ;;  %v757_v6 = vadd.f32 %v3258_v41, %v601_v20 }
  0xff   : > { %v3245_v23 = vpop.f32.mrf.mxu0 }
 0x100   : > { %v602_v62 = vadd.f32 %v3245_v23, %v454_v12  ;;  %v3263_v44 = vpop.f32.mrf.mxu1  ;;  %v755_v63 = vadd.f32 %v721_v49, %v599_v46 }
 0x101   : > { %v568_v29 = vpop.f32.mrf.mxu0 }
 0x102   : > { %v600_v10 = vadd.f32 %v568_v29, %v446_v15  ;;  %v740_v17 = vpop.f32.mrf.mxu1  ;;  %v758_v35 = vadd.f32 %v3259_v45, %v602_v62 }
 0x103   : > { %v3248_v55 = vpop.f32.mrf.mxu0 }
 0x104   : > { %v605_v0 = vadd.f32 %v3248_v55, %v467_v13  ;;  %v3282_v52 = vpop.f32.mrf.mxu1  ;;  %v756_v7 = vadd.f32 %v724_v40, %v600_v10 }
 0x105   : > { %v581_v22 = vpop.f32.mrf.mxu0 }
 0x106   : > { %v603_v2 = vadd.f32 %v581_v22, %v459_v43  ;;  %v1052_v16 = vpop.f32.mrf.mxu1  ;;  %v761_v54 = vadd.f32 %v3262_v57, %v605_v0 }
 0x107   : > { %v3249_v28 = vpop.f32.mrf.mxu0 }
 0x108   : > { %v3283_v8 = vpop.f32.mrf.mxu1  ;;  %v759_v36 = vadd.f32 %v737_v31, %v603_v2 }
 0x109   : > { %v584_v3 = vpop.f32.mrf.mxu0 }
 0x10a   : > { %v604_v9 = vadd.f32 %v584_v3, %v462_v42  ;;  %v1055_v18 = vpop.f32.mrf.mxu1 }
 0x10b   : > { %v3268_v24 = vpop.f32.mrf.mxu0 }
 0x10c   : > { %v966_v27 = vadd.f32 %v3268_v24, %v753_v1  ;;  %v3286_v37 = vpop.f32.mrf.mxu1  ;;  %v760_v12 = vadd.f32 %v740_v17, %v604_v9 }
 0x10d   : > { %v918_v34 = vpop.f32.mrf.mxu0 }
 0x10e   : > { %v964_v4 = vadd.f32 %v918_v34, %v751_v50  ;;  %v1068_v15 = vpop.f32.mrf.mxu1  ;;  %v1100_v56 = vadd.f32 %v3282_v52, %v966_v27 }
 0x10f   : > { %v3269_v19 = vpop.f32.mrf.mxu0 }
 0x110   : > { %v967_v13 = vadd.f32 %v3269_v19, %v754_v51  ;;  %v3287_v11 = vpop.f32.mrf.mxu1  ;;  %v1098_v25 = vadd.f32 %v1052_v16, %v964_v4 }
 0x111   : > { %v921_v43 = vpop.f32.mrf.mxu0 }
 0x112   : > { %v965_v48 = vadd.f32 %v921_v43, %v752_v58  ;;  %v1071_v30 = vpop.f32.mrf.mxu1  ;;  %v1101_v32 = vadd.f32 %v3283_v8, %v967_v13 }
 0x113   : > { %v3272_v61 = vpop.f32.mrf.mxu0 }
 0x114   : > { %v970_v33 = vadd.f32 %v3272_v61, %v757_v6  ;;  %v3290_v42 = vpop.f32.mrf.mxu1  ;;  %v1099_v14 = vadd.f32 %v1055_v18, %v965_v48 }
 0x115   : > { %v934_v53 = vpop.f32.mrf.mxu0 }
 0x116   : > { %v968_v41 = vadd.f32 %v934_v53, %v755_v63  ;;  %v1084_v39 = vpop.f32.mrf.mxu1  ;;  %v1104_v38 = vadd.f32 %v3286_v37, %v970_v33 }
 0x117   : > { %v3273_v49 = vpop.f32.mrf.mxu0 }
 0x118   : > { %v971_v1 = vadd.f32 %v3273_v49, %v758_v35  ;;  %v3291_v21 = vpop.f32.mrf.mxu1  ;;  %v1102_v60 = vadd.f32 %v1068_v15, %v968_v41 }
 0x119   : > { %v937_v45 = vpop.f32.mrf.mxu0 }
 0x11a   : > { %v969_v50 = vadd.f32 %v937_v45, %v756_v7  ;;  %v1087_v47 = vpop.f32.mrf.mxu1  ;;  %v1105_v26 = vadd.f32 %v3287_v11, %v971_v1 }
 0x11b   : > { %v3276_v40 = vpop.f32.mrf.mxu0 }
 0x11c   : > { %v974_v51 = vadd.f32 %v3276_v40, %v761_v54  ;;  %v3310_v5 = vpop.f32.mrf.mxu1  ;;  %v1103_v20 = vadd.f32 %v1071_v30, %v969_v50 }
 0x11d   : > { %v950_v57 = vpop.f32.mrf.mxu0 }
 0x11e   : > { %v972_v58 = vadd.f32 %v950_v57, %v759_v36  ;;  %v1342_v59 = vpop.f32.mrf.mxu1  ;;  %v1108_v46 = vadd.f32 %v3290_v42, %v974_v51 }
 0x11f   : > { %v3277_v31 = vpop.f32.mrf.mxu0 }
 0x120   : > { %v3311_v6 = vpop.f32.mrf.mxu1  ;;  %v1106_v23 = vadd.f32 %v1084_v39, %v972_v58 }
 0x121   : > { %v953_v62 = vpop.f32.mrf.mxu0 }
 0x122   : > { %v973_v44 = vadd.f32 %v953_v62, %v760_v12  ;;  %v1345_v63 = vpop.f32.mrf.mxu1 }
 0x123   : > { %v3296_v29 = vpop.f32.mrf.mxu0 }
 0x124   : > { %v1256_v10 = vadd.f32 %v3296_v29, %v1100_v56  ;;  %v3314_v17 = vpop.f32.mrf.mxu1  ;;  %v1107_v35 = vadd.f32 %v1087_v47, %v973_v44 }
 0x125   : > { %v1208_v55 = vpop.f32.mrf.mxu0 }
 0x126   : > { %v1254_v0 = vadd.f32 %v1208_v55, %v1098_v25  ;;  %v1358_v52 = vpop.f32.mrf.mxu1  ;;  %v1390_v7 = vadd.f32 %v3310_v5, %v1256_v10 }
 0x127   : > { %v3297_v22 = vpop.f32.mrf.mxu0 }
 0x128   : > { %v1257_v2 = vadd.f32 %v3297_v22, %v1101_v32  ;;  %v3315_v16 = vpop.f32.mrf.mxu1  ;;  %v1388_v54 = vadd.f32 %v1342_v59, %v1254_v0 }
 0x129   : > { %v1211_v28 = vpop.f32.mrf.mxu0 }
 0x12a   : > { %v1255_v8 = vadd.f32 %v1211_v28, %v1099_v14  ;;  %v1361_v36 = vpop.f32.mrf.mxu1  ;;  %v1391_v3 = vadd.f32 %v3311_v6, %v1257_v2 }
 0x12b   : > { %v3300_v9 = vpop.f32.mrf.mxu0 }
 0x12c   : > { %v1260_v18 = vadd.f32 %v3300_v9, %v1104_v38  ;;  %v3318_v24 = vpop.f32.mrf.mxu1  ;;  %v1389_v27 = vadd.f32 %v1345_v63, %v1255_v8 }
 0x12d   : > { %v1224_v37 = vpop.f32.mrf.mxu0 }
 0x12e   : > { %v1258_v12 = vadd.f32 %v1224_v37, %v1102_v60  ;;  %v1374_v34 = vpop.f32.mrf.mxu1  ;;  %v1394_v4 = vadd.f32 %v3314_v17, %v1260_v18 }
 0x12f   : > { %v3301_v15 = vpop.f32.mrf.mxu0 }
 0x130   : > { %v1261_v56 = vadd.f32 %v3301_v15, %v1105_v26  ;;  %v3319_v19 = vpop.f32.mrf.mxu1  ;;  %v1392_v13 = vadd.f32 %v1358_v52, %v1258_v12 }
 0x131   : > { %v1227_v11 = vpop.f32.mrf.mxu0 }
 0x132   : > { %v1259_v25 = vadd.f32 %v1227_v11, %v1103_v20  ;;  %v1377_v43 = vpop.f32.mrf.mxu1  ;;  %v1395_v48 = vadd.f32 %v3315_v16, %v1261_v56 }
 0x133   : > { %v3304_v30 = vpop.f32.mrf.mxu0 }
 0x134   : > { %v1264_v32 = vadd.f32 %v3304_v30, %v1108_v46  ;;  %v3338_v61 = vpop.f32.mrf.mxu1  ;;  %v1393_v33 = vadd.f32 %v1361_v36, %v1259_v25 }
 0x135   : > { %v1240_v42 = vpop.f32.mrf.mxu0 }
 0x136   : > { %v1262_v14 = vadd.f32 %v1240_v42, %v1106_v23  ;;  %v1689_v53 = vpop.f32.mrf.mxu1  ;;  %v1398_v41 = vadd.f32 %v3318_v24, %v1264_v32 }
 0x137   : > { %v3305_v39 = vpop.f32.mrf.mxu0 }
 0x138   : > { %v3339_v38 = vpop.f32.mrf.mxu1  ;;  %v1396_v49 = vadd.f32 %v1374_v34, %v1262_v14 }
 0x139   : > { %v1243_v1 = vpop.f32.mrf.mxu0 }
 0x13a   : > { %v1263_v21 = vadd.f32 %v1243_v1, %v1107_v35  ;;  %v1692_v60 = vpop.f32.mrf.mxu1 }
 0x13b   : > { %v3324_v45 = vpop.f32.mrf.mxu0 }
 0x13c   : > { %v1561_v50 = vadd.f32 %v3324_v45, %v1390_v7  ;;  %v3342_v47 = vpop.f32.mrf.mxu1  ;;  %v1397_v26 = vadd.f32 %v1377_v43, %v1263_v21 }
 0x13d   : > { %v1513_v40 = vpop.f32.mrf.mxu0 }
 0x13e   : > { %v1559_v51 = vadd.f32 %v1513_v40, %v1388_v54  ;;  %v1705_v5 = vpop.f32.mrf.mxu1  ;;  %v4119_v20 = vadd.f32 %v3338_v61, %v1561_v50 }
 0x13f   : > { %v3325_v57 = vpop.f32.mrf.mxu0 }
 0x140   : > { %v1562_v58 = vadd.f32 %v3325_v57, %v1391_v3  ;;  %v3343_v59 = vpop.f32.mrf.mxu1  ;;  %v4121_v46 = vadd.f32 %v1689_v53, %v1559_v51 }
 0x141   : > { %v1516_v31 = vpop.f32.mrf.mxu0 }
 0x142   : > { %v1560_v6 = vadd.f32 %v1516_v31, %v1389_v27  ;;  %v1708_v23 = vpop.f32.mrf.mxu1  ;;  %v4123_v62 = vadd.f32 %v3339_v38, %v1562_v58 }
 0x143   : > { %v3328_v44 = vpop.f32.mrf.mxu0 }
 0x144   : > { %v1565_v63 = vadd.f32 %v3328_v44, %v1394_v4  ;;  %v3346_v29 = vpop.f32.mrf.mxu1  ;;  %v4125_v10 = vadd.f32 %v1692_v60, %v1560_v6 }
 0x145   : > { %v1529_v17 = vpop.f32.mrf.mxu0 }
 0x146   : > { %v1563_v35 = vadd.f32 %v1529_v17, %v1392_v13  ;;  %v1721_v55 = vpop.f32.mrf.mxu1  ;;  %v4127_v0 = vadd.f32 %v3342_v47, %v1565_v63 }
 0x147   : > { %v3329_v52 = vpop.f32.mrf.mxu0 }
 0x148   : > { %v1566_v7 = vadd.f32 %v3329_v52, %v1395_v48  ;;  %v3347_v22 = vpop.f32.mrf.mxu1  ;;  %v4129_v2 = vadd.f32 %v1705_v5, %v1563_v35 }
 0x149   : > { %v1532_v16 = vpop.f32.mrf.mxu0 }
 0x14a   : > { %v1564_v54 = vadd.f32 %v1532_v16, %v1393_v33  ;;  %v1724_v28 = vpop.f32.mrf.mxu1  ;;  %v4131_v8 = vadd.f32 %v3343_v59, %v1566_v7 }
 0x14b   : > { %v3332_v36 = vpop.f32.mrf.mxu0 }
 0x14c   : > { %v1569_v3 = vadd.f32 %v3332_v36, %v1398_v41  ;;  %v3366_v9 = vpop.f32.mrf.mxu1  ;;  %v4133_v18 = vadd.f32 %v1708_v23, %v1564_v54 }
 0x14d   : > { %v1545_v24 = vpop.f32.mrf.mxu0 }
 0x14e   : > { %v1567_v27 = vadd.f32 %v1545_v24, %v1396_v49  ;;  %v2020_v37 = vpop.f32.mrf.mxu1  ;;  %v4135_v12 = vadd.f32 %v3346_v29, %v1569_v3 }
 0x14f   : > { %v3333_v34 = vpop.f32.mrf.mxu0 }
 0x150   : > { %v3367_v4 = vpop.f32.mrf.mxu1  ;;  %v4137_v15 = vadd.f32 %v1721_v55, %v1567_v27 }
 0x151   : > { %v1548_v56 = vpop.f32.mrf.mxu0 }
 0x152   : > { %v1568_v19 = vadd.f32 %v1548_v56, %v1397_v26  ;;  %v2023_v13 = vpop.f32.mrf.mxu1 }
 0x153   : > { %v3352_v11 = vpop.f32.mrf.mxu0 }
 0x154   : > { %v4139_v25 = vpop.f32.mrf.mxu1  ;;  %v4141_v43 = vadd.f32 %v1724_v28, %v1568_v19  ;;  %v1861_v7 = vadd.f32 %v3352_v11, %v4119_v20 }
 0x155   : > { %v1813_v48 = vpop.f32.mrf.mxu0 }
 0x156   : > { %v4143_v30 = vpop.f32.mrf.mxu1  ;;  %v1859_v54 = vadd.f32 %v1813_v48, %v4121_v46  ;;  %v2068_v24 = vadd.f32 %v3366_v9, %v1861_v7 }
 0x157   : > { %v3353_v32 = vpop.f32.mrf.mxu0 }
 0x158   : > { %v4145_v61 = vpop.f32.mrf.mxu1  ;;  %v1862_v3 = vadd.f32 %v3353_v32, %v4123_v62 }
 0x159   : > { %v1816_v33 = vpop.f32.mrf.mxu0 }
 0x15a   : > { %v4147_v42 = vpop.f32.mrf.mxu1  ;;  %v1860_v56 = vadd.f32 %v1816_v33, %v4125_v10  ;;  %v2069_v46 = vadd.f32 %v3367_v4, %v1862_v3 }
 0x15b   : > { %v3356_v14 = vpop.f32.mrf.mxu0 }
 0x15c   : > { %v4149_v53 = vpop.f32.mrf.mxu1  ;;  %v1865_v11 = vadd.f32 %v3356_v14, %v4127_v0  ;;  %v2067_v9 = vadd.f32 %v2023_v13, %v1860_v56 }
 0x15d   : > { %v1829_v41 = vpop.f32.mrf.mxu0 }
 0x15e   : > { %v4151_v39 = vpop.f32.mrf.mxu1  ;;  %v2072_v10 = vadd.f32 %v4139_v25, %v1865_v11  ;;  %v4193_v25 = vld [vmem:[%s4242_s2] ss:$0 sm:$0xff] }
 0x15f   : > { %v3357_v38 = vpop.f32.mrf.mxu0 }
 0x160   : > { %v3375_v49 = vpop.f32.mrf.mxu1  ;;  %v1866_v0 = vadd.f32 %v3357_v38, %v4131_v8 }
 0x161   : > { %v1832_v1 = vpop.f32.mrf.mxu0  ;;  %v2066_v49 = vadd.f32 %v2020_v37, %v1859_v54 }
 0x162   : > { %v4153_v21 = vpop.f32.mrf.mxu1  ;;  %v1864_v4 = vadd.f32 %v1832_v1, %v4133_v18 }
 0x163   : > { %4244 = vst [vmem:[#allocation2_spill] sm:$0xff] %v4153_v21  ;;  %v3360_v60 = vpop.f32.mrf.mxu0 }
 0x164   : > { %v3394_v45 = vpop.f32.mrf.mxu1  ;;  %v1869_v54 = vadd.f32 %v3360_v60, %v4135_v12 }
 0x165   : > { %v4155_v50 = vpop.f32.mrf.mxu0 }
 0x166   : > { %v2360_v47 = vpop.f32.mrf.mxu1  ;;  %v1867_v1 = vadd.f32 %v4155_v50, %v4137_v15 }
 0x167   : > { %v3361_v26 = vpop.f32.mrf.mxu0 }
 0x168   : > { %v3395_v40 = vpop.f32.mrf.mxu1 }
 0x169   : > { %v4157_v51 = vpop.f32.mrf.mxu0 }
 0x16a   : > { %v2363_v5 = vpop.f32.mrf.mxu1 }
 0x16b   : > { %v3380_v57 = vpop.f32.mrf.mxu0 }
 0x16c   : > { %v4159_v58 = vpop.f32.mrf.mxu1  ;;  %v2275_v19 = vadd.f32 %v3380_v57, %v2068_v24 }
 0x16d   : > { %v2227_v59 = vpop.f32.mrf.mxu0 }
 0x16e   : > { %v4161_v31 = vpop.f32.mrf.mxu1  ;;  %v2408_v32 = vadd.f32 %v3394_v45, %v2275_v19 }
 0x16f   : > { %v3381_v6 = vpop.f32.mrf.mxu0 }
 0x170   : > { %v4163_v23 = vpop.f32.mrf.mxu1  ;;  %v2276_v62 = vadd.f32 %v3381_v6, %v2069_v46 }
 0x171   : > { %v2230_v44 = vpop.f32.mrf.mxu0 }
 0x172   : > { %v4165_v63 = vpop.f32.mrf.mxu1  ;;  %v2274_v21 = vadd.f32 %v2230_v44, %v2067_v9  ;;  %v2409_v13 = vadd.f32 %v3395_v40, %v2276_v62  ;;  %v2073_v40 = vadd.f32 %v4145_v61, %v1866_v0 }
 0x173   : > { %v3384_v29 = vpop.f32.mrf.mxu0 }
 0x174   : > { %v4167_v17 = vpop.f32.mrf.mxu1  ;;  %v2407_v38 = vadd.f32 %v2363_v5, %v2274_v21  ;;  %v2076_v21 = vadd.f32 %v4149_v53, %v1869_v54 }
 0x175   : > { %4245 = vst [vmem:[#allocation3_spill] sm:$0xff] %v4167_v17  ;;  %v2243_v35 = vpop.f32.mrf.mxu0 }
 0x176   : > { %v4169_v55 = vpop.f32.mrf.mxu1 }
 0x177   : > { %4246 = vst [vmem:[#allocation4_spill] sm:$0xff] %v4169_v55  ;;  %v3385_v52 = vpop.f32.mrf.mxu0 }
 0x178   : > { %v3403_v22 = vpop.f32.mrf.mxu1  ;;  %v2280_v24 = vadd.f32 %v3385_v52, %v2073_v40  ;;  %v2074_v52 = vadd.f32 %v4151_v39, %v1867_v1 }
 0x179   : > { %v2246_v16 = vpop.f32.mrf.mxu0  ;;  %v2273_v22 = vadd.f32 %v2227_v59, %v2066_v49  ;;  %v1868_v49 = vadd.f32 %v4157_v51, %v4141_v43 }
 0x17a   : > { %v4173_v28 = vpop.f32.mrf.mxu1  ;;  %v2413_v51 = vadd.f32 %v4163_v23, %v2280_v24 }
 0x17b   : > { %4247 = vst [vmem:[#allocation5_spill] sm:$0xff] %v4173_v28  ;;  %v4175_v36 = vpop.f32.mrf.mxu0  ;;  %v1863_v28 = vadd.f32 %v1829_v41, %v4129_v2  ;;  %v2406_v33 = vadd.f32 %v2360_v47, %v2273_v22  ;;  %v2279_v41 = vadd.f32 %v3384_v29, %v2072_v10  ;;  %v2071_v29 = vadd.f32 %v4147_v42, %v1864_v4 }
 0x17c   : > { %v3422_v27 = vpop.f32.mrf.mxu1  ;;  %v4249_v4 = vld [vmem:[#allocation3_spill] sm:$0xff] }
 0x17d   : > { %v4178_v34 = vpop.f32.mrf.mxu0  ;;  %v2070_v14 = vadd.f32 %v4143_v30, %v1863_v28  ;;  %v2412_v28 = vadd.f32 %v4159_v58, %v2279_v41  ;;  %v2283_v58 = vadd.f32 %v4175_v36, %v2076_v21 }
 0x17e   : > { %v2648_v26 = vpop.f32.mrf.mxu1  ;;  %v2281_v22 = vadd.f32 %v4178_v34, %v2074_v52 }
 0x17f   : > { %v3389_v20 = vpop.f32.mrf.mxu0  ;;  %v2277_v44 = vadd.f32 %v2243_v35, %v2070_v14 }
 0x180   : > { %v3423_v48 = vpop.f32.mrf.mxu1 }
 0x181   : > { %v4183_v55 = vpop.f32.mrf.mxu0  ;;  %v2410_v15 = vadd.f32 %v4161_v31, %v2277_v44 }
 0x182   : > { %v2651_v7 = vpop.f32.mrf.mxu1  ;;  %v4251_v1 = vld [vmem:[#allocation5_spill] sm:$0xff] }
 0x183   : > { %v3408_v17 = vpop.f32.mrf.mxu0 }
 0x184   : > { %v2563_v37 = vadd.f32 %v3408_v17, %v2408_v32  ;;  %v3426_v57 = vpop.f32.mrf.mxu1 }
 0x185   : > { %v2515_v2 = vpop.f32.mrf.mxu0 }
 0x186   : > { %v2696_v59 = vadd.f32 %v3422_v27, %v2563_v37  ;;  %v2561_v6 = vadd.f32 %v2515_v2, %v2406_v33  ;;  %v2664_v45 = vpop.f32.mrf.mxu1  ;;  %v2278_v27 = vadd.f32 %v2246_v16, %v2071_v29 }
 0x187   : > { %v3409_v47 = vpop.f32.mrf.mxu0 }
 0x188   : > { %v2694_v8 = vadd.f32 %v2648_v26, %v2561_v6  ;;  %v2564_v18 = vadd.f32 %v3409_v47, %v2409_v13  ;;  %v3427_v30 = vpop.f32.mrf.mxu1  ;;  %v2714_v60 = vadd.f32 %v4193_v25, %v2696_v59  ;;  %v2411_v39 = vadd.f32 %v4165_v63, %v2278_v27  ;;  %v4250_v13 = vld [vmem:[#allocation4_spill] sm:$0xff] }
 0x189   : > { %v2518_v12 = vpop.f32.mrf.mxu0 }
 0x18a   : > { %v2697_v17 = vadd.f32 %v3423_v48, %v2564_v18  ;;  %v2562_v35 = vadd.f32 %v2518_v12, %v2407_v38  ;;  %v2667_v3 = vpop.f32.mrf.mxu1  ;;  %v2712_v61 = vadd.f32 %v4193_v25, %v2694_v8  ;;  %v2725_v53 = vmax.f32 %v2714_v60, 0.0 }
 0x18b   : > { %v3412_v5 = vpop.f32.mrf.mxu0 }
 0x18c   : > { %v2715_v42 = vadd.f32 %v4193_v25, %v2697_v17  ;;  %v2695_v50 = vadd.f32 %v2651_v7, %v2562_v35  ;;  %v2567_v56 = vadd.f32 %v3412_v5, %v2412_v28  ;;  %v3430_v19 = vpop.f32.mrf.mxu1  ;;  %v2723_v46 = vmax.f32 %v2712_v61, 0.0  ;;  %v4248_v7 = vld [vmem:[#allocation2_spill] sm:$0xff] }
 0x18d   : > { %v2531_v16 = vpop.f32.mrf.mxu0  ;;  %v2075_v34 = vadd.f32 %v4248_v7, %v1868_v49 }
 0x18e   : > { %v2726_v26 = vmax.f32 %v2715_v42, 0.0  ;;  %v2713_v20 = vadd.f32 %v4193_v25, %v2695_v50  ;;  %v2565_v31 = vadd.f32 %v2531_v16, %v2410_v15  ;;  %v2680_v11 = vpop.f32.mrf.mxu1  ;;  %v2700_v43 = vadd.f32 %v3426_v57, %v2567_v56 }
 0x18f   : > { %v3413_v36 = vpop.f32.mrf.mxu0  ;;  %v2416_v57 = vadd.f32 %v4249_v4, %v2283_v58  ;;  %v2282_v23 = vadd.f32 %v4183_v55, %v2075_v34 }
 0x190   : > { %v3075_v48 = vpack.c.bf16 %v2726_v26, %v2725_v53  ;;  %v2724_v62 = vmax.f32 %v2713_v20, 0.0  ;;  %v2698_v9 = vadd.f32 %v2664_v45, %v2565_v31  ;;  %v3431_v32 = vpop.f32.mrf.mxu1  ;;  %v2568_v10 = vadd.f32 %v3413_v36, %v2413_v51 }
 0x191   : > { %v2534_v37 = vpop.f32.mrf.mxu0  ;;  %v2718_v14 = vadd.f32 %v4193_v25, %v2700_v43  ;;  %v2414_v45 = vadd.f32 %v4250_v13, %v2281_v22  ;;  %v2415_v40 = vadd.f32 %v4251_v1, %v2282_v23 }
 0x192   : > { %3092 = vst [vmem:[%s4215_s29 + $0x8] sm:$0xff] %v3075_v48   ;;  %v3070_v33 = vpack.c.bf16 %v2724_v62, %v2723_v46  ;;  %v2566_v0 = vadd.f32 %v2534_v37, %v2411_v39  ;;  %v2701_v63 = vadd.f32 %v3427_v30, %v2568_v10  ;;  %v2716_v41 = vadd.f32 %v4193_v25, %v2698_v9  ;;  %v2683_v21 = vpop.f32.mrf.mxu1 }
 0x193   : > { %v3416_v2 = vpop.f32.mrf.mxu0  ;;  %v2729_v55 = vmax.f32 %v2718_v14, 0.0 }
 0x194   : > { %3071 = vst [vmem:[%s4215_s29] sm:$0xff] %v3070_v33   ;;  %v2699_v59 = vadd.f32 %v2667_v3, %v2566_v0  ;;  %v2571_v6 = vadd.f32 %v3416_v2, %v2416_v57  ;;  %v2719_v54 = vadd.f32 %v4193_v25, %v2701_v63  ;;  %v2727_v29 = vmax.f32 %v2716_v41, 0.0 }
 0x195   : > { %v2547_v44 = vpop.f32.mrf.mxu0 }
 0x196   : > { %v2717_v47 = vadd.f32 %v4193_v25, %v2699_v59  ;;  %v2704_v8 = vadd.f32 %v3430_v19, %v2571_v6  ;;  %v2569_v18 = vadd.f32 %v2547_v44, %v2414_v45  ;;  %v2730_v38 = vmax.f32 %v2719_v54, 0.0 }
 0x197   : > { %v3417_v30 = vpop.f32.mrf.mxu0 }
 0x198   : > { %v2728_v12 = vmax.f32 %v2717_v47, 0.0  ;;  %v2722_v60 = vadd.f32 %v4193_v25, %v2704_v8  ;;  %v2702_v17 = vadd.f32 %v2680_v11, %v2569_v18  ;;  %v3085_v35 = vpack.c.bf16 %v2730_v38, %v2729_v55 }
 0x199   : > { %v2550_v28 = vpop.f32.mrf.mxu0 }
 0x19a   : > { %v3080_v3 = vpack.c.bf16 %v2728_v12, %v2727_v29  ;;  %v2733_v24 = vmax.f32 %v2722_v60, 0.0  ;;  %v2570_v27 = vadd.f32 %v2550_v28, %v2415_v40  ;;  %3094 = vst [vmem:[%s4215_s29 + $0x18] sm:$0xff] %v3085_v35   ;;  %v2720_v15 = vadd.f32 %v4193_v25, %v2702_v17 }
 0x19c   : > { %3093 = vst [vmem:[%s4215_s29 + $0x10] sm:$0xff] %v3080_v3   ;;  %v3066_v5 = vpack.c.bf16 %v2733_v24, %v2733_v24  ;;  %v2703_v61 = vadd.f32 %v2683_v21, %v2570_v27  ;;  %v2731_v50 = vmax.f32 %v2720_v15, 0.0 }
 0x19e   : > { %2789 = vst [vmem:[%s4215_s29 + $0x28] sm:$0xf] %v3066_v5  ;;  %v2721_v42 = vadd.f32 %v4193_v25, %v2703_v61 }
 0x1a0   : > { %v2732_v56 = vmax.f32 %v2721_v42, 0.0 }
 0x1a2   : > { %v3090_v19 = vpack.c.bf16 %v2732_v56, %v2731_v50 }
 0x1a4   : > { %3095 = vst [vmem:[%s4215_s29 + $0x20] sm:$0xff] %v3090_v19  }
 0x1a5 PF: > { %s13_s12 = sadd.s32 1, %s3509_s12  }
 0x1a6   : > { %p10_p4 = scmp.ge.s32.totalorder %s13_s12, 8  }
 0x1a8   :  { %12 = sbr.rel (!%p10_p4) target bundleno = 1 (0x1), region = 77 }

// kernel: ts_encoder_forward.6
= control target key start
LH: loop header
LB: loop body
LE: loop exit
PB: predicated region body
PF: predicated region fallthrough
CT: control target
= control target key end

     0   :  { %s424_s6 = smov 0   ;;  %s541_s0 = inlined_call_operand.vmem [shape: bf16[6,32,512], index: 0, kind: input, shape index: {}]   ;;  %s542_s1 = inlined_call_operand.vmem [shape: bf16[6,20,128], index: 1, kind: output, shape index: {}]  }
   0x1 LB: > { %s379_s7 = sadd.s32 4294967295, %s412_s6   ;;  %p383_p0 = scmp.ge.s32.totalorder %s412_s6, 1  ;;  %s412_s6 = sphi %s424_s6, %s11_s6  }
   0x2   : > { %p87_p1 = scmp.lt.s32.totalorder %s412_s6, 7 }
   0x4   : > { %p88_p2 = pnand %p383_p0, %p87_p1 }
   0x5   : > { %p107_p3 = scmp.lt.s32.totalorder (!%p88_p2), %s379_s7, 5 }
   0x6   : > { %91 = sbr.rel (%p88_p2) target bundleno = 50 (0x32), region = 24 }
   0xb   : > { %s550_s7 = smov (!%p107_p3, %s379_s7), 5  ;;  %vm127_vm0 = vsmask.f32 3328  ;;  %vm128_vm1 = vsmask.f32 7440  ;;  %vm302_vm5 = vcmask 1040384  }
   0xc   : > { %s390_s8 = sshll.u32 %s550_s7, 6  ;;  %vm466_vm2 = vmor %vm127_vm0, %vm128_vm1  ;;  %vm216_vm3 = vsmask.f32 1280  ;;  %vm217_vm4 = vsmask.f32 5392  ;;  %vm303_vm6 = vcmask 1044484  }
   0xd   : > { %s438_s11 = scalar_lea.vmem %s541_s0, %s390_s8  ;;  %vm498_vm7 = vmor %vm216_vm3, %vm217_vm4  ;;  %s397_s12 = smul.u32 12, %s550_s7 }
   0xe   : > { %v117_v0 = vld [vmem:[%s438_s11] sm:$0xf]  ;;  %v442_v1 = vld [vmem:[%s438_s11 + $0x10] sm:$0xf]  ;;  %v120_v3 = vld [vmem:[%s438_s11 + $0x4] sm:$0xf] }
   0xf   : > { %v119_v2 = vld [vmem:[%s438_s11 + $0x20] sm:$0x3]  ;;  %v447_v4 = vld [vmem:[%s438_s11 + $0x14] sm:$0xf]  ;;  %v122_v5 = vld [vmem:[%s438_s11 + $0x24] sm:$0x3]  ;;  %v123_v13 = vmax.bf16 %v120_v3, %v117_v0  ;;  %s116_s15 = scalar_lea.vmem %s542_s1, %s397_s12 }
  0x10   : > { %v126_v6 = vld [vmem:[%s438_s11 + $0x20] sm:$0x7]  ;;  %v131_v7 = vshrl.u32 %v117_v0, 16  ;;  %v134_v8 = vshll.u32 %v117_v0, 16  ;;  %v140_v9 = vshll.u32 %v442_v1, 16  ;;  %v144_v10 = vshrl.u32 %v442_v1, 16  ;;  %vm515_vm8 = vmor %vm302_vm5, %vm303_vm6 }
  0x11   : > { %v150_v11 = vshll.u32 %v126_v6, 16  ;;  %v454_v12 = vld [vmem:[%s438_s11 + $0x8] sm:$0xf]  ;;  %v154_v15 = vshrl.u32 %v126_v6, 16  ;;  %v166_v16 = vld [vmem:[%s438_s11 + $0x18] sm:$0xf]  ;;  %v124_v21 = vmax.bf16 %v447_v4, %v442_v1  ;;  %v125_v22 = vmax.bf16 %v122_v5, %v119_v2 }
  0x12   : > { %v133_v14 = vrot.slane %v131_v7, 4  ;;  %v136_v17 = vrot.slane %v134_v8, 5  ;;  %v142_v18 = vrot.slane %v140_v9, 5  ;;  %v146_v19 = vrot.slane %v144_v10, 4  ;;  %v177_v24 = vld [vmem:[%s438_s11 + $0x28] sm:$0x7] }
  0x13   : > { %v152_v20 = vrot.slane %v150_v11, 5  ;;  %v156_v23 = vrot.slane %v154_v15, 4  ;;  %v179_v25 = vshrl.u32 %v454_v12, 16  ;;  %v182_v28 = vshll.u32 %v454_v12, 16  ;;  %v213_v35 = vld [vmem:[%s438_s11] sm:$0xc] }
  0x14   : > { %v137_v26 = vor.u32 %v136_v17, %v133_v14  ;;  %v147_v27 = vor.u32 %v146_v19, %v142_v18  ;;  %v188_v29 = vshll.u32 %v166_v16, 16  ;;  %v192_v33 = vshrl.u32 %v166_v16, 16  ;;  %v167_v46 = vld [vmem:[%s438_s11 + $0x28] sm:$0x3]  ;;  %v171_v52 = vld [vmem:[%s438_s11 + $0xc] sm:$0xf] }
  0x15   : > { %v157_v31 = vor.u32 %v156_v23, %v152_v20  ;;  %v181_v32 = vrot.slane %v179_v25, 4  ;;  %v198_v34 = vshll.u32 %v177_v24, 16  ;;  %v184_v38 = vrot.slane %v182_v28, 5  ;;  %v172_v53 = vld [vmem:[%s438_s11 + $0x1c] sm:$0xf] }
  0x16   : > { %v138_v36 = vrot.slane %v137_v26, 4  ;;  %v148_v37 = vrot.slane %v147_v27, 4  ;;  %v190_v39 = vrot.slane %v188_v29, 5  ;;  %v194_v41 = vrot.slane %v192_v33, 4  ;;  %v173_v55 = vld [vmem:[%s438_s11 + $0x2c] sm:$0x3] }
  0x17   : > { %v158_v40 = vrot.slane %v157_v31, 4  ;;  %v200_v42 = vrot.slane %v198_v34, 5  ;;  %v202_v43 = vshrl.u32 %v177_v24, 16  ;;  %v185_v47 = vor.u32 %v184_v38, %v181_v32  ;;  %v481_v0 = vld [vmem:[%s438_s11 + $0x20] sm:$0xf] }
  0x18   : > { %v143_v44 = vsel %vm466_vm2, %v138_v36, %v142_v18  ;;  %v153_v45 = vsel %vm466_vm2, %v148_v37, %v152_v20  ;;  %v220_v48 = vshrl.u32 %v213_v35, 16  ;;  %v195_v54 = vor.u32 %v194_v41, %v190_v39  ;;  %v486_v5 = vld [vmem:[%s438_s11 + $0x30] sm:$0x1]  ;;  %v254_v18 = vld [vmem:[%s438_s11 + $0x4] sm:$0xc] }
  0x19   : > { %v162_v49 = vmax.bf16 %v143_v44, %v123_v13  ;;  %v163_v50 = vmax.bf16 %v153_v45, %v124_v21  ;;  %v164_v51 = vmax.bf16 %v158_v40, %v125_v22  ;;  %v186_v56 = vrot.slane %v185_v47, 4  ;;  %v255_v27 = vld [vmem:[%s438_s11 + $0x24] sm:$0xf]  ;;  %v256_v32 = vld [vmem:[%s438_s11 + $0x34] sm:$0x1] }
  0x1a   : > { %v204_v57 = vrot.slane %v202_v43, 4  ;;  %v222_v58 = vrot.slane %v220_v48, 6  ;;  %v223_v59 = vshll.u32 %v213_v35, 16  ;;  %v196_v63 = vrot.slane %v195_v54, 4  ;;  %v297_v43 = vld [vmem:[%s438_s11] sm:$0x8] }
  0x1b   : > { %v168_v60 = vmax.bf16 %v454_v12, %v162_v49  ;;  %v169_v61 = vmax.bf16 %v166_v16, %v163_v50  ;;  %v170_v62 = vmax.bf16 %v167_v46, %v164_v51  ;;  %v191_v2 = vsel %vm466_vm2, %v186_v56, %v190_v39 }
  0x1c   : > { %v205_v3 = vor.u32 %v204_v57, %v200_v42  ;;  %v225_v6 = vrot.slane %v223_v59, 7  ;;  %v228_v7 = vrot.slane %v144_v10, 6  ;;  %v201_v12 = vsel %vm466_vm2, %v196_v63, %v200_v42 }
  0x1d   : > { %v174_v8 = vmax.bf16 %v171_v52, %v168_v60  ;;  %v175_v11 = vmax.bf16 %v172_v53, %v169_v61  ;;  %v176_v13 = vmax.bf16 %v173_v55, %v170_v62  ;;  %v229_v16 = vrot.slane %v140_v9, 7 }
  0x1e   : > { %v206_v14 = vrot.slane %v205_v3, 4  ;;  %v226_v15 = vor.u32 %v225_v6, %v222_v58  ;;  %v234_v17 = vshrl.u32 %v481_v0, 16  ;;  %v237_v10 = vshll.u32 %v481_v0, 16 }
  0x1f   : > { %v210_v19 = vmax.bf16 %v191_v2, %v174_v8  ;;  %v244_v20 = vshll.u32 %v486_v5, 16  ;;  %v211_v21 = vmax.bf16 %v201_v12, %v175_v11  ;;  %v230_v24 = vor.u32 %v229_v16, %v228_v7 }
  0x20   : > { %v227_v23 = vrot.slane %v226_v15, 4  ;;  %v236_v9 = vrot.slane %v234_v17, 6  ;;  %v212_v25 = vmax.bf16 %v206_v14, %v176_v13  ;;  %v239_v26 = vrot.slane %v237_v10, 7 }
  0x21   : > { %v258_v28 = vshrl.u32 %v254_v18, 16  ;;  %v261_v29 = vshll.u32 %v254_v18, 16  ;;  %v232_v30 = vrot.slane %v230_v24, 4  ;;  %v246_v31 = vrot.slane %v244_v20, 7 }
  0x22   : > { %v267_v33 = vshrl.u32 %v447_v4, 16  ;;  %v270_v34 = vshll.u32 %v447_v4, 16  ;;  %v231_v35 = vsel %vm498_vm7, %v227_v23, %v230_v24  ;;  %v240_v36 = vor.u32 %v239_v26, %v236_v9 }
  0x23   : > { %v260_v37 = vrot.slane %v258_v28, 6  ;;  %v263_v38 = vrot.slane %v261_v29, 7  ;;  %v277_v41 = vshrl.u32 %v255_v27, 16  ;;  %v280_v42 = vshll.u32 %v255_v27, 16 }
  0x24   : > { %v269_v39 = vrot.slane %v267_v33, 6  ;;  %v272_v40 = vrot.slane %v270_v34, 7  ;;  %v241_v44 = vsel %vm498_vm7, %v232_v30, %v240_v36  ;;  %v242_v45 = vrot.slane %v240_v36, 4 }
  0x25   : > { %v264_v46 = vor.u32 %v263_v38, %v260_v37  ;;  %v287_v47 = vshll.u32 %v256_v32, 16  ;;  %v251_v48 = vmax.bf16 %v231_v35, %v210_v19  ;;  %v279_v4 = vrot.slane %v277_v41, 6 }
  0x26   : > { %v273_v49 = vor.u32 %v272_v40, %v269_v39  ;;  %v282_v50 = vrot.slane %v280_v42, 7  ;;  %v247_v51 = vsel %vm498_vm7, %v242_v45, %v246_v31  ;;  %v252_v52 = vmax.bf16 %v241_v44, %v211_v21 }
  0x27   : > { %v265_v53 = vrot.slane %v264_v46, 4  ;;  %v387_v55 = vrot.slane %v297_v43, 11  ;;  %v289_v58 = vrot.slane %v287_v47, 7  ;;  %v307_v59 = vrot.slane %v442_v1, 7 }
  0x28   : > { %v275_v56 = vrot.slane %v273_v49, 4  ;;  %v283_v57 = vor.u32 %v282_v50, %v279_v4  ;;  %v253_v60 = vmax.bf16 %v247_v51, %v212_v25  ;;  %v310_v62 = vrot.slane %v481_v0, 7 }
  0x29   : > { %v274_v61 = vsel %vm498_vm7, %v265_v53, %v273_v49  ;;  %v313_v63 = vrot.slane %v486_v5, 7  ;;  %v308_v7 = vsel %vm515_vm8, %v387_v55, %v307_v59  ;;  %v309_v11 = vrot.slane %v307_v59, 4 }
  0x2a   : > { %v284_v2 = vsel %vm498_vm7, %v275_v56, %v283_v57  ;;  %v285_v3 = vrot.slane %v283_v57, 4  ;;  %v294_v6 = vmax.bf16 %v274_v61, %v251_v48  ;;  %v312_v1 = vrot.slane %v310_v62, 4 }
  0x2b   : > { %v295_v8 = vmax.bf16 %v284_v2, %v252_v52  ;;  %v311_v0 = vsel %vm515_vm8, %v309_v11, %v310_v62 }
  0x2c   : > { %v290_v13 = vsel %vm498_vm7, %v285_v3, %v289_v58  ;;  %v318_v12 = vmax.bf16 %v308_v7, %v294_v6  ;;  %v314_v5 = vsel %vm515_vm8, %v312_v1, %v313_v63 }
  0x2d   : > { %v296_v14 = vmax.bf16 %v290_v13, %v253_v60  ;;  %v319_v15 = vmax.bf16 %v311_v0, %v295_v8 }
  0x2f   : > { %v320_v16 = vmax.bf16 %v314_v5, %v296_v14  ;;  %v396_v17 = vcombine.low %v318_v12, %v319_v15 }
  0x31   : > { %323 = vst [vmem:[%s116_s15 + $0x8] sm:$0x3] %v320_v16  ;;  %395 = vst [vmem:[%s116_s15] sm:$0xff] %v396_v17  }
  0x32 PF: > { %s11_s6 = sadd.s32 1, %s412_s6  }
  0x33   : > { %p8_p4 = scmp.ge.s32.totalorder %s11_s6, 8  }
  0x35   :  { %10 = sbr.rel (!%p8_p4) target bundleno = 1 (0x1), region = 54 }

// kernel: ts_encoder_forward.7
= control target key start
LH: loop header
LB: loop body
LE: loop exit
PB: predicated region body
PF: predicated region fallthrough
CT: control target
= control target key end

     0   :  { %s1684_s15 = smov 0   ;;  %s1686_s16 = smov 0   ;;  %s2041_s0 = inlined_call_operand.vmem [shape: bf16[2,3,16,128], index: 0, kind: input, shape index: {}]   ;;  %s2042_s1 = inlined_call_operand.vmem [shape: bf16[128,384], index: 1, kind: input, shape index: {}]   ;;  %s2043_s2 = inlined_call_operand.vmem [shape: f32[1,384], index: 2, kind: input, shape index: {}]   ;;  %s2044_s3 = inlined_call_operand.vmem [shape: bf16[2,3,16,128], index: 3, kind: output, shape index: {0}]   ;;  %s2045_s4 = inlined_call_operand.vmem [shape: bf16[2,3,16,256], index: 4, kind: output, shape index: {1}]  }
   0x1   :  { %s1688_s17 = smov 0  }
   0x2 LB: > { %s27_s18 = sadd.s32 1, %s1650_s16  ;;  %p1328_p0 = scmp.ge.s32.totalorder %s1654_s17, 1  ;;  %s1654_s17 = sphi %s1688_s17, %s15_s17   ;;  %s1650_s16 = sphi %s1686_s16, %s2051_s16   ;;  %s1646_s15 = sphi %s1684_s15, %s2050_s15  }
   0x3   : > { %p29_p1 = scmp.ge.s32.totalorder %s27_s18, 2  ;;  %p188_p2 = scmp.lt.s32.totalorder %s1654_s17, 3 }
   0x5   : > { %s2053_s18 = smov (%p29_p1, %s27_s18), 0  ;;  %p189_p3 = pnand %p1328_p0, %p188_p2 }
   0x6   : > { %p233_p4 = scmp.lt.s32.totalorder (!%p189_p3), %s1646_s15, 1 }
   0x7   : > { %192 = sbr.rel (%p189_p3) target bundleno = 314 (0x13a), region = 32 }
   0xc   : > { %v1707_v0 = vld [vmem:[%s2042_s1 + $0xac] ss:$12 sps:$4 sm:$0xff]   ;;  %v1656_v1 = vmov 0.0   ;;  %v1586_v2 = vld [vmem:[%s2042_s1 + $0xb0] ss:$12 sps:$4 sm:$0xff]   ;;  %vm1657_vm0 = vmmov 0   ;;  %v264_v12 = vlaneseq }
   0xd   : > { %1495 = vmatprep.subr.bf16.mxu1 %v1656_v1  ;;  %1511 = vmatprep.mubr.msk.bf16.mxu1 %vm1657_vm0, %v1656_v1  ;;  %v1719_v3 = vld [vmem:[%s2042_s1 + $0xa8] ss:$12 sps:$4 sm:$0xff]   ;;  %v1658_v5 = vmov 0   ;;  %v1590_v6 = vld [vmem:[%s2042_s1 + $0x98] ss:$12 sps:$4 sm:$0xff]   ;;  %s2055_s15 = smov (!%p233_p4, %s1646_s15), 1 }
   0xe   : > { %462 = vmatprep.subr.bf16.mxu0 %v1707_v0  ;;  %1496 = vmatpush3.bf16.msra.mxu1 %v1586_v2  ;;  %v1724_v4 = vld [vmem:[%s2042_s1 + $0x94] ss:$12 sps:$4 sm:$0xff]   ;;  %v1735_v7 = vld [vmem:[%s2042_s1 + $0x90] ss:$12 sps:$4 sm:$0xff]   ;;  %v1752_v10 = vld [vmem:[%s2042_s1 + $0x78] ss:$12 sps:$4 sm:$0xff]  }
   0xf   : > { %494 = vmatprep.mubr.bf16.mxu0 %v1658_v5  ;;  %463 = vmatpush1.bf16.msra.mxu0 %v1719_v3  ;;  %v1741_v8 = vld [vmem:[%s2042_s1 + $0x7c] ss:$12 sps:$4 sm:$0xff]   ;;  %v1594_v9 = vld [vmem:[%s2042_s1 + $0x80] ss:$12 sps:$4 sm:$0xff]   ;;  %v1758_v11 = vld [vmem:[%s2042_s1 + $0x64] ss:$12 sps:$4 sm:$0xff]  }
  0x10   : > { %1497 = vmatprep.subr.bf16.mxu1 %v1656_v1  ;;  %464 = vmatprep.subr.bf16.mxu0 %v1724_v4  ;;  %v1598_v13 = vld [vmem:[%s2042_s1 + $0x68] ss:$12 sps:$4 sm:$0xff]   ;;  %v1771_v14 = vld [vmem:[%s2042_s1 + $0x60] ss:$12 sps:$4 sm:$0xff]   ;;  %s1555_s23 = smul.u32 24, %s2055_s15  ;;  %v265_v16 = vand.u32 127, %v264_v12 }
  0x11   : > { %v1777_v15 = vld [vmem:[%s2042_s1 + $0x4c] ss:$12 sps:$4 sm:$0xff]   ;;  %v1602_v17 = vld [vmem:[%s2042_s1 + $0x50] ss:$12 sps:$4 sm:$0xff]   ;;  %v1789_v18 = vld [vmem:[%s2042_s1 + $0x48] ss:$12 sps:$4 sm:$0xff]  }
  0x12   : > { %1498 = vmatpush3.bf16.msra.mxu1 %v1590_v6  ;;  %v1795_v19 = vld [vmem:[%s2042_s1 + $0x34] ss:$12 sps:$4 sm:$0xff]   ;;  %s1802_s6 = scalar_lea.vmem %s2041_s0, %s1555_s23  ;;  %vm272_vm1 = vcmp.lt.s32.totalorder %v265_v16, 16  ;;  %v1606_v20 = vld [vmem:[%s2042_s1 + $0x38] ss:$12 sps:$4 sm:$0xff]   ;;  %vm271_vm2 = vcmp.lt.s32.totalorder %v265_v16, 8  ;;  %s2016_s26 = scalar_lea.vmem %s2044_s3, %s1555_s23 }
  0x13   : > { %465 = vmatpush1.bf16.msra.mxu0 %v1735_v7  ;;  %1499 = vmatprep.subr.bf16.mxu1 %v1656_v1  ;;  %v1810_v21 = vld [vmem:[%s2042_s1 + $0x30] ss:$12 sps:$4 sm:$0xff]   ;;  %v266_v23 = vld [vmem:[%s1802_s6] sm:$0xf]  ;;  %v267_v25 = vld [vmem:[%s1802_s6 + $0x4] sm:$0xf] }
  0x14   : > { %466 = vmatprep.subr.bf16.mxu0 %v1741_v8  ;;  %v1815_v22 = vld [vmem:[%s2042_s1 + $0x1c] ss:$12 sps:$4 sm:$0xff]   ;;  %v1610_v24 = vld [vmem:[%s2042_s1 + $0x20] ss:$12 sps:$4 sm:$0xff]   ;;  %vm1825_vm3 = vmpackc.low %vm272_vm1, %vm272_vm1  ;;  %s1556_s20 = smul.u32 48, %s2055_s15 }
  0x15   : > { %v1832_v27 = vld [vmem:[%s2042_s1 + $0x18] ss:$12 sps:$4 sm:$0xff]   ;;  %v1332_v28 = vld [vmem:[%s1802_s6 + $0x8] sm:$0xf]  ;;  %v1333_v29 = vld [vmem:[%s1802_s6 + $0xc] sm:$0xf] }
  0x16   : > { %1500 = vmatpush3.bf16.msra.mxu1 %v1594_v9  ;;  %v274_v30 = vsel %vm1825_vm3, 0, %v266_v23  ;;  %v275_v31 = vsel %vm1825_vm3, 0, %v267_v25  ;;  %vm1842_vm4 = vmpackc.low %vm271_vm2, %vm271_vm2  ;;  %v1850_v33 = vld [vmem:[%s2042_s1 + $0x4] ss:$12 sps:$4 sm:$0xff]   ;;  %v1614_v34 = vld [vmem:[%s2042_s1 + $0x8] ss:$12 sps:$4 sm:$0xff]  }
  0x17   : > { %467 = vmatpush1.bf16.msra.mxu0 %v1752_v10  ;;  %1501 = vmatprep.subr.bf16.mxu1 %v1656_v1  ;;  %v277_v35 = vsel %vm1842_vm4, %v1332_v28, %v274_v30  ;;  %v278_v36 = vsel %vm1842_vm4, %v1333_v29, %v275_v31  ;;  %v1864_v37 = vld [vmem:[%s2042_s1] ss:$12 sps:$4 sm:$0xff]   ;;  %v1616_v39 = vld [vmem:[%s2042_s1 + $0xb0] ss:$12 sps:$4 sm:$0xff]   ;;  %v1617_v40 = vld [vmem:[%s2042_s1 + $0x98] ss:$12 sps:$4 sm:$0xff]  }
  0x18   : > { %468 = vmatprep.subr.bf16.mxu0 %v1758_v11  ;;  %v1334_v38 = vcombine.low %v277_v35, %v278_v36  ;;  %v1618_v41 = vld [vmem:[%s2042_s1 + $0x80] ss:$12 sps:$4 sm:$0xff]   ;;  %v1400_v42 = vld [vmem:[%s1802_s6 + $0x10] sm:$0xf]  ;;  %v1401_v43 = vld [vmem:[%s1802_s6 + $0x14] sm:$0xf] }
  0x19   : > { %v1402_v44 = vld [vmem:[%s1802_s6 + $0x8] sm:$0xf]  ;;  %v1403_v45 = vld [vmem:[%s1802_s6 + $0xc] sm:$0xf]  ;;  %v1620_v52 = vld [vmem:[%s2042_s1 + $0x50] ss:$12 sps:$4 sm:$0xff]  }
  0x1a   : > { %1502 = vmatpush3.bf16.msra.mxu1 %v1598_v13  ;;  %v882_v46 = vsel %vm1825_vm3, %v1402_v44, %v1400_v42  ;;  %v883_v47 = vsel %vm1825_vm3, %v1403_v45, %v1401_v43  ;;  %v1619_v51 = vld [vmem:[%s2042_s1 + $0x68] ss:$12 sps:$4 sm:$0xff]   ;;  %v1621_v53 = vld [vmem:[%s2042_s1 + $0x38] ss:$12 sps:$4 sm:$0xff]   ;;  %v1364_v55 = vld [vmem:[%s1802_s6 + $0xc] sm:$0xf] }
  0x1b   : > { %469 = vmatpush1.bf16.msra.mxu0 %v1771_v14  ;;  %1503 = vmatprep.subr.bf16.mxu1 %v1656_v1  ;;  %v884_v48 = vsel %vm1842_vm4, 0, %v882_v46  ;;  %v885_v49 = vsel %vm1842_vm4, 0, %v883_v47  ;;  %v1363_v54 = vld [vmem:[%s1802_s6 + $0x8] sm:$0xf]  ;;  %v577_v56 = vld [vmem:[%s1802_s6] sm:$0xf] }
  0x1c   : > { %470 = vmatprep.subr.bf16.mxu0 %v1777_v15  ;;  %v1900_v50 = vcombine.low %v884_v48, %v885_v49  ;;  %v578_v57 = vld [vmem:[%s1802_s6 + $0x4] sm:$0xf]  ;;  %v1622_v58 = vld [vmem:[%s2042_s1 + $0x20] ss:$12 sps:$4 sm:$0xff]   ;;  %v1365_v59 = vld [vmem:[%s1802_s6 + $0x10] sm:$0xf]  ;;  %v579_v61 = vsel %vm1825_vm3, %v577_v56, %v1363_v54 }
  0x1d   : > { %v1366_v60 = vld [vmem:[%s1802_s6 + $0x14] sm:$0xf]  ;;  %v580_v62 = vsel %vm1825_vm3, %v578_v57, %v1364_v55  ;;  %v581_v2 = vsel %vm1842_vm4, %v1365_v59, %v579_v61  ;;  %v1624_v13 = vld [vmem:[%s2042_s1 + $0xb0] ss:$12 sps:$4 sm:$0xff]   ;;  %v1625_v16 = vld [vmem:[%s2042_s1 + $0x98] ss:$12 sps:$4 sm:$0xff]   ;;  %s2008_s6 = scalar_lea.vmem %s2045_s4, %s1556_s20 }
  0x1e   : > { %1504 = vmatpush3.bf16.msra.mxu1 %v1602_v17  ;;  %v1623_v63 = vld [vmem:[%s2042_s1 + $0x8] ss:$12 sps:$4 sm:$0xff]   ;;  %v582_v6 = vsel %vm1842_vm4, %v1366_v60, %v580_v62  ;;  %v918_v61 = vld [vmem:[%s2043_s2] sm:$0x7] }
  0x1f   : > { %471 = vmatpush1.bf16.msra.mxu0 %v1789_v18  ;;  %1505 = vmatprep.subr.bf16.mxu1 %v1656_v1  ;;  %v1367_v9 = vcombine.low %v581_v2, %v582_v6 }
  0x20   : > { %472 = vmatprep.subr.bf16.mxu0 %v1795_v19 }
  0x22   : > { %1506 = vmatpush3.bf16.msra.mxu1 %v1606_v20 }
  0x23   : > { %473 = vmatpush1.bf16.msra.mxu0 %v1810_v21  ;;  %1507 = vmatprep.subr.bf16.mxu1 %v1656_v1 }
  0x24   : > { %474 = vmatprep.subr.bf16.mxu0 %v1815_v22 }
  0x26   : > { %1508 = vmatpush3.bf16.msra.mxu1 %v1610_v24 }
  0x27   : > { %475 = vmatpush1.bf16.msra.mxu0 %v1832_v27  ;;  %1509 = vmatprep.subr.bf16.mxu1 %v1656_v1 }
  0x28   : > { %476 = vmatprep.subr.bf16.mxu0 %v1850_v33 }
  0x2a   : > { %1510 = vmatpush3.bf16.msra.mxu1 %v1614_v34 }
  0x2b   : > { %477 = vmatpush1.bf16.msra.mxu0 %v1864_v37  ;;  %1515 = vmatprep.subr.bf16.mxu1 %v1656_v1 }
  0x2c   : > { %766 = vmatprep.subr.bf16.mxu0 %v1707_v0 }
  0x2d   : > { %1512 = vmatmul.mubr.bf16.vlgmr.msra.gmra.mxu1 %v1334_v38 }
  0x2e   : > { %495 = vmatmul.mubr.bf16.vlgmr.msra.gmra.mxu0 %v1334_v38  ;;  %1516 = vmatpush3.bf16.msra.mxu1 %v1616_v39  ;;  %v615_v38 = vld [vmem:[%s2043_s2] sm:$0x7] }
  0x2f   : > { %767 = vmatpush1.bf16.msra.mxu0 %v1719_v3  ;;  %1517 = vmatprep.subr.bf16.mxu1 %v1656_v1 }
  0x30   : > { %768 = vmatprep.subr.bf16.mxu0 %v1724_v4  ;;  %1531 = vmatprep.mubr.msk.bf16.mxu1 %vm1657_vm0, %v1656_v1 }
  0x31   : > { %798 = vmatprep.mubr.bf16.mxu0 %v1658_v5 }
  0x32   : > { %1518 = vmatpush3.bf16.msra.mxu1 %v1617_v40 }
  0x33   : > { %769 = vmatpush1.bf16.msra.mxu0 %v1735_v7  ;;  %1519 = vmatprep.subr.bf16.mxu1 %v1656_v1 }
  0x34   : > { %770 = vmatprep.subr.bf16.mxu0 %v1741_v8 }
  0x36   : > { %1520 = vmatpush3.bf16.msra.mxu1 %v1618_v41 }
  0x37   : > { %771 = vmatpush1.bf16.msra.mxu0 %v1752_v10  ;;  %1521 = vmatprep.subr.bf16.mxu1 %v1656_v1 }
  0x38   : > { %772 = vmatprep.subr.bf16.mxu0 %v1758_v11 }
  0x3a   : > { %1522 = vmatpush3.bf16.msra.mxu1 %v1619_v51 }
  0x3b   : > { %773 = vmatpush1.bf16.msra.mxu0 %v1771_v14  ;;  %1523 = vmatprep.subr.bf16.mxu1 %v1656_v1 }
  0x3c   : > { %774 = vmatprep.subr.bf16.mxu0 %v1777_v15 }
  0x3e   : > { %1524 = vmatpush3.bf16.msra.mxu1 %v1620_v52 }
  0x3f   : > { %775 = vmatpush1.bf16.msra.mxu0 %v1789_v18  ;;  %1525 = vmatprep.subr.bf16.mxu1 %v1656_v1 }
  0x40   : > { %776 = vmatprep.subr.bf16.mxu0 %v1795_v19 }
  0x42   : > { %1526 = vmatpush3.bf16.msra.mxu1 %v1621_v53 }
  0x43   : > { %777 = vmatpush1.bf16.msra.mxu0 %v1810_v21  ;;  %1527 = vmatprep.subr.bf16.mxu1 %v1656_v1 }
  0x44   : > { %778 = vmatprep.subr.bf16.mxu0 %v1815_v22 }
  0x46   : > { %1528 = vmatpush3.bf16.msra.mxu1 %v1622_v58 }
  0x47   : > { %779 = vmatpush1.bf16.msra.mxu0 %v1832_v27  ;;  %1529 = vmatprep.subr.bf16.mxu1 %v1656_v1 }
  0x48   : > { %780 = vmatprep.subr.bf16.mxu0 %v1850_v33 }
  0x4a   : > { %1530 = vmatpush3.bf16.msra.mxu1 %v1623_v63 }
  0x4b   : > { %781 = vmatpush1.bf16.msra.mxu0 %v1864_v37  ;;  %1535 = vmatprep.subr.bf16.mxu1 %v1656_v1 }
  0x4c   : > { %1069 = vmatprep.subr.bf16.mxu0 %v1707_v0  ;;  %v1626_v0 = vld [vmem:[%s2042_s1 + $0x80] ss:$12 sps:$4 sm:$0xff]  }
  0x4d   : > { %1532 = vmatmul.mubr.bf16.vlgmr.msra.gmra.mxu1 %v1367_v9 }
  0x4e   : > { %799 = vmatmul.mubr.bf16.vlgmr.msra.gmra.mxu0 %v1367_v9  ;;  %1536 = vmatpush3.bf16.msra.mxu1 %v1624_v13 }
  0x4f   : > { %1070 = vmatpush1.bf16.msra.mxu0 %v1719_v3  ;;  %1537 = vmatprep.subr.bf16.mxu1 %v1656_v1  ;;  %v1627_v3 = vld [vmem:[%s2042_s1 + $0x68] ss:$12 sps:$4 sm:$0xff]  }
  0x50   : > { %1071 = vmatprep.subr.bf16.mxu0 %v1724_v4  ;;  %1551 = vmatprep.mubr.msk.bf16.mxu1 %vm1657_vm0, %v1656_v1  ;;  %v1628_v4 = vld [vmem:[%s2042_s1 + $0x50] ss:$12 sps:$4 sm:$0xff]  }
  0x51   : > { %1101 = vmatprep.mubr.bf16.mxu0 %v1658_v5  ;;  %v1629_v5 = vld [vmem:[%s2042_s1 + $0x38] ss:$12 sps:$4 sm:$0xff]  }
  0x52   : > { %1538 = vmatpush3.bf16.msra.mxu1 %v1625_v16 }
  0x53   : > { %1072 = vmatpush1.bf16.msra.mxu0 %v1735_v7  ;;  %1539 = vmatprep.subr.bf16.mxu1 %v1656_v1  ;;  %v1630_v7 = vld [vmem:[%s2042_s1 + $0x20] ss:$12 sps:$4 sm:$0xff]  }
  0x54   : > { %1073 = vmatprep.subr.bf16.mxu0 %v1741_v8  ;;  %v1631_v8 = vld [vmem:[%s2042_s1 + $0x8] ss:$12 sps:$4 sm:$0xff]  }
  0x56   : > { %1540 = vmatpush3.bf16.msra.mxu1 %v1626_v0 }
  0x57   : > { %1074 = vmatpush1.bf16.msra.mxu0 %v1752_v10  ;;  %1541 = vmatprep.subr.bf16.mxu1 %v1656_v1  ;;  %v314_v10 = vshrl.u32 %v264_v12, 7 }
  0x58   : > { %1075 = vmatprep.subr.bf16.mxu0 %v1758_v11 }
  0x59   : > { %v323_v11 = vsub.s32 2, %v314_v10  ;;  %v319_v17 = vsub.s32 1, %v314_v10 }
  0x5a   : > { %1542 = vmatpush3.bf16.msra.mxu1 %v1627_v3 }
  0x5b   : > { %1076 = vmatpush1.bf16.msra.mxu0 %v1771_v14  ;;  %1543 = vmatprep.subr.bf16.mxu1 %v1656_v1  ;;  %v311_v14 = vld [vmem:[%s2043_s2] sm:$0x7]  ;;  %v628_v39 = vrot.slane %v615_v38, %v323_v11  ;;  %v624_v42 = vrot.slane %v615_v38, %v319_v17  ;;  %v931_v62 = vrot.slane %v918_v61, %v323_v11 }
  0x5c   : > { %1077 = vmatprep.subr.bf16.mxu0 %v1777_v15  ;;  %v315_v15 = vsub.s32 0, %v314_v10  ;;  %v320_v20 = vrot.slane %v311_v14, %v319_v17  ;;  %v927_v6 = vrot.slane %v918_v61, %v319_v17 }
  0x5e   : > { %1544 = vmatpush3.bf16.msra.mxu1 %v1628_v4  ;;  %v620_v41 = vrot.slane %v615_v38, %v315_v15  ;;  %v923_v2 = vrot.slane %v918_v61, %v315_v15 }
  0x5f   : > { %1078 = vmatpush1.bf16.msra.mxu0 %v1789_v18  ;;  %1545 = vmatprep.subr.bf16.mxu1 %v1656_v1 }
  0x60   : > { %1079 = vmatprep.subr.bf16.mxu0 %v1795_v19  ;;  %v316_v19 = vrot.slane %v311_v14, %v315_v15 }
  0x62   : > { %1546 = vmatpush3.bf16.msra.mxu1 %v1629_v5 }
  0x63   : > { %1080 = vmatpush1.bf16.msra.mxu0 %v1810_v21  ;;  %1547 = vmatprep.subr.bf16.mxu1 %v1656_v1 }
  0x64   : > { %1081 = vmatprep.subr.bf16.mxu0 %v1815_v22 }
  0x66   : > { %1548 = vmatpush3.bf16.msra.mxu1 %v1630_v7 }
  0x67   : > { %1082 = vmatpush1.bf16.msra.mxu0 %v1832_v27  ;;  %1549 = vmatprep.subr.bf16.mxu1 %v1656_v1  ;;  %v324_v1 = vrot.slane %v311_v14, %v323_v11 }
  0x68   : > { %1083 = vmatprep.subr.bf16.mxu0 %v1850_v33 }
  0x6a   : > { %1550 = vmatpush3.bf16.msra.mxu1 %v1631_v8 }
  0x6b   : > { %1084 = vmatpush1.bf16.msra.mxu0 %v1864_v37 }
  0x6d   : > { %1552 = vmatmul.mubr.bf16.vlgmr.msra.gmra.mxu1 %v1900_v50 }
  0x6e   : > { %1102 = vmatmul.mubr.bf16.vlgmr.msra.gmra.mxu0 %v1900_v50 }
  0xed   : > { %v539_v18 = vpop.f32.mrf.mxu1 }
  0xee   : > { %v496_v21 = vpop.f32.mrf.mxu0  ;;  %v540_v22 = vadd.f32 %v539_v18, %v324_v1 }
  0xef   : > { %v1513_v23 = vpop.f32.mrf.mxu1  ;;  %v497_v25 = vadd.f32 %v496_v21, %v316_v19 }
  0xf0   : > { %v498_v24 = vpop.f32.mrf.mxu0 }
  0xf1   : > { %v499_v26 = vadd.f32 %v498_v24, %v320_v20  ;;  %v542_v12 = vpop.f32.mrf.mxu1  ;;  %v546_v32 = vmax.f32 %v497_v25, 0.0 }
  0xf2   : > { %v500_v27 = vpop.f32.mrf.mxu0  ;;  %v543_v33 = vadd.f32 %v542_v12, %v324_v1 }
  0xf3   : > { %v1441_v28 = vpack.c.bf16 %v540_v22, %v499_v26  ;;  %v501_v29 = vadd.f32 %v500_v27, %v316_v19  ;;  %v1514_v30 = vpop.f32.mrf.mxu1 }
  0xf4   : > { %v502_v31 = vpop.f32.mrf.mxu0 }
  0xf5   : > { %570 = vst [vmem:[%s2008_s6] sm:$0xff] %v1441_v28  ;;  %v547_v34 = vmax.f32 %v501_v29, 0.0  ;;  %v503_v35 = vadd.f32 %v502_v31, %v320_v20 }
  0xf7   : > { %v1454_v36 = vpack.c.bf16 %v547_v34, %v546_v32  ;;  %v1442_v37 = vpack.c.bf16 %v543_v33, %v503_v35 }
  0xf9   : > { %1455 = vst [vmem:[%s2016_s26] sm:$0xff] %v1454_v36   ;;  %571 = vst [vmem:[%s2008_s6 + $0x8] sm:$0xff] %v1442_v37 }
 0x10d   : > { %v843_v40 = vpop.f32.mrf.mxu1 }
 0x10e   : > { %v800_v43 = vpop.f32.mrf.mxu0  ;;  %v844_v44 = vadd.f32 %v843_v40, %v628_v39 }
 0x10f   : > { %v1533_v45 = vpop.f32.mrf.mxu1  ;;  %v801_v47 = vadd.f32 %v800_v43, %v620_v41 }
 0x110   : > { %v802_v46 = vpop.f32.mrf.mxu0 }
 0x111   : > { %v803_v48 = vadd.f32 %v802_v46, %v624_v42  ;;  %v846_v49 = vpop.f32.mrf.mxu1  ;;  %v850_v55 = vmax.f32 %v801_v47, 0.0 }
 0x112   : > { %v804_v50 = vpop.f32.mrf.mxu0  ;;  %v847_v56 = vadd.f32 %v846_v49, %v628_v39 }
 0x113   : > { %v1445_v51 = vpack.c.bf16 %v844_v44, %v803_v48  ;;  %v805_v52 = vadd.f32 %v804_v50, %v620_v41  ;;  %v1534_v53 = vpop.f32.mrf.mxu1 }
 0x114   : > { %v806_v54 = vpop.f32.mrf.mxu0 }
 0x115   : > { %1398 = vst [vmem:[%s2008_s6 + $0x10] sm:$0xff] %v1445_v51  ;;  %v851_v57 = vmax.f32 %v805_v52, 0.0  ;;  %v807_v58 = vadd.f32 %v806_v54, %v624_v42 }
 0x117   : > { %v1459_v59 = vpack.c.bf16 %v851_v57, %v850_v55  ;;  %v1446_v60 = vpack.c.bf16 %v847_v56, %v807_v58 }
 0x119   : > { %1466 = vst [vmem:[%s2016_s26 + $0x8] sm:$0xff] %v1459_v59   ;;  %1399 = vst [vmem:[%s2008_s6 + $0x18] sm:$0xff] %v1446_v60 }
 0x12d   : > { %v1146_v63 = vpop.f32.mrf.mxu1 }
 0x12e   : > { %v1103_v9 = vpop.f32.mrf.mxu0  ;;  %v1147_v13 = vadd.f32 %v1146_v63, %v931_v62 }
 0x12f   : > { %v1553_v16 = vpop.f32.mrf.mxu1  ;;  %v1104_v3 = vadd.f32 %v1103_v9, %v923_v2 }
 0x130   : > { %v1105_v0 = vpop.f32.mrf.mxu0 }
 0x131   : > { %v1106_v4 = vadd.f32 %v1105_v0, %v927_v6  ;;  %v1149_v5 = vpop.f32.mrf.mxu1  ;;  %v1153_v18 = vmax.f32 %v1104_v3, 0.0 }
 0x132   : > { %v1107_v7 = vpop.f32.mrf.mxu0  ;;  %v1150_v11 = vadd.f32 %v1149_v5, %v931_v62 }
 0x133   : > { %v1449_v8 = vpack.c.bf16 %v1147_v13, %v1106_v4  ;;  %v1108_v10 = vadd.f32 %v1107_v7, %v923_v2  ;;  %v1554_v14 = vpop.f32.mrf.mxu1 }
 0x134   : > { %v1109_v1 = vpop.f32.mrf.mxu0 }
 0x135   : > { %1435 = vst [vmem:[%s2008_s6 + $0x20] sm:$0xff] %v1449_v8  ;;  %v1154_v19 = vmax.f32 %v1108_v10, 0.0  ;;  %v1110_v15 = vadd.f32 %v1109_v1, %v927_v6 }
 0x137   : > { %v1464_v17 = vpack.c.bf16 %v1154_v19, %v1153_v18  ;;  %v1450_v20 = vpack.c.bf16 %v1150_v11, %v1110_v15 }
 0x139   : > { %1467 = vst [vmem:[%s2016_s26 + $0x10] sm:$0xff] %v1464_v17   ;;  %1436 = vst [vmem:[%s2008_s6 + $0x28] sm:$0xff] %v1450_v20 }
 0x13a PF: > { %s15_s17 = sadd.s32 1, %s1654_s17   ;;  %s2050_s15 = smov %s1650_s16 }
 0x13b   : > { %p12_p5 = scmp.ge.s32.totalorder %s15_s17, 4   ;;  %s2051_s16 = smov %s2053_s18 }
 0x13d   :  { %14 = sbr.rel (!%p12_p5) target bundleno = 2 (0x2), region = 80 }

// kernel: ts_encoder_forward.8
= control target key start
LH: loop header
LB: loop body
LE: loop exit
PB: predicated region body
PF: predicated region fallthrough
CT: control target
= control target key end

     0   :  { %s2060_s12 = smov 0   ;;  %s2368_s0 = inlined_call_operand.vmem [shape: bf16[6,40,128], index: 0, kind: input, shape index: {}]   ;;  %s2369_s1 = inlined_call_operand.vmem [shape: bf16[9,128,128], index: 1, kind: input, shape index: {}]   ;;  %s2370_s2 = inlined_call_operand.vmem [shape: f32[1,128], index: 2, kind: input, shape index: {}]   ;;  %s2371_s3 = inlined_call_operand.vmem [shape: bf16[6,24,128], index: 3, kind: output, shape index: {}]  }
   0x1 LB: > { %s1433_s13 = sadd.s32 4294967295, %s2038_s12   ;;  %p1437_p0 = scmp.ge.s32.totalorder %s2038_s12, 1  ;;  %s2038_s12 = sphi %s2060_s12, %s13_s12  }
   0x2   : > { %p137_p1 = scmp.lt.s32.totalorder %s2038_s12, 7 }
   0x4   : > { %p138_p2 = pnand %p1437_p0, %p137_p1 }
   0x5   : > { %p161_p3 = scmp.lt.s32.totalorder (!%p138_p2), %s1433_s13, 5 }
   0x6   : > { %141 = sbr.rel (%p138_p2) target bundleno = 380 (0x17c), region = 32 }
   0xb   : > { %v1947_v0 = vld [vmem:[%s2369_s1 + $0x78] sm:$0xff]   ;;  %v1949_v2 = vld [vmem:[%s2369_s1 + $0x70] sm:$0xff]   ;;  %v1951_v4 = vld [vmem:[%s2369_s1 + $0x68] sm:$0xff]   ;;  %s2373_s13 = smov (!%p161_p3, %s1433_s13), 5  ;;  %vm219_vm0 = vsmask.f32 7424 }
   0xc   : > { %v1948_v1 = vld [vmem:[%s2369_s1 + $0x38] sm:$0xff]   ;;  %1757 = vmatprep.subr.bf16.mxu0 %v1947_v0  ;;  %v1950_v3 = vld [vmem:[%s2369_s1 + $0x30] sm:$0xff]   ;;  %v1952_v5 = vld [vmem:[%s2369_s1 + $0x28] sm:$0xff]   ;;  %s1937_s30 = smul.u32 20, %s2373_s13  ;;  %vm453_vm1 = vcmask 1046528   ;;  %vm583_vm2 = vcmask 1044480  }
   0xd   : > { %1777 = vmatprep.subr.bf16.mxu1 %v1948_v1  ;;  %1758 = vmatpush3.bf16.msra.mxu0 %v1947_v0  ;;  %v1953_v6 = vld [vmem:[%s2369_s1 + $0x60] sm:$0xff]   ;;  %v1955_v8 = vld [vmem:[%s2369_s1 + $0x58] sm:$0xff]   ;;  %v1957_v10 = vld [vmem:[%s2369_s1 + $0x50] sm:$0xff]   ;;  %vm709_vm3 = vsmask.f32 4352  ;;  %vm979_vm4 = vcmask 1045504  }
   0xe   : > { %1778 = vmatpush3.bf16.msra.mxu1 %v1948_v1  ;;  %1759 = vmatprep.subr.bf16.mxu0 %v1949_v2  ;;  %v1954_v7 = vld [vmem:[%s2369_s1 + $0x20] sm:$0xff]   ;;  %v1956_v9 = vld [vmem:[%s2369_s1 + $0x18] sm:$0xff]   ;;  %s2104_s10 = scalar_lea.vmem %s2368_s0, %s1937_s30  ;;  %v1958_v14 = vld [vmem:[%s2369_s1 + $0x10] sm:$0xff]   ;;  %vm1105_vm5 = vsmask.f32 5376 }
   0xf   : > { %1779 = vmatprep.subr.bf16.mxu1 %v1950_v3  ;;  %v172_v11 = vld [vmem:[%s2104_s10] sm:$0xf]  ;;  %v2111_v12 = vld [vmem:[%s2104_s10 + $0x4] sm:$0xf]  ;;  %v2114_v13 = vld [vmem:[%s2104_s10 + $0x8] sm:$0xf] }
  0x10   : > { %v191_v15 = vld [vmem:[%s2104_s10 + $0xc] sm:$0x1]  ;;  %v1456_v16 = vcombine.low %v172_v11, %v2111_v12  ;;  %v1961_v26 = vld [vmem:[%s2369_s1 + $0x40] sm:$0xff]   ;;  %v1966_v30 = vld [vmem:[%s2369_s1 + $0xb8] sm:$0xff]   ;;  %v1466_v33 = vcombine.low %v2114_v13, %v2114_v13 }
  0x11   : > { %1760 = vmatpush3.bf16.msra.mxu0 %v1949_v2  ;;  %v2122_v17 = vcombine.low %v2114_v13, %v191_v15  ;;  %v1959_v20 = vld [vmem:[%s2369_s1 + $0x48] sm:$0xff]   ;;  %v1962_v27 = vld [vmem:[%s2369_s1] sm:$0xff]   ;;  %v1967_v31 = vld [vmem:[%s2369_s1 + $0xf8] sm:$0xff]   ;;  %v1567_v15 = vcombine.low %v2111_v12, %v2114_v13 }
  0x12   : > { %1780 = vmatpush3.bf16.msra.mxu1 %v1950_v3  ;;  %1761 = vmatprep.subr.bf16.mxu0 %v1951_v4  ;;  %v221_v18 = vshrl.u32 %v1456_v16, 16  ;;  %v223_v19 = vshll.u32 %v1456_v16, 16  ;;  %v1960_v22 = vld [vmem:[%s2369_s1 + $0x8] sm:$0xff]   ;;  %v1968_v34 = vld [vmem:[%s2369_s1 + $0xb0] sm:$0xff]   ;;  %v432_v36 = vld [vmem:[%s2104_s10] sm:$0xe] }
  0x13   : > { %1781 = vmatprep.subr.bf16.mxu1 %v1952_v5  ;;  %1793 = vmatprep.mubr.bf16.mxu1 %v1456_v16  ;;  %v228_v21 = vshll.u32 %v2122_v17, 16  ;;  %v232_v29 = vshrl.u32 %v2122_v17, 16  ;;  %v1969_v35 = vld [vmem:[%s2369_s1 + $0xf0] sm:$0xff]   ;;  %v1491_v37 = vcombine.low %v432_v36, %v2111_v12  ;;  %v455_v38 = vrot.slane %v2122_v17, 1  ;;  %v558_v39 = vld [vmem:[%s2104_s10] sm:$0x8] }
  0x14   : > { %v225_v23 = vrot.slane %v223_v19, 1  ;;  %v559_v40 = vld [vmem:[%s2104_s10 + $0xc] sm:$0x7]  ;;  %v1516_v42 = vcombine.low %v558_v39, %v2111_v12  ;;  %v1972_v49 = vld [vmem:[%s2369_s1 + $0xa0] sm:$0xff]   ;;  %v1974_v52 = vld [vmem:[%s2369_s1 + $0x98] sm:$0xff]  }
  0x15   : > { %1762 = vmatpush3.bf16.msra.mxu0 %v1951_v4  ;;  %v230_v24 = vrot.slane %v228_v21, 1  ;;  %v1970_v41 = vld [vmem:[%s2369_s1 + $0xa8] sm:$0xff]   ;;  %v1517_v43 = vcombine.low %v2114_v13, %v559_v40  ;;  %v454_v45 = vrot.slane %v1491_v37, 1  ;;  %v1973_v51 = vld [vmem:[%s2369_s1 + $0xe0] sm:$0xff]   ;;  %v1975_v53 = vld [vmem:[%s2369_s1 + $0xd8] sm:$0xff]  }
  0x16   : > { %1782 = vmatpush3.bf16.msra.mxu1 %v1952_v5  ;;  %1763 = vmatprep.subr.bf16.mxu0 %v1953_v6  ;;  %v226_v25 = vor.u32 %v225_v23, %v221_v18  ;;  %v1971_v44 = vld [vmem:[%s2369_s1 + $0xe8] sm:$0xff]   ;;  %v584_v46 = vrot.slane %v1516_v42, 3  ;;  %v1976_v54 = vld [vmem:[%s2369_s1 + $0x90] sm:$0xff]   ;;  %v711_v58 = vshrl.u32 %v1516_v42, 16  ;;  %v714_v59 = vshll.u32 %v1516_v42, 16  ;;  %v1980_v0 = vld [vmem:[%s2369_s1 + $0x80] sm:$0xff]  }
  0x17   : > { %1783 = vmatprep.subr.bf16.mxu1 %v1954_v7  ;;  %v234_v32 = vor.u32 %v232_v29, %v230_v24  ;;  %v2166_v47 = vrot.slane %v1517_v43, 3  ;;  %v456_v48 = vsel %vm453_vm1, %v454_v45, %v455_v38  ;;  %v1977_v55 = vld [vmem:[%s2369_s1 + $0xd0] sm:$0xff]   ;;  %v1978_v56 = vld [vmem:[%s2369_s1 + $0x88] sm:$0xff]   ;;  %v1981_v1 = vld [vmem:[%s2369_s1 + $0xc0] sm:$0xff]  }
  0x18   : > { %v231_v28 = vsel %vm219_vm0, %v226_v25, %v230_v24  ;;  %v2195_v57 = vld [vmem:[%s2104_s10 + $0xc] sm:$0xf]  ;;  %v713_v2 = vrot.slane %v711_v58, 3  ;;  %v716_v3 = vrot.slane %v714_v59, 4  ;;  %v1988_v11 = vld [vmem:[%s2369_s1 + $0x170] sm:$0xff]   ;;  %v1991_v12 = vld [vmem:[%s2369_s1 + $0x120] sm:$0xff]  }
  0x19   : > { %1764 = vmatpush3.bf16.msra.mxu0 %v1953_v6  ;;  %1773 = vmatprep.mubr.bf16.mxu0 %v231_v28  ;;  %v586_v50 = vsel %vm583_vm2, %v584_v46, %v2166_v47  ;;  %v1542_v60 = vcombine.low %v2114_v13, %v2195_v57  ;;  %v1979_v61 = vld [vmem:[%s2369_s1 + $0xc8] sm:$0xff]   ;;  %v1983_v6 = vld [vmem:[%s2369_s1 + $0x138] sm:$0xff]   ;;  %v1992_v13 = vld [vmem:[%s2369_s1 + $0x160] sm:$0xff]  }
  0x1a   : > { %1784 = vmatpush3.bf16.msra.mxu1 %v1954_v7  ;;  %1765 = vmatprep.subr.bf16.mxu0 %v1955_v8  ;;  %v1986_v7 = vld [vmem:[%s2369_s1 + $0x178] sm:$0xff]   ;;  %v1989_v16 = vld [vmem:[%s2369_s1 + $0x128] sm:$0xff]   ;;  %v1084_v19 = vld [vmem:[%s2104_s10 + $0x10] sm:$0x7] }
  0x1b   : > { %1785 = vmatprep.subr.bf16.mxu1 %v1956_v9  ;;  %v719_v62 = vshrl.u32 %v1542_v60, 16  ;;  %v722_v63 = vshll.u32 %v1542_v60, 16  ;;  %v1990_v17 = vld [vmem:[%s2369_s1 + $0x168] sm:$0xff]   ;;  %v1994_v21 = vld [vmem:[%s2369_s1 + $0x158] sm:$0xff]   ;;  %v1224_v24 = vld [vmem:[%s2104_s10 + $0x4] sm:$0x8] }
  0x1c   : > { %v950_v18 = vld [vmem:[%s2104_s10 + $0xc] sm:$0xf]  ;;  %v949_v23 = vld [vmem:[%s2104_s10 + $0x8] sm:$0xf]  ;;  %v948_v28 = vld [vmem:[%s2104_s10 + $0x4] sm:$0xc] }
  0x1d   : > { %1766 = vmatpush3.bf16.msra.mxu0 %v1955_v8  ;;  %v721_v4 = vrot.slane %v719_v62, 3  ;;  %v724_v5 = vrot.slane %v722_v63, 4  ;;  %v717_v8 = vor.u32 %v716_v3, %v713_v2  ;;  %v1644_v25 = vcombine.low %v1224_v24, %v949_v23  ;;  %v1996_v29 = vld [vmem:[%s2369_s1 + $0x150] sm:$0xff]   ;;  %v1999_v40 = vld [vmem:[%s2369_s1 + $0x100] sm:$0xff]   ;;  %v2008_v58 = vld [vmem:[%s2369_s1 + $0x1a8] sm:$0xff]  }
  0x1e   : > { %1786 = vmatpush3.bf16.msra.mxu1 %v1956_v9  ;;  %1767 = vmatprep.subr.bf16.mxu0 %v1957_v10  ;;  %v2009_v59 = vld [vmem:[%s2369_s1 + $0x1e8] sm:$0xff]   ;;  %v2010_v60 = vld [vmem:[%s2369_s1 + $0x1a0] sm:$0xff]   ;;  %v2012_v62 = vld [vmem:[%s2369_s1 + $0x198] sm:$0xff]  }
  0x1f   : > { %1787 = vmatprep.subr.bf16.mxu1 %v1958_v14  ;;  %v2214_v9 = vor.u32 %v724_v5, %v721_v4  ;;  %v2013_v63 = vld [vmem:[%s2369_s1 + $0x1d8] sm:$0xff]   ;;  %v2016_v2 = vld [vmem:[%s2369_s1 + $0x188] sm:$0xff]   ;;  %v2018_v4 = vld [vmem:[%s2369_s1 + $0x180] sm:$0xff]  }
  0x20   : > { %v2017_v3 = vld [vmem:[%s2369_s1 + $0x1c8] sm:$0xff]   ;;  %v2019_v5 = vld [vmem:[%s2369_s1 + $0x1c0] sm:$0xff]  }
  0x21   : > { %1768 = vmatpush3.bf16.msra.mxu0 %v1957_v10  ;;  %v1987_v10 = vld [vmem:[%s2369_s1 + $0x130] sm:$0xff]  }
  0x22   : > { %1788 = vmatpush3.bf16.msra.mxu1 %v1958_v14  ;;  %1769 = vmatprep.subr.bf16.mxu0 %v1959_v20  ;;  %v726_v14 = vsel %vm709_vm3, %v717_v8, %v2214_v9  ;;  %v2025_v8 = vld [vmem:[%s2369_s1 + $0x228] sm:$0xff]  }
  0x23   : > { %1789 = vmatprep.subr.bf16.mxu1 %v1960_v22 }
  0x25   : > { %1770 = vmatpush3.bf16.msra.mxu0 %v1959_v20  ;;  %v1993_v20 = vld [vmem:[%s2369_s1 + $0x118] sm:$0xff]  }
  0x26   : > { %1790 = vmatpush3.bf16.msra.mxu1 %v1960_v22  ;;  %1771 = vmatprep.subr.bf16.mxu0 %v1961_v26  ;;  %v2248_v22 = vcombine.low %v950_v18, %v1084_v19 }
  0x27   : > { %1791 = vmatprep.subr.bf16.mxu1 %v1962_v27 }
  0x28   : > { %v1118_v39 = vshll.u32 %v2248_v22, 16 }
  0x29   : > { %1772 = vmatpush3.bf16.msra.mxu0 %v1961_v26  ;;  %v1246_v26 = vrot.slane %v2248_v22, 3 }
  0x2a   : > { %1792 = vmatpush3.bf16.msra.mxu1 %v1962_v27  ;;  %1797 = vmatprep.subr.bf16.mxu0 %v1966_v30  ;;  %v1995_v27 = vld [vmem:[%s2369_s1 + $0x110] sm:$0xff]   ;;  %v1120_v46 = vrot.slane %v1118_v39, 3 }
  0x2b   : > { %1817 = vmatprep.subr.bf16.mxu1 %v1967_v31 }
  0x2c   : > { %1774 = vmatmul.mubr.bf16.vlgmr.msra.gmra.mxu0 %v234_v32 }
  0x2d   : > { %1794 = vmatmul.mubr.bf16.vlgmr.msra.gmra.mxu1 %v1466_v33  ;;  %1798 = vmatpush3.bf16.msra.mxu0 %v1966_v30  ;;  %v1245_v30 = vrot.slane %v1644_v25, 3  ;;  %v1997_v33 = vld [vmem:[%s2369_s1 + $0x108] sm:$0xff]  }
  0x2e   : > { %1818 = vmatpush3.bf16.msra.mxu1 %v1967_v31  ;;  %1799 = vmatprep.subr.bf16.mxu0 %v1968_v34  ;;  %v1593_v31 = vcombine.low %v948_v28, %v949_v23 }
  0x2f   : > { %1819 = vmatprep.subr.bf16.mxu1 %v1969_v35  ;;  %1813 = vmatprep.mubr.bf16.mxu0 %v456_v48  ;;  %v2263_v32 = vsel %vm583_vm2, %v1245_v30, %v1246_v26  ;;  %v2005_v48 = vld [vmem:[%s2369_s1 + $0x1f8] sm:$0xff]  }
  0x30   : > { %1833 = vmatprep.mubr.bf16.mxu1 %v586_v50  ;;  %v1107_v36 = vshrl.u32 %v1593_v31, 16  ;;  %v1110_v37 = vshll.u32 %v1593_v31, 16 }
  0x31   : > { %1800 = vmatpush3.bf16.msra.mxu0 %v1968_v34  ;;  %v1998_v34 = vld [vmem:[%s2369_s1 + $0x148] sm:$0xff]  }
  0x32   : > { %1820 = vmatpush3.bf16.msra.mxu1 %v1969_v35  ;;  %1801 = vmatprep.subr.bf16.mxu0 %v1970_v41  ;;  %v951_v35 = vld [vmem:[%s2104_s10 + $0x10] sm:$0x3]  ;;  %v1109_v43 = vrot.slane %v1107_v36, 2  ;;  %s1938_s10 = smul.u32 12, %s2373_s13 }
  0x33   : > { %1821 = vmatprep.subr.bf16.mxu1 %v1971_v44  ;;  %v1594_v42 = vcombine.low %v950_v18, %v951_v35 }
  0x34   : > { %s170_s19 = scalar_lea.vmem %s2371_s3, %s1938_s10 }
  0x35   : > { %1802 = vmatpush3.bf16.msra.mxu0 %v1970_v41  ;;  %v2000_v41 = vld [vmem:[%s2369_s1 + $0x140] sm:$0xff]   ;;  %v981_v50 = vrot.slane %v1594_v42, 2 }
  0x36   : > { %1822 = vmatpush3.bf16.msra.mxu1 %v1971_v44  ;;  %1803 = vmatprep.subr.bf16.mxu0 %v1972_v49  ;;  %v1112_v44 = vrot.slane %v1110_v37, 3 }
  0x37   : > { %1823 = vmatprep.subr.bf16.mxu1 %v1973_v51 }
  0x39   : > { %1804 = vmatpush3.bf16.msra.mxu0 %v1972_v49  ;;  %v980_v49 = vrot.slane %v1593_v31, 2 }
  0x3a   : > { %1824 = vmatpush3.bf16.msra.mxu1 %v1973_v51  ;;  %1805 = vmatprep.subr.bf16.mxu0 %v1974_v52  ;;  %v1568_v51 = vcombine.low %v2195_v57, %v2195_v57 }
  0x3b   : > { %1825 = vmatprep.subr.bf16.mxu1 %v1975_v53 }
  0x3d   : > { %1806 = vmatpush3.bf16.msra.mxu0 %v1974_v52  ;;  %v1113_v52 = vor.u32 %v1112_v44, %v1109_v43 }
  0x3e   : > { %1826 = vmatpush3.bf16.msra.mxu1 %v1975_v53  ;;  %1807 = vmatprep.subr.bf16.mxu0 %v1976_v54 }
  0x3f   : > { %1827 = vmatprep.subr.bf16.mxu1 %v1977_v55 }
  0x41   : > { %1808 = vmatpush3.bf16.msra.mxu0 %v1976_v54  ;;  %v2006_v54 = vld [vmem:[%s2369_s1 + $0x1b0] sm:$0xff]  }
  0x42   : > { %1828 = vmatpush3.bf16.msra.mxu1 %v1977_v55  ;;  %1809 = vmatprep.subr.bf16.mxu0 %v1978_v56  ;;  %v2007_v55 = vld [vmem:[%s2369_s1 + $0x1f0] sm:$0xff]  }
  0x43   : > { %1829 = vmatprep.subr.bf16.mxu1 %v1979_v61 }
  0x45   : > { %1810 = vmatpush3.bf16.msra.mxu0 %v1978_v56  ;;  %v982_v56 = vsel %vm979_vm4, %v980_v49, %v981_v50 }
  0x46   : > { %1830 = vmatpush3.bf16.msra.mxu1 %v1979_v61  ;;  %1811 = vmatprep.subr.bf16.mxu0 %v1980_v0  ;;  %v2011_v61 = vld [vmem:[%s2369_s1 + $0x1e0] sm:$0xff]  }
  0x47   : > { %1831 = vmatprep.subr.bf16.mxu1 %v1981_v1 }
  0x49   : > { %1812 = vmatpush3.bf16.msra.mxu0 %v1980_v0  ;;  %v2014_v0 = vld [vmem:[%s2369_s1 + $0x190] sm:$0xff]  }
  0x4a   : > { %1832 = vmatpush3.bf16.msra.mxu1 %v1981_v1  ;;  %1837 = vmatprep.subr.bf16.mxu0 %v1983_v6  ;;  %v2015_v1 = vld [vmem:[%s2369_s1 + $0x1d0] sm:$0xff]  }
  0x4b   : > { %1857 = vmatprep.subr.bf16.mxu1 %v1986_v7 }
  0x4c   : > { %1814 = vmatmul.mubr.bf16.vlgmr.msra.gmra.mxu0 %v455_v38  ;;  %v1115_v38 = vshrl.u32 %v2248_v22, 16 }
  0x4d   : > { %1838 = vmatpush3.bf16.msra.mxu0 %v1983_v6  ;;  %1834 = vmatmul.mubr.bf16.vlgmr.msra.gmra.mxu1 %v2166_v47  ;;  %v2002_v47 = vld [vmem:[%s2369_s1 + $0x1b8] sm:$0xff]  }
  0x4e   : > { %1858 = vmatpush3.bf16.msra.mxu1 %v1986_v7  ;;  %1839 = vmatprep.subr.bf16.mxu0 %v1987_v10  ;;  %v1117_v45 = vrot.slane %v1115_v38, 2  ;;  %v2023_v6 = vld [vmem:[%s2369_s1 + $0x238] sm:$0xff]   ;;  %v2024_v7 = vld [vmem:[%s2369_s1 + $0x230] sm:$0xff]  }
  0x4f   : > { %1859 = vmatprep.subr.bf16.mxu1 %v1988_v11  ;;  %1853 = vmatprep.mubr.bf16.mxu0 %v726_v14  ;;  %v2029_v14 = vld [vmem:[%s2369_s1 + $0x208] sm:$0xff]  }
  0x50   : > { %1873 = vmatprep.mubr.bf16.mxu1 %v1567_v15  ;;  %v1121_v53 = vor.u32 %v1120_v46, %v1117_v45  ;;  %v2030_v15 = vld [vmem:[%s2369_s1 + $0x200] sm:$0xff]  }
  0x51   : > { %1840 = vmatpush3.bf16.msra.mxu0 %v1987_v10  ;;  %v2027_v10 = vld [vmem:[%s2369_s1 + $0x218] sm:$0xff]  }
  0x52   : > { %1860 = vmatpush3.bf16.msra.mxu1 %v1988_v11  ;;  %1841 = vmatprep.subr.bf16.mxu0 %v1989_v16  ;;  %v1122_v57 = vsel %vm1105_vm5, %v1113_v52, %v1121_v53  ;;  %v2028_v11 = vld [vmem:[%s2369_s1 + $0x210] sm:$0xff]  }
  0x53   : > { %1861 = vmatprep.subr.bf16.mxu1 %v1990_v17 }
  0x55   : > { %1842 = vmatpush3.bf16.msra.mxu0 %v1989_v16 }
  0x56   : > { %1862 = vmatpush3.bf16.msra.mxu1 %v1990_v17  ;;  %1843 = vmatprep.subr.bf16.mxu0 %v1991_v12 }
  0x57   : > { %1863 = vmatprep.subr.bf16.mxu1 %v1992_v13 }
  0x59   : > { %1844 = vmatpush3.bf16.msra.mxu0 %v1991_v12 }
  0x5a   : > { %1864 = vmatpush3.bf16.msra.mxu1 %v1992_v13  ;;  %1845 = vmatprep.subr.bf16.mxu0 %v1993_v20 }
  0x5b   : > { %1865 = vmatprep.subr.bf16.mxu1 %v1994_v21 }
  0x5d   : > { %1846 = vmatpush3.bf16.msra.mxu0 %v1993_v20 }
  0x5e   : > { %1866 = vmatpush3.bf16.msra.mxu1 %v1994_v21  ;;  %1847 = vmatprep.subr.bf16.mxu0 %v1995_v27 }
  0x5f   : > { %1867 = vmatprep.subr.bf16.mxu1 %v1996_v29 }
  0x61   : > { %1848 = vmatpush3.bf16.msra.mxu0 %v1995_v27 }
  0x62   : > { %1868 = vmatpush3.bf16.msra.mxu1 %v1996_v29  ;;  %1849 = vmatprep.subr.bf16.mxu0 %v1997_v33 }
  0x63   : > { %1869 = vmatprep.subr.bf16.mxu1 %v1998_v34 }
  0x65   : > { %1850 = vmatpush3.bf16.msra.mxu0 %v1997_v33 }
  0x66   : > { %1870 = vmatpush3.bf16.msra.mxu1 %v1998_v34  ;;  %1851 = vmatprep.subr.bf16.mxu0 %v1999_v40 }
  0x67   : > { %1871 = vmatprep.subr.bf16.mxu1 %v2000_v41 }
  0x69   : > { %1852 = vmatpush3.bf16.msra.mxu0 %v1999_v40 }
  0x6a   : > { %1872 = vmatpush3.bf16.msra.mxu1 %v2000_v41  ;;  %1877 = vmatprep.subr.bf16.mxu0 %v2002_v47 }
  0x6b   : > { %1897 = vmatprep.subr.bf16.mxu1 %v2005_v48 }
  0x6c   : > { %1854 = vmatmul.mubr.bf16.vlgmr.msra.gmra.mxu0 %v2214_v9  ;;  %v2026_v9 = vld [vmem:[%s2369_s1 + $0x220] sm:$0xff]  }
  0x6d   : > { %1878 = vmatpush3.bf16.msra.mxu0 %v2002_v47  ;;  %1874 = vmatmul.mubr.bf16.vlgmr.msra.gmra.mxu1 %v1568_v51 }
  0x6e   : > { %1898 = vmatpush3.bf16.msra.mxu1 %v2005_v48  ;;  %1879 = vmatprep.subr.bf16.mxu0 %v2006_v54 }
  0x6f   : > { %1899 = vmatprep.subr.bf16.mxu1 %v2007_v55  ;;  %1893 = vmatprep.mubr.bf16.mxu0 %v982_v56 }
  0x70   : > { %1913 = vmatprep.mubr.bf16.mxu1 %v1122_v57 }
  0x71   : > { %1880 = vmatpush3.bf16.msra.mxu0 %v2006_v54 }
  0x72   : > { %1900 = vmatpush3.bf16.msra.mxu1 %v2007_v55  ;;  %1881 = vmatprep.subr.bf16.mxu0 %v2008_v58 }
  0x73   : > { %1901 = vmatprep.subr.bf16.mxu1 %v2009_v59 }
  0x75   : > { %1882 = vmatpush3.bf16.msra.mxu0 %v2008_v58 }
  0x76   : > { %1902 = vmatpush3.bf16.msra.mxu1 %v2009_v59  ;;  %1883 = vmatprep.subr.bf16.mxu0 %v2010_v60 }
  0x77   : > { %1903 = vmatprep.subr.bf16.mxu1 %v2011_v61 }
  0x79   : > { %1884 = vmatpush3.bf16.msra.mxu0 %v2010_v60 }
  0x7a   : > { %1904 = vmatpush3.bf16.msra.mxu1 %v2011_v61  ;;  %1885 = vmatprep.subr.bf16.mxu0 %v2012_v62 }
  0x7b   : > { %1905 = vmatprep.subr.bf16.mxu1 %v2013_v63 }
  0x7d   : > { %1886 = vmatpush3.bf16.msra.mxu0 %v2012_v62 }
  0x7e   : > { %1906 = vmatpush3.bf16.msra.mxu1 %v2013_v63  ;;  %1887 = vmatprep.subr.bf16.mxu0 %v2014_v0 }
  0x7f   : > { %1907 = vmatprep.subr.bf16.mxu1 %v2015_v1 }
  0x81   : > { %1888 = vmatpush3.bf16.msra.mxu0 %v2014_v0  ;;  %v1653_v0 = vld [vmem:[%s2370_s2] ss:$0 sm:$0xff] }
  0x82   : > { %1908 = vmatpush3.bf16.msra.mxu1 %v2015_v1  ;;  %1889 = vmatprep.subr.bf16.mxu0 %v2016_v2 }
  0x83   : > { %1909 = vmatprep.subr.bf16.mxu1 %v2017_v3 }
  0x85   : > { %1890 = vmatpush3.bf16.msra.mxu0 %v2016_v2 }
  0x86   : > { %1910 = vmatpush3.bf16.msra.mxu1 %v2017_v3  ;;  %1891 = vmatprep.subr.bf16.mxu0 %v2018_v4 }
  0x87   : > { %1911 = vmatprep.subr.bf16.mxu1 %v2019_v5 }
  0x89   : > { %1892 = vmatpush3.bf16.msra.mxu0 %v2018_v4 }
  0x8a   : > { %1912 = vmatpush3.bf16.msra.mxu1 %v2019_v5  ;;  %1917 = vmatprep.subr.bf16.mxu0 %v2023_v6 }
  0x8c   : > { %1894 = vmatmul.mubr.bf16.vlgmr.msra.gmra.mxu0 %v981_v50 }
  0x8d   : > { %1918 = vmatpush3.bf16.msra.mxu0 %v2023_v6  ;;  %1914 = vmatmul.mubr.bf16.vlgmr.msra.gmra.mxu1 %v1121_v53 }
  0x8e   : > { %1919 = vmatprep.subr.bf16.mxu0 %v2024_v7  ;;  %1933 = vmatprep.mubr.bf16.mxu0 %v2263_v32 }
  0x91   : > { %1920 = vmatpush3.bf16.msra.mxu0 %v2024_v7 }
  0x92   : > { %1921 = vmatprep.subr.bf16.mxu0 %v2025_v8 }
  0x95   : > { %1922 = vmatpush3.bf16.msra.mxu0 %v2025_v8 }
  0x96   : > { %1923 = vmatprep.subr.bf16.mxu0 %v2026_v9 }
  0x99   : > { %1924 = vmatpush3.bf16.msra.mxu0 %v2026_v9 }
  0x9a   : > { %1925 = vmatprep.subr.bf16.mxu0 %v2027_v10 }
  0x9d   : > { %1926 = vmatpush3.bf16.msra.mxu0 %v2027_v10 }
  0x9e   : > { %1927 = vmatprep.subr.bf16.mxu0 %v2028_v11 }
  0xa1   : > { %1928 = vmatpush3.bf16.msra.mxu0 %v2028_v11 }
  0xa2   : > { %1929 = vmatprep.subr.bf16.mxu0 %v2029_v14 }
  0xa5   : > { %1930 = vmatpush3.bf16.msra.mxu0 %v2029_v14 }
  0xa6   : > { %1931 = vmatprep.subr.bf16.mxu0 %v2030_v15 }
  0xa9   : > { %1932 = vmatpush3.bf16.msra.mxu0 %v2030_v15 }
  0xac   : > { %1934 = vmatmul.mubr.bf16.vlgmr.msra.gmra.mxu0 %v1246_v26 }
  0xec   : > { %v1775_v16 = vpop.f32.mrf.mxu0 }
  0xed   : > { %v1795_v17 = vpop.f32.mrf.mxu1 }
  0xee   : > { %v427_v12 = vadd.f32 %v1795_v17, %v1775_v16  ;;  %v319_v13 = vpop.f32.mrf.mxu0 }
  0xef   : > { %v418_v18 = vpop.f32.mrf.mxu1 }
  0xf0   : > { %v419_v19 = vadd.f32 %v418_v18, %v319_v13  ;;  %v1776_v20 = vpop.f32.mrf.mxu0 }
  0xf1   : > { %v1796_v21 = vpop.f32.mrf.mxu1 }
  0xf2   : > { %v322_v23 = vpop.f32.mrf.mxu0 }
  0xf3   : > { %v421_v24 = vpop.f32.mrf.mxu1 }
  0xf4   : > { %v422_v25 = vadd.f32 %v421_v24, %v322_v23 }
 0x10c   : > { %v1815_v27 = vpop.f32.mrf.mxu0 }
 0x10d   : > { %v557_v28 = vadd.f32 %v1815_v27, %v427_v12  ;;  %v1835_v29 = vpop.f32.mrf.mxu1 }
 0x10e   : > { %v541_v30 = vpop.f32.mrf.mxu0 }
 0x10f   : > { %v555_v31 = vadd.f32 %v541_v30, %v419_v19  ;;  %v687_v32 = vadd.f32 %v1835_v29, %v557_v28  ;;  %v671_v33 = vpop.f32.mrf.mxu1 }
 0x110   : > { %v1816_v22 = vpop.f32.mrf.mxu0 }
 0x111   : > { %v685_v26 = vadd.f32 %v671_v33, %v555_v31  ;;  %v1836_v34 = vpop.f32.mrf.mxu1 }
 0x112   : > { %v544_v35 = vpop.f32.mrf.mxu0 }
 0x113   : > { %v674_v36 = vpop.f32.mrf.mxu1  ;;  %v556_v51 = vadd.f32 %v544_v35, %v422_v25 }
 0x115   : > { %v686_v54 = vadd.f32 %v674_v36, %v556_v51 }
 0x12c   : > { %v1855_v37 = vpop.f32.mrf.mxu0 }
 0x12d   : > { %v1875_v38 = vpop.f32.mrf.mxu1  ;;  %v827_v52 = vadd.f32 %v1855_v37, %v687_v32 }
 0x12e   : > { %v811_v39 = vpop.f32.mrf.mxu0 }
 0x12f   : > { %v931_v40 = vpop.f32.mrf.mxu1  ;;  %v825_v53 = vadd.f32 %v811_v39, %v685_v26  ;;  %v947_v55 = vadd.f32 %v1875_v38, %v827_v52 }
 0x130   : > { %v1856_v41 = vpop.f32.mrf.mxu0 }
 0x131   : > { %v1876_v42 = vpop.f32.mrf.mxu1  ;;  %v945_v56 = vadd.f32 %v931_v40, %v825_v53 }
 0x132   : > { %v814_v43 = vpop.f32.mrf.mxu0 }
 0x133   : > { %v934_v44 = vpop.f32.mrf.mxu1  ;;  %v826_v57 = vadd.f32 %v814_v43, %v686_v54 }
 0x135   : > { %v946_v61 = vadd.f32 %v934_v44, %v826_v57 }
 0x14c   : > { %v1895_v45 = vpop.f32.mrf.mxu0 }
 0x14d   : > { %v1915_v46 = vpop.f32.mrf.mxu1  ;;  %v1083_v58 = vadd.f32 %v1895_v45, %v947_v55 }
 0x14e   : > { %v1067_v47 = vpop.f32.mrf.mxu0 }
 0x14f   : > { %v1207_v48 = vpop.f32.mrf.mxu1  ;;  %v1081_v59 = vadd.f32 %v1067_v47, %v945_v56  ;;  %v1223_v62 = vadd.f32 %v1915_v46, %v1083_v58 }
 0x150   : > { %v1896_v49 = vpop.f32.mrf.mxu0 }
 0x151   : > { %v1916_v50 = vpop.f32.mrf.mxu1  ;;  %v1221_v1 = vadd.f32 %v1207_v48, %v1081_v59 }
 0x152   : > { %v1070_v60 = vpop.f32.mrf.mxu0 }
 0x153   : > { %v1082_v2 = vadd.f32 %v1070_v60, %v946_v61  ;;  %v1210_v4 = vpop.f32.mrf.mxu1 }
 0x155   : > { %v1222_v9 = vadd.f32 %v1210_v4, %v1082_v2 }
 0x16c   : > { %v1935_v63 = vpop.f32.mrf.mxu0 }
 0x16d   : > { %v1348_v3 = vadd.f32 %v1935_v63, %v1223_v62 }
 0x16e   : > { %v1332_v5 = vpop.f32.mrf.mxu0 }
 0x16f   : > { %v1358_v6 = vadd.f32 %v1653_v0, %v1348_v3  ;;  %v1346_v7 = vadd.f32 %v1332_v5, %v1221_v1 }
 0x170   : > { %v1936_v8 = vpop.f32.mrf.mxu0 }
 0x171   : > { %v1361_v10 = vmax.f32 %v1358_v6, 0.0  ;;  %v1356_v15 = vadd.f32 %v1653_v0, %v1346_v7 }
 0x172   : > { %v1335_v11 = vpop.f32.mrf.mxu0 }
 0x173   : > { %v1661_v14 = vpack.c.bf16 %v1361_v10, %v1361_v10  ;;  %v1347_v16 = vadd.f32 %v1335_v11, %v1222_v9  ;;  %v1359_v12 = vmax.f32 %v1356_v15, 0.0 }
 0x175   : > { %1377 = vst [vmem:[%s170_s19 + $0x8] sm:$0xf] %v1661_v14  ;;  %v1357_v17 = vadd.f32 %v1653_v0, %v1347_v16 }
 0x177   : > { %v1360_v13 = vmax.f32 %v1357_v17, 0.0 }
 0x179   : > { %v1665_v18 = vpack.c.bf16 %v1360_v13, %v1359_v12 }
 0x17b   : > { %1666 = vst [vmem:[%s170_s19] sm:$0xff] %v1665_v18  }
 0x17c PF: > { %s13_s12 = sadd.s32 1, %s2038_s12  }
 0x17d   : > { %p10_p4 = scmp.ge.s32.totalorder %s13_s12, 8  }
 0x17f   :  { %12 = sbr.rel (!%p10_p4) target bundleno = 1 (0x1), region = 70 }

// kernel: ts_encoder_forward.9
= control target key start
LH: loop header
LB: loop body
LE: loop exit
PB: predicated region body
PF: predicated region fallthrough
CT: control target
= control target key end

     0   :  { %s859_s15 = smov 0   ;;  %s861_s16 = smov 0   ;;  %s964_s0 = inlined_call_operand.vmem [shape: bf16[2,3,16,128], index: 0, kind: input, shape index: {}]   ;;  %s965_s1 = inlined_call_operand.vmem [shape: bf16[2,3,16,256], index: 1, kind: input, shape index: {}]   ;;  %s966_s2 = inlined_call_operand.vmem [shape: bf16[128,256], index: 2, kind: input, shape index: {}]   ;;  %s967_s3 = inlined_call_operand.vmem [shape: f32[1,256], index: 3, kind: input, shape index: {}]   ;;  %s968_s4 = inlined_call_operand.vmem [shape: f32[2,16,256], index: 4, kind: output, shape index: {}]  }
   0x1   :  { %s863_s17 = smov 0  }
   0x2 LB: > { %s26_s18 = sadd.s32 1, %s827_s16  ;;  %p720_p0 = scmp.ge.s32.totalorder %s831_s17, 1  ;;  %s831_s17 = sphi %s863_s17, %s14_s17   ;;  %s827_s16 = sphi %s861_s16, %s970_s16   ;;  %s823_s15 = sphi %s859_s15, %s969_s15  }
   0x3   : > { %p28_p1 = scmp.ge.s32.totalorder %s26_s18, 2  ;;  %p201_p2 = scmp.lt.s32.totalorder %s831_s17, 3 }
   0x5   : > { %s972_s18 = smov (%p28_p1, %s26_s18), 0  ;;  %p202_p3 = pnand %p720_p0, %p201_p2 }
   0x6   : > { %p247_p4 = scmp.lt.s32.totalorder (!%p202_p3), %s823_s15, 1 }
   0x7   : > { %205 = sbr.rel (%p202_p3) target bundleno = 286 (0x11e), region = 36 }
   0xc   : > { %v782_v0 = vld [vmem:[%s966_s2 + $0x74] ss:$8 sps:$4 sm:$0xff]   ;;  %v784_v1 = vld [vmem:[%s966_s2 + $0x70] ss:$8 sps:$4 sm:$0xff]   ;;  %v833_v2 = vmov 0   ;;  %s974_s15 = smov (!%p247_p4, %s823_s15), 1  ;;  %v299_v20 = vlaneseq }
   0xd   : > { %427 = vmatprep.mubr.bf16.mxu0 %v833_v2  ;;  %497 = vmatprep.mubr.bf16.mxu1 %v833_v2  ;;  %v785_v3 = vld [vmem:[%s966_s2 + $0x64] ss:$8 sps:$4 sm:$0xff]   ;;  %v787_v4 = vld [vmem:[%s966_s2 + $0x60] ss:$8 sps:$4 sm:$0xff]   ;;  %v788_v5 = vld [vmem:[%s966_s2 + $0x54] ss:$8 sps:$4 sm:$0xff]  }
   0xe   : > { %395 = vmatprep.subr.bf16.mxu0 %v782_v0  ;;  %465 = vmatprep.subr.bf16.mxu1 %v782_v0  ;;  %s755_s29 = smul.u32 24, %s974_s15  ;;  %v790_v6 = vld [vmem:[%s966_s2 + $0x50] ss:$8 sps:$4 sm:$0xff]   ;;  %v791_v7 = vld [vmem:[%s966_s2 + $0x44] ss:$8 sps:$4 sm:$0xff]   ;;  %v300_v21 = vshrl.u32 %v299_v20, 7 }
   0xf   : > { %396 = vmatpush1.bf16.msra.mxu0 %v784_v1  ;;  %466 = vmatpush1.bf16.msra.mxu1 %v784_v1  ;;  %v793_v8 = vld [vmem:[%s966_s2 + $0x40] ss:$8 sps:$4 sm:$0xff]   ;;  %v794_v9 = vld [vmem:[%s966_s2 + $0x34] ss:$8 sps:$4 sm:$0xff]   ;;  %v796_v10 = vld [vmem:[%s966_s2 + $0x30] ss:$8 sps:$4 sm:$0xff]  }
  0x10   : > { %397 = vmatprep.subr.bf16.mxu0 %v785_v3  ;;  %467 = vmatprep.subr.bf16.mxu1 %v785_v3  ;;  %s904_s10 = scalar_lea.vmem %s964_s0, %s755_s29  ;;  %v797_v11 = vld [vmem:[%s966_s2 + $0x24] ss:$8 sps:$4 sm:$0xff]   ;;  %v799_v12 = vld [vmem:[%s966_s2 + $0x20] ss:$8 sps:$4 sm:$0xff]   ;;  %v800_v13 = vld [vmem:[%s966_s2 + $0x14] ss:$8 sps:$4 sm:$0xff]  }
  0x11   : > { %v802_v14 = vld [vmem:[%s966_s2 + $0x10] ss:$8 sps:$4 sm:$0xff]   ;;  %v803_v15 = vld [vmem:[%s966_s2 + $0x4] ss:$8 sps:$4 sm:$0xff]   ;;  %v805_v16 = vld [vmem:[%s966_s2] ss:$8 sps:$4 sm:$0xff]  }
  0x12   : > { %v806_v17 = vld [vmem:[%s904_s10] sm:$0xff]   ;;  %v807_v18 = vld [vmem:[%s904_s10 + $0x8] sm:$0xff]   ;;  %v808_v19 = vld [vmem:[%s904_s10 + $0x10] sm:$0xff]   ;;  %s756_s7 = smul.u32 48, %s974_s15  ;;  %v301_v24 = vsub.s32 0, %v300_v21  ;;  %v305_v26 = vsub.s32 1, %v300_v21 }
  0x13   : > { %398 = vmatpush1.bf16.msra.mxu0 %v787_v4  ;;  %468 = vmatpush1.bf16.msra.mxu1 %v787_v4  ;;  %v297_v25 = vld [vmem:[%s967_s3] sm:$0x3]  ;;  %s754_s10 = sshll.u32 %s974_s15, 5 }
  0x14   : > { %399 = vmatprep.subr.bf16.mxu0 %v788_v5  ;;  %469 = vmatprep.subr.bf16.mxu1 %v788_v5  ;;  %s943_s13 = scalar_lea.vmem %s965_s1, %s756_s7  ;;  %v302_v29 = vrot.slane %v297_v25, %v301_v24  ;;  %v306_v32 = vrot.slane %v297_v25, %v305_v26  ;;  %s276_s20 = scalar_lea.vmem %s968_s4, %s754_s10 }
  0x15   : > { %v438_v30 = vld [vmem:[%s943_s13] sm:$0xff]  ;;  %v745_v31 = vld [vmem:[%s943_s13 + $0x10] sm:$0xff]  ;;  %v439_v39 = vld [vmem:[%s943_s13 + $0x8] sm:$0xff] }
  0x16   : > { %v440_v36 = vunpack.c.l.bf16 %v438_v30  ;;  %v511_v38 = vunpack.c.l.bf16 %v745_v31  ;;  %v441_v41 = vunpack.c.h.bf16 %v438_v30  ;;  %v512_v43 = vunpack.c.h.bf16 %v745_v31  ;;  %v746_v44 = vld [vmem:[%s943_s13 + $0x18] sm:$0xff]  ;;  %v750_v51 = vld [vmem:[%s943_s13 + $0x20] sm:$0xff] }
  0x17   : > { %400 = vmatpush1.bf16.msra.mxu0 %v790_v6  ;;  %470 = vmatpush1.bf16.msra.mxu1 %v790_v6  ;;  %v442_v50 = vunpack.c.l.bf16 %v439_v39  ;;  %v513_v53 = vunpack.c.l.bf16 %v746_v44  ;;  %v443_v54 = vunpack.c.h.bf16 %v439_v39  ;;  %v514_v55 = vunpack.c.h.bf16 %v746_v44 }
  0x18   : > { %401 = vmatprep.subr.bf16.mxu0 %v791_v7  ;;  %471 = vmatprep.subr.bf16.mxu1 %v791_v7  ;;  %v582_v60 = vunpack.c.l.bf16 %v750_v51 }
  0x1b   : > { %402 = vmatpush1.bf16.msra.mxu0 %v793_v8  ;;  %472 = vmatpush1.bf16.msra.mxu1 %v793_v8 }
  0x1c   : > { %403 = vmatprep.subr.bf16.mxu0 %v794_v9  ;;  %473 = vmatprep.subr.bf16.mxu1 %v794_v9 }
  0x1f   : > { %404 = vmatpush1.bf16.msra.mxu0 %v796_v10  ;;  %474 = vmatpush1.bf16.msra.mxu1 %v796_v10 }
  0x20   : > { %405 = vmatprep.subr.bf16.mxu0 %v797_v11  ;;  %475 = vmatprep.subr.bf16.mxu1 %v797_v11 }
  0x23   : > { %406 = vmatpush1.bf16.msra.mxu0 %v799_v12  ;;  %476 = vmatpush1.bf16.msra.mxu1 %v799_v12 }
  0x24   : > { %407 = vmatprep.subr.bf16.mxu0 %v800_v13  ;;  %477 = vmatprep.subr.bf16.mxu1 %v800_v13 }
  0x27   : > { %408 = vmatpush1.bf16.msra.mxu0 %v802_v14  ;;  %478 = vmatpush1.bf16.msra.mxu1 %v802_v14 }
  0x28   : > { %409 = vmatprep.subr.bf16.mxu0 %v803_v15  ;;  %479 = vmatprep.subr.bf16.mxu1 %v803_v15 }
  0x2b   : > { %410 = vmatpush1.bf16.msra.mxu0 %v805_v16  ;;  %480 = vmatpush1.bf16.msra.mxu1 %v805_v16 }
  0x2c   : > { %536 = vmatprep.subr.bf16.mxu0 %v782_v0 }
  0x2e   : > { %428 = vmatmul.mubr.bf16.vlgmr.msra.gmra.mxu0 %v806_v17  ;;  %498 = vmatmul.mubr.bf16.vlgmr.msra.gmra.mxu1 %v807_v18 }
  0x2f   : > { %537 = vmatpush1.bf16.msra.mxu0 %v784_v1  ;;  %568 = vmatprep.mubr.bf16.mxu0 %v833_v2  ;;  %v751_v1 = vld [vmem:[%s943_s13 + $0x28] sm:$0xff] }
  0x30   : > { %538 = vmatprep.subr.bf16.mxu0 %v785_v3 }
  0x33   : > { %539 = vmatpush1.bf16.msra.mxu0 %v787_v4  ;;  %v583_v4 = vunpack.c.h.bf16 %v750_v51 }
  0x34   : > { %540 = vmatprep.subr.bf16.mxu0 %v788_v5 }
  0x37   : > { %541 = vmatpush1.bf16.msra.mxu0 %v790_v6 }
  0x38   : > { %542 = vmatprep.subr.bf16.mxu0 %v791_v7 }
  0x3b   : > { %543 = vmatpush1.bf16.msra.mxu0 %v793_v8 }
  0x3c   : > { %544 = vmatprep.subr.bf16.mxu0 %v794_v9 }
  0x3f   : > { %545 = vmatpush1.bf16.msra.mxu0 %v796_v10 }
  0x40   : > { %546 = vmatprep.subr.bf16.mxu0 %v797_v11 }
  0x43   : > { %547 = vmatpush1.bf16.msra.mxu0 %v799_v12  ;;  %v584_v12 = vunpack.c.l.bf16 %v751_v1 }
  0x44   : > { %548 = vmatprep.subr.bf16.mxu0 %v800_v13 }
  0x47   : > { %549 = vmatpush1.bf16.msra.mxu0 %v802_v14 }
  0x48   : > { %550 = vmatprep.subr.bf16.mxu0 %v803_v15 }
  0x4b   : > { %551 = vmatpush1.bf16.msra.mxu0 %v805_v16  ;;  %v585_v16 = vunpack.c.h.bf16 %v751_v1 }
  0x4e   : > { %569 = vmatmul.mubr.bf16.vlgmr.msra.gmra.mxu0 %v808_v19 }
  0xee   : > { %v429_v22 = vpop.f32.mrf.mxu0  ;;  %v499_v23 = vpop.f32.mrf.mxu1 }
  0xef   : > { %v430_v35 = vadd.f32 %v429_v22, %v302_v29  ;;  %v500_v37 = vadd.f32 %v499_v23, %v302_v29 }
  0xf0   : > { %v431_v27 = vpop.f32.mrf.mxu0  ;;  %v501_v28 = vpop.f32.mrf.mxu1 }
  0xf1   : > { %v432_v40 = vadd.f32 %v431_v27, %v306_v32  ;;  %v502_v42 = vadd.f32 %v501_v28, %v306_v32  ;;  %v444_v47 = vadd.f32 %v440_v36, %v430_v35  ;;  %v515_v48 = vadd.f32 %v511_v38, %v500_v37 }
  0xf2   : > { %v433_v33 = vpop.f32.mrf.mxu0  ;;  %v503_v34 = vpop.f32.mrf.mxu1 }
  0xf3   : > { %v434_v49 = vadd.f32 %v433_v33, %v302_v29  ;;  %v504_v52 = vadd.f32 %v503_v34, %v302_v29  ;;  %v445_v56 = vadd.f32 %v441_v41, %v432_v40  ;;  %v516_v57 = vadd.f32 %v512_v43, %v502_v42 }
  0xf4   : > { %v435_v45 = vpop.f32.mrf.mxu0  ;;  %v505_v46 = vpop.f32.mrf.mxu1  ;;  %v448_v61 = vmax.f32 %v444_v47, 0.0  ;;  %v519_v62 = vmax.f32 %v515_v48, 0.0 }
  0xf5   : > { %v436_v58 = vadd.f32 %v435_v45, %v306_v32  ;;  %v506_v59 = vadd.f32 %v505_v46, %v306_v32  ;;  %v446_v63 = vadd.f32 %v442_v50, %v434_v49  ;;  %v517_v2 = vadd.f32 %v513_v53, %v504_v52 }
  0xf6   : > { %v449_v5 = vmax.f32 %v445_v56, 0.0  ;;  %v520_v6 = vmax.f32 %v516_v57, 0.0  ;;  %v523_v13 = vadd.f32 %v519_v62, %v448_v61 }
  0xf7   : > { %v447_v7 = vadd.f32 %v443_v54, %v436_v58  ;;  %v518_v8 = vadd.f32 %v514_v55, %v506_v59  ;;  %v450_v14 = vmax.f32 %v446_v63, 0.0  ;;  %v521_v17 = vmax.f32 %v517_v2, 0.0 }
  0xf8   : > { %v524_v21 = vadd.f32 %v520_v6, %v449_v5 }
  0xf9   : > { %v451_v22 = vmax.f32 %v447_v7, 0.0  ;;  %v522_v23 = vmax.f32 %v518_v8, 0.0  ;;  %v525_v30 = vadd.f32 %v521_v17, %v450_v14 }
  0xfb   : > { %v526_v35 = vadd.f32 %v522_v23, %v451_v22 }
 0x10e   : > { %v570_v0 = vpop.f32.mrf.mxu0 }
 0x10f   : > { %v571_v3 = vadd.f32 %v570_v0, %v302_v29 }
 0x110   : > { %v572_v9 = vpop.f32.mrf.mxu0 }
 0x111   : > { %v586_v10 = vadd.f32 %v582_v60, %v571_v3  ;;  %v573_v11 = vadd.f32 %v572_v9, %v306_v32 }
 0x112   : > { %v574_v15 = vpop.f32.mrf.mxu0 }
 0x113   : > { %v590_v18 = vmax.f32 %v586_v10, 0.0  ;;  %v587_v19 = vadd.f32 %v583_v4, %v573_v11  ;;  %v575_v20 = vadd.f32 %v574_v15, %v302_v29 }
 0x114   : > { %v576_v24 = vpop.f32.mrf.mxu0 }
 0x115   : > { %v594_v25 = vadd.f32 %v590_v18, %v523_v13  ;;  %v591_v26 = vmax.f32 %v587_v19, 0.0  ;;  %v588_v27 = vadd.f32 %v584_v12, %v575_v20  ;;  %v577_v28 = vadd.f32 %v576_v24, %v306_v32 }
 0x117   : > { %598 = vst [vmem:[%s276_s20] sm:$0xff] %v594_v25  ;;  %v595_v31 = vadd.f32 %v591_v26, %v524_v21  ;;  %v592_v33 = vmax.f32 %v588_v27, 0.0  ;;  %v589_v34 = vadd.f32 %v585_v16, %v577_v28 }
 0x119   : > { %599 = vst [vmem:[%s276_s20 + $0x8] sm:$0xff] %v595_v31  ;;  %v596_v29 = vadd.f32 %v592_v33, %v525_v30  ;;  %v593_v36 = vmax.f32 %v589_v34, 0.0 }
 0x11b   : > { %600 = vst [vmem:[%s276_s20 + $0x10] sm:$0xff] %v596_v29  ;;  %v597_v37 = vadd.f32 %v593_v36, %v526_v35 }
 0x11d   : > { %601 = vst [vmem:[%s276_s20 + $0x18] sm:$0xff] %v597_v37 }
 0x11e PF: > { %s14_s17 = sadd.s32 1, %s831_s17   ;;  %s969_s15 = smov %s827_s16 }
 0x11f   : > { %p11_p5 = scmp.ge.s32.totalorder %s14_s17, 4   ;;  %s970_s16 = smov %s972_s18 }
 0x121   :  { %13 = sbr.rel (!%p11_p5) target bundleno = 2 (0x2), region = 73 }

</bundles_post_ra>
